<compile_context>
chip_gen: v6e
topology: v6e:2x2x1
jax: 0.10.0
libtpu: 0.0.40
codegen_flags: <defaults>
</compile_context>

<pallas_src>
import numpy as np
import jax
import jax.numpy as jnp
from jax.experimental import pallas as pl
from jax.experimental.pallas import tpu as pltpu

TIME_STEPS = 32
BATCH = 8
LSTM_HS = 256
CHANNELS = [1, 128, 256, 128]
KERNELS = [8, 5, 3]
NUM_CLASSES = 2
CLASS_PAD = 128          # lane-dense head: pad class dim to one vreg lane width
BN_EPS = 1e-3


def lstm_fcn_kernel(x_ref, xc_ref, wih_ref, bl_ref,
                    w1_ref, t1_ref, w2_ref, t2_ref, w3_ref, t3_ref,
                    pool_ref, wdh_ref, wdp_ref, bd_ref, out_ref):
    H = LSTM_HS
    K2, K3 = KERNELS[1], KERNELS[2]

    # ---- LSTM block: seq_len == 1, h0 = c0 = 0; forget gate pruned in wrapper ----
    gates = jnp.dot(x_ref[...], wih_ref[...],
                    preferred_element_type=jnp.float32) + bl_ref[...]     # (B, 3H) f32
    i_g = jax.nn.sigmoid(gates[:, 0:H])
    g_g = jnp.tanh(gates[:, H:2 * H])
    o_g = jax.nn.sigmoid(gates[:, 2 * H:3 * H])
    h = o_g * jnp.tanh(i_g * g_g)                                         # (B, H) f32
    # TODO(synk): nn.Dropout(p=0.8) is identity in eval mode; training dropout not implemented.

    # ---- conv1 + folded-BN + relu: one matmul on the wrapper-built im2col slab ----
    y1 = jnp.maximum(
        jnp.dot(xc_ref[...], w1_ref[...], preferred_element_type=jnp.float32)
        + t1_ref[...], 0.0)                                               # (B*L1, C1) f32
    y1_bf = y1.astype(jnp.bfloat16)                                       # cast once

    def conv_bn_relu(y_bf, w_ref, t_ref, k):
        # K accumulated (F, Cin) x (Cin, Cout) matmuls: no im2col slab, no
        # K*Cin concat relayout, no f32 spills.  Weight-ref slices are
        # sublane-aligned (multiples of Cin).  Rows whose window crosses a
        # batch boundary are garbage and are zero-weighted by the pooling
        # matrix downstream.
        n, cin = y_bf.shape
        f = n - k + 1
        acc = jnp.dot(y_bf[0:f, :], w_ref[0:cin, :],
                      preferred_element_type=jnp.float32)
        for j in range(1, k):
            acc = acc + jnp.dot(y_bf[j:j + f, :],
                                w_ref[j * cin:(j + 1) * cin, :],
                                preferred_element_type=jnp.float32)
        return jnp.maximum(acc + t_ref[...], 0.0)

    y2 = conv_bn_relu(y1_bf, w2_ref, t2_ref, K2)                          # (F2, C2) f32
    y3 = conv_bn_relu(y2.astype(jnp.bfloat16), w3_ref, t3_ref, K3)        # (F3, C3) f32

    # ---- global average pool as a matmul with a constant 0 / (1/L3) selection ----
    pooled = jnp.dot(pool_ref[...], y3.astype(jnp.bfloat16),
                     preferred_element_type=jnp.float32)                  # (B, C3) f32

    # ---- head: split dense (no concat relayout), log-softmax over padded lanes ----
    logits = (jnp.dot(h.astype(jnp.bfloat16), wdh_ref[...],
                      preferred_element_type=jnp.float32)
              + jnp.dot(pooled.astype(jnp.bfloat16), wdp_ref[...],
                        preferred_element_type=jnp.float32)
              + bd_ref[...])                                              # (B, CLASS_PAD)
    m = jnp.max(logits, axis=1, keepdims=True)
    z = logits - m
    out_ref[...] = z - jnp.log(jnp.sum(jnp.exp(z), axis=1, keepdims=True))


def _fold_conv_bn(conv_w, conv_b, gamma, beta, mean, var, eps=BN_EPS):
    # Fold inference-mode BatchNorm into the conv weight (per-output-channel
    # scale) and a single shift.  Fold in f32 first, cast to bf16 once.
    scale = gamma / jnp.sqrt(var + eps)                     # (Cout,)
    shift = (conv_b - mean) * scale + beta                  # (Cout,)
    cout = conv_w.shape[0]
    w = jnp.transpose(conv_w, (2, 1, 0)).reshape(-1, cout)  # (K*Cin, Cout)
    w = (w * scale[None, :]).astype(jnp.bfloat16)
    return w, shift.reshape(1, -1).astype(jnp.float32)


def lstm_fcn_forward(x, p):
    B, T = x.shape
    H = LSTM_HS
    C = CHANNELS
    K1, K2, K3 = KERNELS
    L1 = T - K1 + 1                      # conv1 valid length per batch
    L2 = L1 - K2 + 1
    L3 = L2 - K3 + 1                     # == AvgPool1d kernel size
    F2 = B * L1 - K2 + 1                 # flat conv2 rows (incl. cross-batch garbage)
    F3 = F2 - K3 + 1                     # flat conv3 rows
    # Flat-slab validity: every valid (in-batch) conv3/pooled row must only
    # consume in-batch conv1 rows; otherwise garbage would contaminate outputs.
    assert L3 >= 1 and L3 + K2 + K3 - 2 <= L1, \
        "KERNELS/TIME_STEPS break the flat-slab (cross-batch garbage row) scheme"

    # LSTM input weight with the dead forget-gate block removed (i, g, o kept).
    W = p["w_ih"]                                            # (4H, T), gate order i,f,g,o
    wih3 = jnp.concatenate([W[0:H], W[2 * H:3 * H], W[3 * H:4 * H]],
                           axis=0).T.astype(jnp.bfloat16)    # (T, 3H)
    b4 = p["b_ih"] + p["b_hh"]
    bl3 = jnp.concatenate([b4[0:H], b4[2 * H:3 * H], b4[3 * H:4 * H]]).reshape(1, 3 * H)

    x_bf = x.astype(jnp.bfloat16)
    # conv1 im2col slab built wrapper-side: row (b*L1 + l, k) = x[b, l + k].
    x_cols = jnp.stack([x[:, k:k + L1] for k in range(K1)],
                       axis=-1).reshape(B * L1, K1).astype(jnp.bfloat16)

    w1, t1 = _fold_conv_bn(p["conv1_w"], p["conv1_b"],
                           p["bn1_g"], p["bn1_b"], p["bn1_m"], p["bn1_v"])
    w2, t2 = _fold_conv_bn(p["conv2_w"], p["conv2_b"],
                           p["bn2_g"], p["bn2_b"], p["bn2_m"], p["bn2_v"])
    w3, t3 = _fold_conv_bn(p["conv3_w"], p["conv3_b"],
                           p["bn3_g"], p["bn3_b"], p["bn3_m"], p["bn3_v"])

    # Pooling matrix: picks the L3 valid rows of each batch out of the flat slab.
    rows = jnp.arange(B, dtype=jnp.int32)[:, None]
    cols = jnp.arange(F3, dtype=jnp.int32)[None, :]
    valid = (cols >= rows * L1) & (cols < rows * L1 + L3)
    pool_mat = jnp.where(valid, 1.0 / L3, 0.0).astype(jnp.bfloat16)       # (B, F3)

    # Dense head split at row H (h rows first, pooled rows second), lane-padded.
    wd = p["dense_w"].T                                      # (H + C3, num_classes)
    wd_pad = jnp.zeros((H + C[3], CLASS_PAD), jnp.float32).at[:, :NUM_CLASSES].set(wd)
    wd_h = wd_pad[:H].astype(jnp.bfloat16)
    wd_p = wd_pad[H:].astype(jnp.bfloat16)
    bd_pad = jnp.full((1, CLASS_PAD), -1e9, jnp.float32).at[0, :NUM_CLASSES].set(p["dense_b"])

    args = (x_bf, x_cols, wih3, bl3, w1, t1, w2, t2, w3, t3,
            pool_mat, wd_h, wd_p, bd_pad)

    flops = 2 * (B * T * 3 * H                 # LSTM gates
                 + B * L1 * K1 * C[1]          # conv1
                 + K2 * F2 * C[1] * C[2]       # conv2 (K accumulated matmuls)
                 + K3 * F3 * C[2] * C[3]       # conv3
                 + B * F3 * C[3]               # pooling matmul
                 + B * (H + C[3]) * CLASS_PAD)  # dense head
    transcendentals = 4 * B * H + B * CLASS_PAD + B
    bytes_accessed = (sum(int(a.size) * a.dtype.itemsize for a in args)
                      + B * CLASS_PAD * 4)

    vmem = pl.BlockSpec(memory_space=pltpu.MemorySpace.VMEM)
    out = pl.pallas_call(
        lstm_fcn_kernel,
        out_shape=jax.ShapeDtypeStruct((B, CLASS_PAD), jnp.float32),
        in_specs=[vmem] * len(args),
        out_specs=vmem,
        cost_estimate=pl.CostEstimate(flops=flops,
                                      transcendentals=transcendentals,
                                      bytes_accessed=bytes_accessed),
    )(*args)
    return out[:, :NUM_CLASSES]


def init_params(key):
    T, H = TIME_STEPS, LSTM_HS
    c, k = CHANNELS, KERNELS
    ks = jax.random.split(key, 24)

    def nrm(kk, shape, scale):
        return scale * jax.random.normal(kk, shape, dtype=jnp.float32)

    p = {}
    p["w_ih"] = nrm(ks[0], (4 * H, T), 1.0 / np.sqrt(T))
    p["w_hh"] = nrm(ks[1], (4 * H, H), 1.0 / np.sqrt(H))   # unused numerically: seq_len==1, h0=0
    p["b_ih"] = nrm(ks[2], (4 * H,), 0.05)
    p["b_hh"] = nrm(ks[3], (4 * H,), 0.05)
    p["conv1_w"] = nrm(ks[4], (c[1], c[0], k[0]), 1.0 / np.sqrt(c[0] * k[0]))
    p["conv1_b"] = nrm(ks[5], (c[1],), 0.02)
    p["conv2_w"] = nrm(ks[6], (c[2], c[1], k[1]), 1.0 / np.sqrt(c[1] * k[1]))
    p["conv2_b"] = nrm(ks[7], (c[2],), 0.02)
    p["conv3_w"] = nrm(ks[8], (c[3], c[2], k[2]), 1.0 / np.sqrt(c[2] * k[2]))
    p["conv3_b"] = nrm(ks[9], (c[3],), 0.02)
    for i, ch in zip((1, 2, 3), (c[1], c[2], c[3])):
        base = 10 + 4 * (i - 1)
        p[f"bn{i}_g"] = 1.0 + nrm(ks[base], (ch,), 0.1)
        p[f"bn{i}_b"] = nrm(ks[base + 1], (ch,), 0.1)
        p[f"bn{i}_m"] = nrm(ks[base + 2], (ch,), 0.05)
        p[f"bn{i}_v"] = 0.9 + 0.1 * jnp.abs(
            jax.random.normal(ks[base + 3], (ch,), dtype=jnp.float32))
    p["dense_w"] = nrm(ks[22], (NUM_CLASSES, c[3] + H), 1.0 / np.sqrt(c[3] + H))
    p["dense_b"] = nrm(ks[23], (NUM_CLASSES,), 0.02)
    return p


def reference_forward(x, p):
    # Pure-JAX mirror of the PyTorch LSTMFCN.forward (eval mode), used as a check.
    H = LSTM_HS
    gates = x @ p["w_ih"].T + p["b_ih"] + p["b_hh"]
    i_g = jax.nn.sigmoid(gates[:, :H])
    g_g = jnp.tanh(gates[:, 2 * H:3 * H])
    o_g = jax.nn.sigmoid(gates[:, 3 * H:4 * H])
    h = o_g * jnp.tanh(i_g * g_g)

    def conv_bn_relu(inp, w, b, g, bt, m, v):
        out = jax.lax.conv_general_dilated(
            inp, w, window_strides=(1,), padding="VALID",
            dimension_numbers=("NCH", "OIH", "NCH"))
        out = out + b[None, :, None]
        out = (out - m[None, :, None]) / jnp.sqrt(v[None, :, None] + BN_EPS)
        out = out * g[None, :, None] + bt[None, :, None]
        return jnp.maximum(out, 0.0)

    xc = x[:, None, :]
    y = conv_bn_relu(xc, p["conv1_w"], p["conv1_b"], p["bn1_g"], p["bn1_b"], p["bn1_m"], p["bn1_v"])
    y = conv_bn_relu(y, p["conv2_w"], p["conv2_b"], p["bn2_g"], p["bn2_b"], p["bn2_m"], p["bn2_v"])
    y = conv_bn_relu(y, p["conv3_w"], p["conv3_b"], p["bn3_g"], p["bn3_b"], p["bn3_m"], p["bn3_v"])
    pooled = jnp.mean(y, axis=2)
    feat = jnp.concatenate([h, pooled], axis=1)
    logits = feat @ p["dense_w"].T + p["dense_b"]
    return jax.nn.log_softmax(logits, axis=1)


if __name__ == "__main__":
    key = jax.random.PRNGKey(0)
    pkey, xkey = jax.random.split(key)
    params = init_params(pkey)
    x = jax.random.normal(xkey, (BATCH, TIME_STEPS), dtype=jnp.float32)

    out = jax.block_until_ready(lstm_fcn_forward(x, params))
    ref = jax.block_until_ready(reference_forward(x, params))

    assert out.shape == (BATCH, NUM_CLASSES)
    np.testing.assert_allclose(np.asarray(out), np.asarray(ref), rtol=5e-2, atol=5e-2)
    print("KERNEL_OK")
</pallas_src>

<mosaic_0001>
module attributes {stable_mosaic.version = 11 : i64} {
  func.func @lstm_fcn_kernel(%arg0: memref<8x32xbf16, #tpu.memory_space<vmem>>, %arg1: memref<200x8xbf16, #tpu.memory_space<vmem>>, %arg2: memref<32x768xbf16, #tpu.memory_space<vmem>>, %arg3: memref<1x768xf32, #tpu.memory_space<vmem>>, %arg4: memref<8x128xbf16, #tpu.memory_space<vmem>>, %arg5: memref<1x128xf32, #tpu.memory_space<vmem>>, %arg6: memref<640x256xbf16, #tpu.memory_space<vmem>>, %arg7: memref<1x256xf32, #tpu.memory_space<vmem>>, %arg8: memref<768x128xbf16, #tpu.memory_space<vmem>>, %arg9: memref<1x128xf32, #tpu.memory_space<vmem>>, %arg10: memref<8x194xbf16, #tpu.memory_space<vmem>>, %arg11: memref<256x128xbf16, #tpu.memory_space<vmem>>, %arg12: memref<128x128xbf16, #tpu.memory_space<vmem>>, %arg13: memref<1x128xf32, #tpu.memory_space<vmem>>, %arg14: memref<8x128xf32, #tpu.memory_space<vmem>>) attributes {dimension_semantics = [], scalar_prefetch = 0 : i64, scratch_operands = 0 : i64, tpu.core_type = #tpu.core_type<tc>} {
    %c0 = arith.constant 0 : index
    %c0_0 = arith.constant 0 : index
    %0 = vector.load %arg0[%c0, %c0_0] : memref<8x32xbf16, #tpu.memory_space<vmem>>, vector<8x32xbf16>
    %c0_1 = arith.constant 0 : index
    %c0_2 = arith.constant 0 : index
    %1 = vector.load %arg2[%c0_1, %c0_2] : memref<32x768xbf16, #tpu.memory_space<vmem>>, vector<32x768xbf16>
    %cst = arith.constant dense<0.000000e+00> : vector<8x768xf32>
    %2 = tpu.matmul %0, %1, %cst {dimension_numbers = #tpu.dot_dimension_numbers<[1], [0], [0], [1], [0, 0, 1, 1], [], []>} : vector<8x32xbf16>, vector<32x768xbf16>, vector<8x768xf32> -> vector<8x768xf32>
    %c0_3 = arith.constant 0 : index
    %c0_4 = arith.constant 0 : index
    %3 = vector.load %arg3[%c0_3, %c0_4] : memref<1x768xf32, #tpu.memory_space<vmem>>, vector<1x768xf32>
    %4 = vector.broadcast %3 : vector<1x768xf32> to vector<8x768xf32>
    %5 = arith.addf %2, %4 : vector<8x768xf32>
    %6 = vector.extract_strided_slice %5 {offsets = [0, 0], sizes = [8, 256], strides = [1, 1]} : vector<8x768xf32> to vector<8x256xf32>
    %7 = arith.negf %6 : vector<8x256xf32>
    %8 = math.exp %7 : vector<8x256xf32>
    %cst_5 = arith.constant 1.000000e+00 : f32
    %9 = vector.broadcast %cst_5 : f32 to vector<8x256xf32>
    %10 = arith.addf %9, %8 : vector<8x256xf32>
    %11 = arith.divf %9, %10 : vector<8x256xf32>
    %12 = vector.extract_strided_slice %5 {offsets = [0, 256], sizes = [8, 256], strides = [1, 1]} : vector<8x768xf32> to vector<8x256xf32>
    %13 = math.tanh %12 : vector<8x256xf32>
    %14 = vector.extract_strided_slice %5 {offsets = [0, 512], sizes = [8, 256], strides = [1, 1]} : vector<8x768xf32> to vector<8x256xf32>
    %15 = arith.negf %14 : vector<8x256xf32>
    %16 = math.exp %15 : vector<8x256xf32>
    %cst_6 = arith.constant 1.000000e+00 : f32
    %17 = vector.broadcast %cst_6 : f32 to vector<8x256xf32>
    %18 = arith.addf %17, %16 : vector<8x256xf32>
    %19 = arith.divf %17, %18 : vector<8x256xf32>
    %20 = arith.mulf %11, %13 : vector<8x256xf32>
    %21 = math.tanh %20 : vector<8x256xf32>
    %22 = arith.mulf %19, %21 : vector<8x256xf32>
    %c0_7 = arith.constant 0 : index
    %c0_8 = arith.constant 0 : index
    %23 = vector.load %arg1[%c0_7, %c0_8] : memref<200x8xbf16, #tpu.memory_space<vmem>>, vector<200x8xbf16>
    %c0_9 = arith.constant 0 : index
    %c0_10 = arith.constant 0 : index
    %24 = vector.load %arg4[%c0_9, %c0_10] : memref<8x128xbf16, #tpu.memory_space<vmem>>, vector<8x128xbf16>
    %cst_11 = arith.constant dense<0.000000e+00> : vector<200x128xf32>
    %25 = tpu.matmul %23, %24, %cst_11 {dimension_numbers = #tpu.dot_dimension_numbers<[1], [0], [0], [1], [0, 0, 1, 1], [], []>} : vector<200x8xbf16>, vector<8x128xbf16>, vector<200x128xf32> -> vector<200x128xf32>
    %c0_12 = arith.constant 0 : index
    %c0_13 = arith.constant 0 : index
    %26 = vector.load %arg5[%c0_12, %c0_13] : memref<1x128xf32, #tpu.memory_space<vmem>>, vector<1x128xf32>
    %27 = vector.broadcast %26 : vector<1x128xf32> to vector<200x128xf32>
    %28 = arith.addf %25, %27 : vector<200x128xf32>
    %cst_14 = arith.constant 0.000000e+00 : f32
    %29 = vector.broadcast %cst_14 : f32 to vector<200x128xf32>
    %30 = arith.maximumf %28, %29 : vector<200x128xf32>
    %31 = arith.truncf %30 : vector<200x128xf32> to vector<200x128xbf16>
    %32 = vector.extract_strided_slice %31 {offsets = [0, 0], sizes = [196, 128], strides = [1, 1]} : vector<200x128xbf16> to vector<196x128xbf16>
    %c0_15 = arith.constant 0 : index
    %c0_16 = arith.constant 0 : index
    %33 = vector.load %arg6[%c0_15, %c0_16] : memref<640x256xbf16, #tpu.memory_space<vmem>>, vector<128x256xbf16>
    %cst_17 = arith.constant dense<0.000000e+00> : vector<196x256xf32>
    %34 = tpu.matmul %32, %33, %cst_17 {dimension_numbers = #tpu.dot_dimension_numbers<[1], [0], [0], [1], [0, 0, 1, 1], [], []>} : vector<196x128xbf16>, vector<128x256xbf16>, vector<196x256xf32> -> vector<196x256xf32>
    %35 = vector.extract_strided_slice %31 {offsets = [1, 0], sizes = [196, 128], strides = [1, 1]} : vector<200x128xbf16> to vector<196x128xbf16>
    %c128 = arith.constant 128 : index
    %c0_18 = arith.constant 0 : index
    %36 = vector.load %arg6[%c128, %c0_18] : memref<640x256xbf16, #tpu.memory_space<vmem>>, vector<128x256xbf16>
    %cst_19 = arith.constant dense<0.000000e+00> : vector<196x256xf32>
    %37 = tpu.matmul %35, %36, %cst_19 {dimension_numbers = #tpu.dot_dimension_numbers<[1], [0], [0], [1], [0, 0, 1, 1], [], []>} : vector<196x128xbf16>, vector<128x256xbf16>, vector<196x256xf32> -> vector<196x256xf32>
    %38 = arith.addf %34, %37 : vector<196x256xf32>
    %39 = vector.extract_strided_slice %31 {offsets = [2, 0], sizes = [196, 128], strides = [1, 1]} : vector<200x128xbf16> to vector<196x128xbf16>
    %c256 = arith.constant 256 : index
    %c0_20 = arith.constant 0 : index
    %40 = vector.load %arg6[%c256, %c0_20] : memref<640x256xbf16, #tpu.memory_space<vmem>>, vector<128x256xbf16>
    %cst_21 = arith.constant dense<0.000000e+00> : vector<196x256xf32>
    %41 = tpu.matmul %39, %40, %cst_21 {dimension_numbers = #tpu.dot_dimension_numbers<[1], [0], [0], [1], [0, 0, 1, 1], [], []>} : vector<196x128xbf16>, vector<128x256xbf16>, vector<196x256xf32> -> vector<196x256xf32>
    %42 = arith.addf %38, %41 : vector<196x256xf32>
    %43 = vector.extract_strided_slice %31 {offsets = [3, 0], sizes = [196, 128], strides = [1, 1]} : vector<200x128xbf16> to vector<196x128xbf16>
    %c384 = arith.constant 384 : index
    %c0_22 = arith.constant 0 : index
    %44 = vector.load %arg6[%c384, %c0_22] : memref<640x256xbf16, #tpu.memory_space<vmem>>, vector<128x256xbf16>
    %cst_23 = arith.constant dense<0.000000e+00> : vector<196x256xf32>
    %45 = tpu.matmul %43, %44, %cst_23 {dimension_numbers = #tpu.dot_dimension_numbers<[1], [0], [0], [1], [0, 0, 1, 1], [], []>} : vector<196x128xbf16>, vector<128x256xbf16>, vector<196x256xf32> -> vector<196x256xf32>
    %46 = arith.addf %42, %45 : vector<196x256xf32>
    %47 = vector.extract_strided_slice %31 {offsets = [4, 0], sizes = [196, 128], strides = [1, 1]} : vector<200x128xbf16> to vector<196x128xbf16>
    %c512 = arith.constant 512 : index
    %c0_24 = arith.constant 0 : index
    %48 = vector.load %arg6[%c512, %c0_24] : memref<640x256xbf16, #tpu.memory_space<vmem>>, vector<128x256xbf16>
    %cst_25 = arith.constant dense<0.000000e+00> : vector<196x256xf32>
    %49 = tpu.matmul %47, %48, %cst_25 {dimension_numbers = #tpu.dot_dimension_numbers<[1], [0], [0], [1], [0, 0, 1, 1], [], []>} : vector<196x128xbf16>, vector<128x256xbf16>, vector<196x256xf32> -> vector<196x256xf32>
    %50 = arith.addf %46, %49 : vector<196x256xf32>
    %c0_26 = arith.constant 0 : index
    %c0_27 = arith.constant 0 : index
    %51 = vector.load %arg7[%c0_26, %c0_27] : memref<1x256xf32, #tpu.memory_space<vmem>>, vector<1x256xf32>
    %52 = vector.broadcast %51 : vector<1x256xf32> to vector<196x256xf32>
    %53 = arith.addf %50, %52 : vector<196x256xf32>
    %cst_28 = arith.constant 0.000000e+00 : f32
    %54 = vector.broadcast %cst_28 : f32 to vector<196x256xf32>
    %55 = arith.maximumf %53, %54 : vector<196x256xf32>
    %56 = arith.truncf %55 : vector<196x256xf32> to vector<196x256xbf16>
    %57 = vector.extract_strided_slice %56 {offsets = [0, 0], sizes = [194, 256], strides = [1, 1]} : vector<196x256xbf16> to vector<194x256xbf16>
    %c0_29 = arith.constant 0 : index
    %c0_30 = arith.constant 0 : index
    %58 = vector.load %arg8[%c0_29, %c0_30] : memref<768x128xbf16, #tpu.memory_space<vmem>>, vector<256x128xbf16>
    %cst_31 = arith.constant dense<0.000000e+00> : vector<194x128xf32>
    %59 = tpu.matmul %57, %58, %cst_31 {dimension_numbers = #tpu.dot_dimension_numbers<[1], [0], [0], [1], [0, 0, 1, 1], [], []>} : vector<194x256xbf16>, vector<256x128xbf16>, vector<194x128xf32> -> vector<194x128xf32>
    %60 = vector.extract_strided_slice %56 {offsets = [1, 0], sizes = [194, 256], strides = [1, 1]} : vector<196x256xbf16> to vector<194x256xbf16>
    %c256_32 = arith.constant 256 : index
    %c0_33 = arith.constant 0 : index
    %61 = vector.load %arg8[%c256_32, %c0_33] : memref<768x128xbf16, #tpu.memory_space<vmem>>, vector<256x128xbf16>
    %cst_34 = arith.constant dense<0.000000e+00> : vector<194x128xf32>
    %62 = tpu.matmul %60, %61, %cst_34 {dimension_numbers = #tpu.dot_dimension_numbers<[1], [0], [0], [1], [0, 0, 1, 1], [], []>} : vector<194x256xbf16>, vector<256x128xbf16>, vector<194x128xf32> -> vector<194x128xf32>
    %63 = arith.addf %59, %62 : vector<194x128xf32>
    %64 = vector.extract_strided_slice %56 {offsets = [2, 0], sizes = [194, 256], strides = [1, 1]} : vector<196x256xbf16> to vector<194x256xbf16>
    %c512_35 = arith.constant 512 : index
    %c0_36 = arith.constant 0 : index
    %65 = vector.load %arg8[%c512_35, %c0_36] : memref<768x128xbf16, #tpu.memory_space<vmem>>, vector<256x128xbf16>
    %cst_37 = arith.constant dense<0.000000e+00> : vector<194x128xf32>
    %66 = tpu.matmul %64, %65, %cst_37 {dimension_numbers = #tpu.dot_dimension_numbers<[1], [0], [0], [1], [0, 0, 1, 1], [], []>} : vector<194x256xbf16>, vector<256x128xbf16>, vector<194x128xf32> -> vector<194x128xf32>
    %67 = arith.addf %63, %66 : vector<194x128xf32>
    %c0_38 = arith.constant 0 : index
    %c0_39 = arith.constant 0 : index
    %68 = vector.load %arg9[%c0_38, %c0_39] : memref<1x128xf32, #tpu.memory_space<vmem>>, vector<1x128xf32>
    %69 = vector.broadcast %68 : vector<1x128xf32> to vector<194x128xf32>
    %70 = arith.addf %67, %69 : vector<194x128xf32>
    %cst_40 = arith.constant 0.000000e+00 : f32
    %71 = vector.broadcast %cst_40 : f32 to vector<194x128xf32>
    %72 = arith.maximumf %70, %71 : vector<194x128xf32>
    %c0_41 = arith.constant 0 : index
    %c0_42 = arith.constant 0 : index
    %73 = vector.load %arg10[%c0_41, %c0_42] : memref<8x194xbf16, #tpu.memory_space<vmem>>, vector<8x194xbf16>
    %74 = arith.truncf %72 : vector<194x128xf32> to vector<194x128xbf16>
    %cst_43 = arith.constant dense<0.000000e+00> : vector<8x128xf32>
    %75 = tpu.matmul %73, %74, %cst_43 {dimension_numbers = #tpu.dot_dimension_numbers<[1], [0], [0], [1], [0, 0, 1, 1], [], []>} : vector<8x194xbf16>, vector<194x128xbf16>, vector<8x128xf32> -> vector<8x128xf32>
    %76 = arith.truncf %22 : vector<8x256xf32> to vector<8x256xbf16>
    %c0_44 = arith.constant 0 : index
    %c0_45 = arith.constant 0 : index
    %77 = vector.load %arg11[%c0_44, %c0_45] : memref<256x128xbf16, #tpu.memory_space<vmem>>, vector<256x128xbf16>
    %cst_46 = arith.constant dense<0.000000e+00> : vector<8x128xf32>
    %78 = tpu.matmul %76, %77, %cst_46 {dimension_numbers = #tpu.dot_dimension_numbers<[1], [0], [0], [1], [0, 0, 1, 1], [], []>} : vector<8x256xbf16>, vector<256x128xbf16>, vector<8x128xf32> -> vector<8x128xf32>
    %79 = arith.truncf %75 : vector<8x128xf32> to vector<8x128xbf16>
    %c0_47 = arith.constant 0 : index
    %c0_48 = arith.constant 0 : index
    %80 = vector.load %arg12[%c0_47, %c0_48] : memref<128x128xbf16, #tpu.memory_space<vmem>>, vector<128x128xbf16>
    %cst_49 = arith.constant dense<0.000000e+00> : vector<8x128xf32>
    %81 = tpu.matmul %79, %80, %cst_49 {dimension_numbers = #tpu.dot_dimension_numbers<[1], [0], [0], [1], [0, 0, 1, 1], [], []>} : vector<8x128xbf16>, vector<128x128xbf16>, vector<8x128xf32> -> vector<8x128xf32>
    %82 = arith.addf %78, %81 : vector<8x128xf32>
    %c0_50 = arith.constant 0 : index
    %c0_51 = arith.constant 0 : index
    %83 = vector.load %arg13[%c0_50, %c0_51] : memref<1x128xf32, #tpu.memory_space<vmem>>, vector<1x128xf32>
    %84 = vector.broadcast %83 : vector<1x128xf32> to vector<8x128xf32>
    %85 = arith.addf %82, %84 : vector<8x128xf32>
    %cst_52 = arith.constant dense<0xFF800000> : vector<8xf32>
    %86 = vector.multi_reduction <maximumf>, %85, %cst_52 [1] : vector<8x128xf32> to vector<8xf32>
    %87 = vector.shape_cast %86 : vector<8xf32> to vector<8x1xf32>
    %88 = vector.broadcast %87 : vector<8x1xf32> to vector<8x128xf32>
    %89 = arith.subf %85, %88 : vector<8x128xf32>
    %90 = math.exp %89 : vector<8x128xf32>
    %cst_53 = arith.constant dense<0.000000e+00> : vector<8xf32>
    %91 = vector.multi_reduction <add>, %90, %cst_53 [1] : vector<8x128xf32> to vector<8xf32>
    %92 = vector.shape_cast %91 : vector<8xf32> to vector<8x1xf32>
    %93 = math.log %92 : vector<8x1xf32>
    %94 = vector.broadcast %93 : vector<8x1xf32> to vector<8x128xf32>
    %95 = arith.subf %89, %94 : vector<8x128xf32>
    %c0_54 = arith.constant 0 : index
    %c0_55 = arith.constant 0 : index
    %96 = vector.load %arg14[%c0_54, %c0_55] : memref<8x128xf32, #tpu.memory_space<vmem>>, vector<8x128xf32>
    tpu.vector_store %arg14[%c0_54, %c0_55], %95 {strides = array<i32>} : memref<8x128xf32, #tpu.memory_space<vmem>>, vector<8x128xf32>,
    return
  }
}

</mosaic_0001>

<bundles_post_ra>
// kernel: tpu_custom_call.1
= control target key start
LH: loop header
LB: loop body
LE: loop exit
PB: predicated region body
PF: predicated region fallthrough
CT: control target
= control target key end

     0   :  { %19 = vsyncpa [#allocation3], 0  ;;  %s6769_s0 = inlined_call_operand.hbm [shape: bf16[8,32], index: 0, kind: input, shape index: {}]   ;;  %s6770_s1 = inlined_call_operand.vmem [shape: bf16[200,8], index: 1, kind: input, shape index: {}]   ;;  %s6771_s2 = inlined_call_operand.hbm [shape: bf16[32,768], index: 2, kind: input, shape index: {}]   ;;  %s6772_s3 = inlined_call_operand.hbm [shape: f32[1,768], index: 3, kind: input, shape index: {}]   ;;  %s6773_s4 = inlined_call_operand.hbm [shape: bf16[8,128], index: 4, kind: input, shape index: {}]   ;;  %s6774_s5 = inlined_call_operand.hbm [shape: f32[1,128], index: 5, kind: input, shape index: {}]   ;;  %s6775_s6 = inlined_call_operand.hbm [shape: bf16[640,256], index: 6, kind: input, shape index: {}]   ;;  %s6776_s7 = inlined_call_operand.hbm [shape: f32[1,256], index: 7, kind: input, shape index: {}]   ;;  %s6777_s8 = inlined_call_operand.hbm [shape: bf16[768,128], index: 8, kind: input, shape index: {}]   ;;  %s6778_s9 = inlined_call_operand.hbm [shape: f32[1,128], index: 9, kind: input, shape index: {}]   ;;  %s6779_s10 = inlined_call_operand.hbm [shape: bf16[8,194], index: 10, kind: input, shape index: {}]   ;;  %s6780_s11 = inlined_call_operand.vmem [shape: bf16[256,128], index: 11, kind: input, shape index: {}]   ;;  %s6781_s12 = inlined_call_operand.hbm [shape: bf16[128,128], index: 12, kind: input, shape index: {}]   ;;  %s6782_s13 = inlined_call_operand.vmem [shape: f32[1,128], index: 13, kind: input, shape index: {}]   ;;  %s6783_s14 = inlined_call_operand.hbm [shape: f32[8,128], index: 14, kind: output, shape index: {}]  }
   0x1   :  { %20 = vsyncpa [#allocation6], 0 }
   0x2   :  { %21 = vsyncpa [#allocation9], 0 }
   0x3   :  { %22 = vsyncpa [#allocation12], 0 }
   0x4   :  { %23 = vsyncpa [#allocation15], 0 }
   0x5   :  { %24 = vsyncpa [#allocation18], 0 }
   0x6   :  { %25 = vsyncpa [#allocation4], 0  ;;  %s5330_s29 = smov [#allocation5]  }
   0x7   :  { %s43_s30 = sshll.u32 %s5330_s29, 4  ;;  %s44_s30 = int_to_ptr.vmem [resolvable:$true] %s43_s30 }
   0x8   :  { %s5084_s15 = scalar_lea.vmem %s44_s30, 1536  ;;  %p5089_p1 = scmp.lt.s32.totalorder %s44_s30, %s44_s30 }
   0x9   :  { %p5085_p0 = scmp.ne.s32.totalorder %s44_s30, %s5084_s15  ;;  %p5090_p2 = scmp.lt.s32.totalorder %s5084_s15, %s5084_s15 }
   0xb   :  { %p5091_p3 = por %p5090_p2, %p5089_p1 }
   0xd   :  { %p5092_p4 = pnand %p5091_p3, %p5085_p0 }
   0xf   :  { %5095 = shalt.err (!%p5092_p4)
}
  0x10   :  { %s5331_s16 = smov 384   ;;  %s5332_s17 = smov 24  }
  0x11   :  { %49 = dma.hbm_to_vmem [thread:$0]  %s6771_s2, 1536, %s44_s30, [#allocation6], %s5331_s16, %s5331_s16, %s5332_s17  }
  0x12   :  { %s5333_s20 = smov [#allocation8]   ;;  %s5334_s22 = smov [#allocation11]  }
  0x13   :  { %s66_s21 = sshll.u32 %s5333_s20, 4  ;;  %s85_s23 = sshll.u32 %s5334_s22, 4  ;;  %s67_s21 = int_to_ptr.vmem [resolvable:$true] %s66_s21  ;;  %s86_s23 = int_to_ptr.vmem [resolvable:$true] %s85_s23 }
  0x14   :  { %s5104_s24 = scalar_lea.vmem %s67_s21, 64  ;;  %p5109_p6 = scmp.lt.s32.totalorder %s67_s21, %s67_s21 }
  0x15   :  { %p5105_p5 = scmp.ne.s32.totalorder %s67_s21, %s5104_s24  ;;  %p5110_p7 = scmp.lt.s32.totalorder %s5104_s24, %s5104_s24 }
  0x17   :  { %p5111_p8 = por %p5110_p7, %p5109_p6 }
  0x19   :  { %p5112_p9 = pnand %p5111_p8, %p5105_p5 }
  0x1b   :  { %5115 = shalt.err (!%p5112_p9)
}
  0x1c   :  { %69 = dma.hbm_to_vmem [thread:$0]  %s6773_s4, 64, %s67_s21, [#allocation9]  }
  0x1d   :  { %s5124_s27 = scalar_lea.vmem %s86_s23, 10240  ;;  %p5129_p11 = scmp.lt.s32.totalorder %s86_s23, %s86_s23 }
  0x1e   :  { %p5125_p10 = scmp.ne.s32.totalorder %s86_s23, %s5124_s27  ;;  %p5130_p12 = scmp.lt.s32.totalorder %s5124_s27, %s5124_s27 }
  0x20   :  { %p5131_p13 = por %p5130_p12, %p5129_p11 }
  0x22   :  { %p5132_p0 = pnand %p5131_p13, %p5125_p10 }
  0x24   :  { %5135 = shalt.err (!%p5132_p0)
}
  0x25   :  { %s5335_s2 = smov 128   ;;  %s5336_s28 = smov 8  }
  0x26   :  { %91 = dma.hbm_to_vmem [thread:$0]  %s6775_s6, 10240, %s86_s23, [#allocation12], %s5335_s2, %s5335_s2, %s5336_s28  }
  0x27   :  { %s5337_s15 = smov [#allocation14]  }
  0x28   :  { %s107_s16 = sshll.u32 %s5337_s15, 4  ;;  %s108_s16 = int_to_ptr.vmem [resolvable:$true] %s107_s16 }
  0x29   :  { %s5144_s17 = scalar_lea.vmem %s108_s16, 6144  ;;  %p5149_p2 = scmp.lt.s32.totalorder %s108_s16, %s108_s16 }
  0x2a   :  { %p5145_p1 = scmp.ne.s32.totalorder %s108_s16, %s5144_s17  ;;  %p5150_p3 = scmp.lt.s32.totalorder %s5144_s17, %s5144_s17 }
  0x2c   :  { %p5151_p4 = por %p5150_p3, %p5149_p2 }
  0x2e   :  { %p5152_p5 = pnand %p5151_p4, %p5145_p1 }
  0x30   :  { %5155 = shalt.err (!%p5152_p5)
}
  0x31   :  { %s5338_s4 = smov 64   ;;  %s5339_s18 = smov 4  }
  0x32   :  { %113 = dma.hbm_to_vmem [thread:$0]  %s6777_s8, 6144, %s108_s16, [#allocation15], %s5338_s4, %s5338_s4, %s5339_s18  }
  0x33   :  { %s5340_s6 = smov [#allocation17]   ;;  %s5341_s22 = smov [#allocation2]  }
  0x34   :  { %s130_s21 = sshll.u32 %s5340_s6, 4  ;;  %s32_s23 = sshll.u32 %s5341_s22, 4  ;;  %s131_s21 = int_to_ptr.vmem [resolvable:$true] %s130_s21  ;;  %s33_s23 = int_to_ptr.vmem [resolvable:$true] %s32_s23 }
  0x35   :  { %s5164_s24 = scalar_lea.vmem %s131_s21, 128  ;;  %p5169_p7 = scmp.lt.s32.totalorder %s131_s21, %s131_s21 }
  0x36   :  { %p5165_p6 = scmp.ne.s32.totalorder %s131_s21, %s5164_s24  ;;  %p5170_p8 = scmp.lt.s32.totalorder %s5164_s24, %s5164_s24 }
  0x38   :  { %p5171_p9 = por %p5170_p8, %p5169_p7 }
  0x3a   :  { %p5172_p10 = pnand %p5171_p9, %p5165_p6 }
  0x3c   :  { %5175 = shalt.err (!%p5172_p10)
}
  0x3d   :  { %133 = dma.hbm_to_vmem [thread:$0]  %s6779_s10, 128, %s131_s21, [#allocation18]  }
  0x3e   :  { %s5184_s27 = scalar_lea.vmem %s33_s23, 64  ;;  %p5189_p12 = scmp.lt.s32.totalorder %s33_s23, %s33_s23 }
  0x3f   :  { %p5185_p11 = scmp.ne.s32.totalorder %s33_s23, %s5184_s27  ;;  %p5190_p13 = scmp.lt.s32.totalorder %s5184_s27, %s5184_s27 }
  0x41   :  { %p5191_p0 = por %p5190_p13, %p5189_p12 }
  0x43   :  { %p5192_p1 = pnand %p5191_p0, %p5185_p11 }
  0x45   :  { %5195 = shalt.err (!%p5192_p1)
}
  0x46   :  { %35 = dma.hbm_to_vmem [thread:$0]  %s6769_s0, 64, %s33_s23, [#allocation3]  }
  0x47   :  { %s5342_s28 = smov [#allocation7]   ;;  %s5343_s30 = smov [#allocation10]  }
  0x48   :  { %s56_s29 = sshll.u32 %s5342_s28, 4  ;;  %s76_s15 = sshll.u32 %s5343_s30, 4  ;;  %s57_s29 = int_to_ptr.vmem [resolvable:$true] %s56_s29  ;;  %s77_s15 = int_to_ptr.vmem [resolvable:$true] %s76_s15 }
  0x49   :  { %s5204_s16 = scalar_lea.vmem %s57_s29, 96  ;;  %p5209_p3 = scmp.lt.s32.totalorder %s57_s29, %s57_s29 }
  0x4a   :  { %p5205_p2 = scmp.ne.s32.totalorder %s57_s29, %s5204_s16  ;;  %p5210_p4 = scmp.lt.s32.totalorder %s5204_s16, %s5204_s16 }
  0x4c   :  { %p5211_p5 = por %p5210_p4, %p5209_p3 }
  0x4e   :  { %p5212_p6 = pnand %p5211_p5, %p5205_p2 }
  0x50   :  { %5215 = shalt.err (!%p5212_p6)
}
  0x51   :  { %59 = dma.hbm_to_vmem [thread:$0]  %s6772_s3, 96, %s57_s29, [#allocation6]  }
  0x52   :  { %s5224_s19 = scalar_lea.vmem %s77_s15, 16  ;;  %s5228_s0 = scalar_lea.vmem %s77_s15, 32 }
  0x53   :  { %p5225_p7 = scmp.ne.s32.totalorder %s77_s15, %s5224_s19  ;;  %p5229_p8 = scmp.lt.s32.totalorder %s77_s15, %s77_s15 }
  0x54   :  { %p5230_p9 = scmp.lt.s32.totalorder %s5228_s0, %s5224_s19 }
  0x56   :  { %p5231_p10 = por %p5230_p9, %p5229_p8 }
  0x58   :  { %p5232_p11 = pnand %p5231_p10, %p5225_p7 }
  0x5a   :  { %5235 = shalt.err (!%p5232_p11)
}
  0x5b   :  { %79 = dma.hbm_to_vmem [thread:$0]  %s6774_s5, 16, %s77_s15, [#allocation9]  }
  0x5c   :  { %s5344_s21 = smov [#allocation13]   ;;  %s5345_s23 = smov [#allocation16]  }
  0x5d   :  { %s98_s22 = sshll.u32 %s5344_s21, 4  ;;  %s120_s24 = sshll.u32 %s5345_s23, 4  ;;  %s99_s22 = int_to_ptr.vmem [resolvable:$true] %s98_s22  ;;  %s121_s24 = int_to_ptr.vmem [resolvable:$true] %s120_s24 }
  0x5e   :  { %s5244_s25 = scalar_lea.vmem %s99_s22, 32  ;;  %p5249_p13 = scmp.lt.s32.totalorder %s99_s22, %s99_s22 }
  0x5f   :  { %p5245_p12 = scmp.ne.s32.totalorder %s99_s22, %s5244_s25  ;;  %p5250_p0 = scmp.lt.s32.totalorder %s5244_s25, %s5244_s25 }
  0x61   :  { %p5251_p1 = por %p5250_p0, %p5249_p13 }
  0x63   :  { %p5252_p2 = pnand %p5251_p1, %p5245_p12 }
  0x65   :  { %5255 = shalt.err (!%p5252_p2)
}
  0x66   :  { %101 = dma.hbm_to_vmem [thread:$0]  %s6776_s7, 32, %s99_s22, [#allocation12]  }
  0x67   :  { %s5264_s27 = scalar_lea.vmem %s121_s24, 16  ;;  %s5268_s5 = scalar_lea.vmem %s121_s24, 32 }
  0x68   :  { %p5265_p3 = scmp.ne.s32.totalorder %s121_s24, %s5264_s27  ;;  %p5269_p4 = scmp.lt.s32.totalorder %s121_s24, %s121_s24 }
  0x69   :  { %p5270_p5 = scmp.lt.s32.totalorder %s5268_s5, %s5264_s27 }
  0x6b   :  { %p5271_p6 = por %p5270_p5, %p5269_p4 }
  0x6d   :  { %p5272_p7 = pnand %p5271_p6, %p5265_p3 }
  0x6f   :  { %5275 = shalt.err (!%p5272_p7)
}
  0x70   :  { %123 = dma.hbm_to_vmem [thread:$0]  %s6778_s9, 16, %s121_s24, [#allocation15]  }
  0x71   :  { %s5346_s28 = smov [#allocation19]  }
  0x72   :  { %s141_s29 = sshll.u32 %s5346_s28, 4  ;;  %s142_s29 = int_to_ptr.vmem [resolvable:$true] %s141_s29 }
  0x73   :  { %s5284_s30 = scalar_lea.vmem %s142_s29, 1024  ;;  %p5289_p9 = scmp.lt.s32.totalorder %s142_s29, %s142_s29 }
  0x74   :  { %p5285_p8 = scmp.ne.s32.totalorder %s142_s29, %s5284_s30  ;;  %p5290_p10 = scmp.lt.s32.totalorder %s5284_s30, %s5284_s30 }
  0x76   :  { %p5291_p11 = por %p5290_p10, %p5289_p9 }
  0x78   :  { %p5292_p12 = pnand %p5291_p11, %p5285_p8 }
  0x7a   :  { %5295 = shalt.err (!%p5292_p12)
}
  0x7b   :  { %147 = dma.hbm_to_vmem [thread:$0]  %s6781_s12, 1024, %s142_s29, [#allocation18], %s5338_s4, %s5338_s4, %s5339_s18  }
  0x7c   :  { %5316 = dma.done.wait [#allocation3], 64  }
  0x7d   :  { %5317 = vsyncadd [#allocation3], 4294967232 }
  0x7e   :  { %5318 = dma.done.wait [#allocation6], 1632  }
  0x7f   :  { %5319 = vsyncadd [#allocation6], 4294965664 }
  0x80   :  { %5320 = dma.done.wait [#allocation9], 80  }
  0x81   :  { %5321 = vsyncadd [#allocation9], 4294967216 }
  0x82   :  { %5322 = dma.done.wait [#allocation12], 10272  }
  0x83   :  { %5323 = vsyncadd [#allocation12], 4294957024 }
  0x84   :  { %5324 = dma.done.wait [#allocation15], 6160  }
  0x85   :  { %5325 = vsyncadd [#allocation15], 4294961136 }
  0x86   :  { %5326 = dma.done.wait [#allocation18], 1152  }
  0x87   :  { %5327 = vsyncadd [#allocation18], 4294966144  ;;  %v6789_v0 = vmov 0   ;;  %v4823_v1 = vld [vmem:[#allocation5 + $0x34] ss:$24 sps:$4 sm:$0xff]   ;;  %vm584_vm0 = vcmask 1043456  }
  0x88   :  { %325 = vmatprep.mubr.bf16.mxu0 %v6789_v0  ;;  %366 = vmatprep.mubr.bf16.mxu1 %v6789_v0  ;;  %v4825_v2 = vld [vmem:[#allocation5 + $0x3c] ss:$24 sps:$4 sm:$0xff]   ;;  %v4827_v3 = vld [vmem:[#allocation5 + $0x30] ss:$24 sps:$4 sm:$0xff]   ;;  %v4831_v6 = vld [vmem:[#allocation5 + $0xc] ss:$24 sps:$4 sm:$0xff]  }
  0x89   :  { %305 = vmatprep.subr.bf16.mxu0 %v4823_v1  ;;  %v4828_v4 = vld [vmem:[#allocation5 + $0x38] ss:$24 sps:$4 sm:$0xff]   ;;  %346 = vmatprep.subr.bf16.mxu1 %v4825_v2  ;;  %v4829_v5 = vld [vmem:[#allocation5 + $0x4] ss:$24 sps:$4 sm:$0xff]   ;;  %v4834_v8 = vld [vmem:[#allocation5 + $0x8] ss:$24 sps:$4 sm:$0xff]   ;;  %v199_v1 = vlaneseq }
  0x8a   :  { %306 = vmatpush1.bf16.msra.mxu0 %v4827_v3  ;;  %347 = vmatpush1.bf16.msra.mxu1 %v4828_v4  ;;  %v4833_v7 = vld [vmem:[#allocation5] ss:$24 sps:$4 sm:$0xff]   ;;  %v473_v9 = vld [vmem:[#allocation8] sm:$0xf]  ;;  %v184_v11 = vld [vmem:[#allocation2] sm:$0xf] }
  0x8b   :  { %307 = vmatprep.subr.bf16.mxu0 %v4829_v5  ;;  %348 = vmatprep.subr.bf16.mxu1 %v4831_v6  ;;  %v4837_v10 = vld [vmem:[#allocation5 + $0x44] ss:$24 sps:$4 sm:$0xff]   ;;  %vm289_vm1 = vcmask 261120   ;;  %v6784_v12 = vmov 0.0   ;;  %v586_v13 = vsel %vm584_vm0, %v473_v9, 0  ;;  %vm5349_vm2 = vmmov 0  }
  0x8c   :  { %v4835_v14 = vld [vmem:[#allocation5 + $0x40] ss:$24 sps:$4 sm:$0xff]   ;;  %v4841_v15 = vld [vmem:[#allocation5 + $0x14] ss:$24 sps:$4 sm:$0xff]   ;;  %v4839_v16 = vld [vmem:[#allocation5 + $0x10] ss:$24 sps:$4 sm:$0xff]  }
  0x8d   :  { %v4838_v17 = vld [vmem:[%s6770_s1] sm:$0xff]   ;;  %vm544_vm3 = vcmask 64512   ;;  %v4842_v20 = vld [vmem:[%s6770_s1 + $0x8] sm:$0xff]   ;;  %v4859_v21 = vld [vmem:[#allocation11 + $0x64] ss:$8 sps:$4 sm:$0xff]   ;;  %v5552_v2 = vshrl.u32 %v199_v1, 7 }
  0x8e   :  { %308 = vmatpush1.bf16.msra.mxu0 %v4833_v7  ;;  %349 = vmatpush1.bf16.msra.mxu1 %v4834_v8  ;;  %v4854_v18 = vld [vmem:[#allocation11 + $0x70] ss:$8 sps:$4 sm:$0xff]   ;;  %v4856_v19 = vld [vmem:[#allocation11 + $0x74] ss:$8 sps:$4 sm:$0xff]   ;;  %v4857_v22 = vld [vmem:[#allocation11 + $0x60] ss:$8 sps:$4 sm:$0xff]  }
  0x8f   :  { %4728 = vmatprep.subr.bf16.mxu1 %v6784_v12  ;;  %387 = vmatprep.subr.bf16.mxu0 %v4837_v10  ;;  %v4862_v23 = vld [vmem:[#allocation11 + $0x54] ss:$8 sps:$4 sm:$0xff]   ;;  %v4860_v24 = vld [vmem:[#allocation11 + $0x50] ss:$8 sps:$4 sm:$0xff]   ;;  %v4865_v25 = vld [vmem:[#allocation11 + $0x44] ss:$8 sps:$4 sm:$0xff]  }
  0x90   :  { %v4843_v26 = vld [vmem:[%s6770_s1 + $0x10] sm:$0xff]   ;;  %v4844_v28 = vld [vmem:[%s6770_s1 + $0x18] sm:$0xff]   ;;  %v4845_v29 = vld [vmem:[%s6770_s1 + $0x20] sm:$0xff]   ;;  %v6787_v3 = vsub.s32 0, %v5552_v2  ;;  %v6786_v5 = vsub.s32 1, %v5552_v2  ;;  %vm1422_vm6 = vcmask 1046528  }
  0x91   :  { %4210 = vmatmul.mubr.msk.bf16.vlgmr.msra.gmra.mxu0 %vm289_vm1, %v184_v11  ;;  %4211 = vmatmul.mubr.msk.bf16.vlgmr.msra.gmra.mxu1 %vm289_vm1, %v184_v11  ;;  %v4863_v27 = vld [vmem:[#allocation11 + $0x40] ss:$8 sps:$4 sm:$0xff]   ;;  %v4846_v30 = vld [vmem:[%s6770_s1 + $0x28] sm:$0xff]   ;;  %v4849_v35 = vld [vmem:[%s6770_s1 + $0x40] sm:$0xff]   ;;  %vm794_vm4 = vsmask.f32 7424 }
  0x92   :  { %4729 = vmatpush3.bf16.msra.mxu1 %v586_v13  ;;  %4730 = vmatprep.mubr.msk.bf16.mxu1 %vm5349_vm2, %v6784_v12  ;;  %v4847_v31 = vld [vmem:[%s6770_s1 + $0x30] sm:$0xff]   ;;  %v4848_v32 = vld [vmem:[%s6770_s1 + $0x38] sm:$0xff]   ;;  %v4868_v33 = vld [vmem:[#allocation11 + $0xf4] ss:$8 sps:$4 sm:$0xff]   ;;  %vm1768_vm5 = vsmask.f32 6400 }
  0x93   :  { %388 = vmatpush1.bf16.msra.mxu0 %v4835_v14  ;;  %407 = vmatprep.mubr.bf16.mxu0 %v6789_v0  ;;  %v4866_v34 = vld [vmem:[#allocation11 + $0xf0] ss:$8 sps:$4 sm:$0xff]   ;;  %v4871_v36 = vld [vmem:[#allocation11 + $0x34] ss:$8 sps:$4 sm:$0xff]   ;;  %v4874_v38 = vld [vmem:[#allocation11 + $0xe4] ss:$8 sps:$4 sm:$0xff]  }
  0x94   :  { %389 = vmatprep.subr.bf16.mxu0 %v4841_v15  ;;  %1232 = vmatprep.subr.bf16.mxu1 %v4856_v19  ;;  %v4869_v37 = vld [vmem:[#allocation11 + $0x30] ss:$8 sps:$4 sm:$0xff]   ;;  %v4872_v39 = vld [vmem:[#allocation11 + $0xe0] ss:$8 sps:$4 sm:$0xff]   ;;  %v4877_v40 = vld [vmem:[#allocation11 + $0x24] ss:$8 sps:$4 sm:$0xff]  }
  0x95   :  { %v4875_v41 = vld [vmem:[#allocation11 + $0x20] ss:$8 sps:$4 sm:$0xff]   ;;  %v4880_v42 = vld [vmem:[#allocation11 + $0xd4] ss:$8 sps:$4 sm:$0xff]   ;;  %v4878_v43 = vld [vmem:[#allocation11 + $0xd0] ss:$8 sps:$4 sm:$0xff]  }
  0x96   :  { %v4850_v44 = vld [vmem:[%s6770_s1 + $0x48] sm:$0xff]   ;;  %v4886_v47 = vld [vmem:[#allocation11 + $0xc4] ss:$8 sps:$4 sm:$0xff]   ;;  %v4884_v48 = vld [vmem:[#allocation11 + $0xc0] ss:$8 sps:$4 sm:$0xff]   ;;  %v217_v14 = vsub.s32 4, %v5552_v2 }
  0x97   :  { %390 = vmatpush1.bf16.msra.mxu0 %v4839_v16  ;;  %v4883_v45 = vld [vmem:[#allocation11 + $0x14] ss:$8 sps:$4 sm:$0xff]   ;;  %v4881_v46 = vld [vmem:[#allocation11 + $0x10] ss:$8 sps:$4 sm:$0xff]   ;;  %v4889_v49 = vld [vmem:[#allocation11 + $0x4] ss:$8 sps:$4 sm:$0xff]  }
  0x98   :  { %991 = vmatprep.subr.bf16.mxu0 %v4868_v33  ;;  %v4887_v50 = vld [vmem:[#allocation11] ss:$8 sps:$4 sm:$0xff]   ;;  %v4892_v51 = vld [vmem:[#allocation11 + $0xb4] ss:$8 sps:$4 sm:$0xff]   ;;  %v4890_v52 = vld [vmem:[#allocation11 + $0xb0] ss:$8 sps:$4 sm:$0xff]  }
  0x99   :  { %4731 = vmatmul.mubr.msk.bf16.vlgmr.msra.gmra.mxu1 %vm544_vm3, %v4838_v17  ;;  %v4851_v53 = vld [vmem:[%s6770_s1 + $0x50] sm:$0xff]   ;;  %v4898_v56 = vld [vmem:[#allocation11 + $0x94] ss:$8 sps:$4 sm:$0xff]   ;;  %v4896_v57 = vld [vmem:[#allocation11 + $0x90] ss:$8 sps:$4 sm:$0xff]   ;;  %v221_v19 = vsub.s32 5, %v5552_v2 }
  0x9a   :  { %4734 = vmatprep.mubr.msk.bf16.mxu1 %vm5349_vm2, %v6784_v12  ;;  %4212 = vmatmul.mubr.msk.bf16.vlgmr.msra.gmra.mxu0 %vm289_vm1, %v184_v11  ;;  %v4895_v54 = vld [vmem:[#allocation11 + $0xa4] ss:$8 sps:$4 sm:$0xff]   ;;  %v4893_v55 = vld [vmem:[#allocation11 + $0xa0] ss:$8 sps:$4 sm:$0xff]   ;;  %v4853_v61 = vld [vmem:[%s6770_s1 + $0x60] ss:$0 sps:$4 sm:$0xff]  }
  0x9b   :  { %1023 = vmatprep.mubr.bf16.mxu0 %v6789_v0  ;;  %1233 = vmatpush1.bf16.msra.mxu1 %v4854_v18  ;;  %v4852_v58 = vld [vmem:[%s6770_s1 + $0x58] sm:$0xff]   ;;  %v4904_v62 = vld [vmem:[#allocation11 + $0x174] ss:$8 sps:$4 sm:$0xff]   ;;  %vm2140_vm7 = vcmask 1045504   ;;  %vm3836_vm8 = vcmask 539648   ;;  %vm3840_vm9 = vcmask 1040384  }
  0x9c   :  { %1234 = vmatprep.subr.bf16.mxu1 %v4859_v21  ;;  %992 = vmatpush1.bf16.msra.mxu0 %v4866_v34  ;;  %v4901_v59 = vld [vmem:[#allocation11 + $0x84] ss:$8 sps:$4 sm:$0xff]   ;;  %v4899_v60 = vld [vmem:[#allocation11 + $0x80] ss:$8 sps:$4 sm:$0xff]   ;;  %v4907_v63 = vld [vmem:[#allocation11 + $0x1f4] ss:$8 sps:$4 sm:$0xff]  }
  0x9d   :  { %993 = vmatprep.subr.bf16.mxu0 %v4874_v38  ;;  %v197_v4 = vld [vmem:[#allocation7] sm:$0x3f] }
  0x9e   :  { %v202_v6 = vrot.slane %v197_v4, %v6787_v3  ;;  %v206_v7 = vrot.slane %v197_v4, %v6786_v5 }
  0x9f   :  { %1235 = vmatpush1.bf16.msra.mxu1 %v4857_v22 }
  0xa0   :  { %1236 = vmatprep.subr.bf16.mxu1 %v4862_v23  ;;  %994 = vmatpush1.bf16.msra.mxu0 %v4872_v39  ;;  %v218_v23 = vrot.slane %v197_v4, %v217_v14 }
  0xa1   :  { %4735 = vmatmul.mubr.msk.bf16.gmra.mxu1 %vm544_vm3, %v4842_v20  ;;  %995 = vmatprep.subr.bf16.mxu0 %v4880_v42 }
  0xa2   :  { %4738 = vmatprep.mubr.msk.bf16.mxu1 %vm5349_vm2, %v6784_v12 }
  0xa3   :  { %1237 = vmatpush1.bf16.msra.mxu1 %v4860_v24  ;;  %v209_v24 = vsub.s32 2, %v5552_v2 }
  0xa4   :  { %1238 = vmatprep.subr.bf16.mxu1 %v4865_v25  ;;  %996 = vmatpush1.bf16.msra.mxu0 %v4878_v43  ;;  %v5563_v25 = vld [vmem:[#allocation10] ss:$0 sm:$0xff] }
  0xa5   :  { %997 = vmatprep.subr.bf16.mxu0 %v4886_v47  ;;  %v210_v34 = vrot.slane %v197_v4, %v209_v24  ;;  %v4917_v24 = vld [vmem:[#allocation11 + $0x1c0] ss:$8 sps:$4 sm:$0xff]  }
  0xa7   :  { %1239 = vmatpush1.bf16.msra.mxu1 %v4863_v27  ;;  %v222_v27 = vrot.slane %v197_v4, %v221_v19 }
  0xa8   :  { %1240 = vmatprep.subr.bf16.mxu1 %v4871_v36  ;;  %998 = vmatpush1.bf16.msra.mxu0 %v4884_v48  ;;  %v4905_v48 = vld [vmem:[#allocation11 + $0x1f0] ss:$8 sps:$4 sm:$0xff]  }
  0xa9   :  { %4739 = vmatmul.mubr.msk.bf16.gmra.mxu1 %vm544_vm3, %v4843_v26  ;;  %999 = vmatprep.subr.bf16.mxu0 %v4892_v51 }
  0xaa   :  { %4742 = vmatprep.mubr.msk.bf16.mxu1 %vm5349_vm2, %v6784_v12 }
  0xab   :  { %1241 = vmatpush1.bf16.msra.mxu1 %v4869_v37 }
  0xac   :  { %1242 = vmatprep.subr.bf16.mxu1 %v4877_v40  ;;  %1000 = vmatpush1.bf16.msra.mxu0 %v4890_v52 }
  0xad   :  { %1001 = vmatprep.subr.bf16.mxu0 %v4895_v54 }
  0xaf   :  { %1243 = vmatpush1.bf16.msra.mxu1 %v4875_v41 }
  0xb0   :  { %1244 = vmatprep.subr.bf16.mxu1 %v4883_v45  ;;  %1002 = vmatpush1.bf16.msra.mxu0 %v4893_v55 }
  0xb1   :  { %4743 = vmatmul.mubr.msk.bf16.gmra.mxu1 %vm544_vm3, %v4844_v28  ;;  %1003 = vmatprep.subr.bf16.mxu0 %v4898_v56 }
  0xb2   :  { %4746 = vmatprep.mubr.msk.bf16.mxu1 %vm5349_vm2, %v6784_v12 }
  0xb3   :  { %1245 = vmatpush1.bf16.msra.mxu1 %v4881_v46 }
  0xb4   :  { %1246 = vmatprep.subr.bf16.mxu1 %v4889_v49  ;;  %1004 = vmatpush1.bf16.msra.mxu0 %v4896_v57 }
  0xb5   :  { %1005 = vmatprep.subr.bf16.mxu0 %v4901_v59 }
  0xb7   :  { %1247 = vmatpush1.bf16.msra.mxu1 %v4887_v50  ;;  %v4913_v50 = vld [vmem:[#allocation11 + $0x1e4] ss:$8 sps:$4 sm:$0xff]  }
  0xb8   :  { %1006 = vmatpush1.bf16.msra.mxu0 %v4899_v60  ;;  %1913 = vmatprep.subr.bf16.mxu1 %v4907_v63  ;;  %v4911_v60 = vld [vmem:[#allocation11 + $0x1e0] ss:$8 sps:$4 sm:$0xff]   ;;  %v4916_v63 = vld [vmem:[#allocation11 + $0x1d4] ss:$8 sps:$4 sm:$0xff]  }
  0xb9   :  { %4747 = vmatmul.mubr.msk.bf16.gmra.mxu1 %vm544_vm3, %v4845_v29  ;;  %1541 = vmatprep.subr.bf16.mxu0 %v4904_v62  ;;  %v213_v29 = vsub.s32 3, %v5552_v2 }
  0xba   :  { %4750 = vmatprep.mubr.msk.bf16.mxu1 %vm5349_vm2, %v6784_v12 }
  0xbb   :  { %v214_v40 = vrot.slane %v197_v4, %v213_v29 }
  0xc1   :  { %4751 = vmatmul.mubr.msk.bf16.gmra.mxu1 %vm544_vm3, %v4846_v30 }
  0xc2   :  { %4754 = vmatprep.mubr.msk.bf16.mxu1 %vm5349_vm2, %v6784_v12 }
  0xc9   :  { %4755 = vmatmul.mubr.msk.bf16.gmra.mxu1 %vm544_vm3, %v4847_v31 }
  0xca   :  { %4758 = vmatprep.mubr.msk.bf16.mxu1 %vm5349_vm2, %v6784_v12 }
  0xd1   :  { %4759 = vmatmul.mubr.msk.bf16.gmra.mxu1 %vm544_vm3, %v4848_v32 }
  0xd2   :  { %4762 = vmatprep.mubr.msk.bf16.mxu1 %vm5349_vm2, %v6784_v12 }
  0xd9   :  { %4763 = vmatmul.mubr.msk.bf16.gmra.mxu1 %vm544_vm3, %v4849_v35 }
  0xda   :  { %4766 = vmatprep.mubr.msk.bf16.mxu1 %vm5349_vm2, %v6784_v12 }
  0xe1   :  { %4767 = vmatmul.mubr.msk.bf16.gmra.mxu1 %vm544_vm3, %v4850_v44 }
  0xe2   :  { %4770 = vmatprep.mubr.msk.bf16.mxu1 %vm5349_vm2, %v6784_v12 }
  0xe9   :  { %4771 = vmatmul.mubr.msk.bf16.gmra.mxu1 %vm544_vm3, %v4851_v53 }
  0xea   :  { %4774 = vmatprep.mubr.msk.bf16.mxu1 %vm5349_vm2, %v6784_v12 }
  0xf1   :  { %4775 = vmatmul.mubr.msk.bf16.gmra.mxu1 %vm544_vm3, %v4852_v58 }
  0xf2   :  { %4778 = vmatprep.mubr.msk.bf16.mxu1 %vm5349_vm2, %v6784_v12  ;;  %v4975_v12 = vld [vmem:[#allocation14 + $0xb8] sm:$0xff]  }
  0xf9   :  { %4779 = vmatmul.mubr.msk.bf16.gmra.mxu1 %vm544_vm3, %v4853_v61 }
  0xfa   :  { %1264 = vmatprep.mubr.bf16.mxu1 %v6789_v0 }
 0x151   :  { %v327_v8 = vpop.f32.mrf.mxu0  ;;  %v368_v9 = vpop.f32.mrf.mxu1 }
 0x152   :  { %v328_v10 = vadd.f32 %v327_v8, %v202_v6  ;;  %v369_v46 = vadd.f32 %v368_v9, %v210_v34  ;;  %v4902_v34 = vld [vmem:[#allocation11 + $0x170] ss:$8 sps:$4 sm:$0xff]  }
 0x153   :  { %v329_v11 = vpop.f32.mrf.mxu0  ;;  %v370_v13 = vpop.f32.mrf.mxu1 }
 0x154   :  { %v4213_v15 = vmul.f32 -1.442695, %v328_v10  ;;  %v330_v16 = vadd.f32 %v329_v11, %v206_v7  ;;  %v371_v52 = vadd.f32 %v370_v13, %v214_v40  ;;  %v4914_v11 = vld [vmem:[#allocation11 + $0x1d0] ss:$8 sps:$4 sm:$0xff]  }
 0x155   :  { %v372_v17 = vpop.f32.mrf.mxu1  ;;  %v331_v18 = vpop.f32.mrf.mxu0 }
 0x156   :  { %5048 = vpow2.f32 %v4213_v15  ;;  %v4214_v20 = vmul.f32 -1.442695, %v330_v16  ;;  %v4919_v15 = vld [vmem:[#allocation11 + $0x1c4] ss:$8 sps:$4 sm:$0xff]  }
 0x157   :  { %v373_v21 = vpop.f32.mrf.mxu1  ;;  %v332_v22 = vpop.f32.mrf.mxu0 }
 0x158   :  { %5050 = vpow2.f32 %v4214_v20 }
 0x159   :  { %v622_v26 = vpop.f32.mrf.mxu1 }
 0x15a   :  { %v409_v28 = vpop.f32.mrf.mxu0  ;;  %v623_v32 = vadd.f32 %v5563_v25, %v622_v26 }
 0x15b   :  { %v4732_v30 = vpop.f32.mrf.mxu1  ;;  %v410_v31 = vadd.f32 %v409_v28, %v218_v23 }
 0x15c   :  { %v411_v33 = vpop.f32.mrf.mxu0  ;;  %v724_v43 = vmax.f32 %v623_v32, 0.0 }
 0x15d   :  { %v625_v35 = vpop.f32.mrf.mxu1  ;;  %v4215_v36 = vmul.f32 -1.442695, %v410_v31  ;;  %v412_v37 = vadd.f32 %v411_v33, %v222_v27 }
 0x15e   :  { %v626_v38 = vadd.f32 %v5563_v25, %v625_v35  ;;  %v413_v39 = vpop.f32.mrf.mxu0 }
 0x15f   :  { %v4733_v41 = vpop.f32.mrf.mxu1  ;;  %5052 = vpow2.f32 %v4215_v36  ;;  %v4216_v42 = vmul.f32 -1.442695, %v412_v37  ;;  %v4910_v37 = vld [vmem:[#allocation11 + $0x164] ss:$8 sps:$4 sm:$0xff]  }
 0x160   :  { %v725_v44 = vmax.f32 %v626_v38, 0.0  ;;  %v414_v45 = vpop.f32.mrf.mxu0  ;;  %v4925_v38 = vld [vmem:[#allocation11 + $0x1b4] ss:$8 sps:$4 sm:$0xff]  }
 0x161   :  { %v630_v47 = vpop.f32.mrf.mxu1  ;;  %5054 = vpow2.f32 %v4216_v42 }
 0x162   :  { %v5568_v49 = vpack.c.bf16 %v725_v44, %v724_v43  ;;  %v631_v55 = vadd.f32 %v5563_v25, %v630_v47  ;;  %5056 = vtanh.f32 %v369_v46  ;;  %v4923_v47 = vld [vmem:[#allocation11 + $0x1b0] ss:$8 sps:$4 sm:$0xff]  }
 0x163   :  { %v5049_v51 = vpop.eup %5048  ;;  %v4736_v53 = vpop.f32.mrf.mxu1 }
 0x164   :  { %v422_v54 = vadd.f32 1.0, %v5049_v51  ;;  %1265 = vmatmul.mubr.bf16.vlgmr.msra.gmra.mxu1 %v5568_v49  ;;  %v796_v56 = vshrl.u32 %v5568_v49, 16  ;;  %v798_v57 = vshll.u32 %v5568_v49, 16  ;;  %v726_v7 = vmax.f32 %v631_v55, 0.0  ;;  %v4928_v51 = vld [vmem:[#allocation11 + $0x1a4] ss:$8 sps:$4 sm:$0xff]  }
 0x165   :  { %v5051_v58 = vpop.eup %5050  ;;  %v633_v59 = vpop.f32.mrf.mxu1  ;;  %1274 = vmatprep.mubr.bf16.mxu1 %v6789_v0  ;;  %1914 = vmatpush1.bf16.msra.mxu1 %v4905_v48  ;;  %v1423_v26 = vrot.slane %v5568_v49, 1  ;;  %v2141_v27 = vrot.slane %v5568_v49, 2  ;;  %v4922_v55 = vld [vmem:[#allocation11 + $0x154] ss:$8 sps:$4 sm:$0xff]  }
 0x166   :  { %5058 = vrcp.f32 %v422_v54  ;;  %v423_v61 = vadd.f32 1.0, %v5051_v58  ;;  %v634_v62 = vadd.f32 %v5563_v25, %v633_v59  ;;  %1915 = vmatprep.subr.bf16.mxu1 %v4913_v50  ;;  %v1769_v4 = vrot.slane %v796_v56, 1  ;;  %v4908_v50 = vld [vmem:[#allocation11 + $0x160] ss:$8 sps:$4 sm:$0xff]  }
 0x167   :  { %5060 = vtanh.f32 %v371_v52  ;;  %v4737_v1 = vpop.f32.mrf.mxu1  ;;  %v1770_v6 = vrot.slane %v798_v57, 2  ;;  %v800_v10 = vrot.slane %v798_v57, 1 }
 0x168   :  { %5062 = vrcp.f32 %v423_v61  ;;  %v727_v8 = vmax.f32 %v634_v62, 0.0  ;;  %v4926_v1 = vld [vmem:[#allocation11 + $0x1a0] ss:$8 sps:$4 sm:$0xff]  }
 0x169   :  { %v638_v9 = vpop.f32.mrf.mxu1  ;;  %1916 = vmatpush1.bf16.msra.mxu1 %v4911_v60  ;;  %v1771_v13 = vor.u32 %v1770_v6, %v1769_v4  ;;  %v801_v23 = vor.u32 %v800_v10, %v796_v56  ;;  %v4920_v10 = vld [vmem:[#allocation11 + $0x150] ss:$8 sps:$4 sm:$0xff]  }
 0x16a   :  { %v5576_v14 = vpack.c.bf16 %v727_v8, %v726_v7  ;;  %1917 = vmatprep.subr.bf16.mxu1 %v4916_v63  ;;  %v639_v18 = vadd.f32 %v5563_v25, %v638_v9 }
 0x16b   :  { %v4740_v16 = vpop.f32.mrf.mxu1 }
 0x16c   :  { %v5053_v17 = vpop.eup %5052  ;;  %1275 = vmatmul.mubr.bf16.gmra.mxu1 %v5576_v14  ;;  %v803_v19 = vshll.u32 %v5576_v14, 16  ;;  %v807_v20 = vshrl.u32 %v5576_v14, 16  ;;  %v1424_v21 = vrot.slane %v5576_v14, 1  ;;  %v2142_v28 = vrot.slane %v5576_v14, 2  ;;  %v4937_v14 = vld [vmem:[#allocation11 + $0x184] ss:$8 sps:$4 sm:$0xff]  }
 0x16d   :  { %v641_v22 = vpop.f32.mrf.mxu1  ;;  %1284 = vmatprep.mubr.bf16.mxu1 %v6789_v0  ;;  %1918 = vmatpush1.bf16.msra.mxu1 %v4914_v11  ;;  %v436_v35 = vadd.f32 1.0, %v5053_v17  ;;  %v728_v41 = vmax.f32 %v639_v18, 0.0 }
 0x16e   :  { %v5055_v29 = vpop.eup %5054  ;;  %v642_v30 = vadd.f32 %v5563_v25, %v641_v22  ;;  %v805_v31 = vrot.slane %v803_v19, 1  ;;  %v1773_v32 = vrot.slane %v803_v19, 2  ;;  %v1772_v33 = vrot.slane %v807_v20, 1  ;;  %1919 = vmatprep.subr.bf16.mxu1 %v4919_v15  ;;  %v4934_v15 = vld [vmem:[#allocation11 + $0x144] ss:$8 sps:$4 sm:$0xff]  }
 0x16f   :  { %v4741_v36 = vpop.f32.mrf.mxu1  ;;  %v5591_v39 = vsel %vm1422_vm6, %v1423_v26, %v1424_v21  ;;  %v5596_v40 = vsel %vm2140_vm7, %v2141_v27, %v2142_v28  ;;  %v437_v45 = vadd.f32 1.0, %v5055_v29  ;;  %v5057_v48 = vpop.eup %5056  ;;  %5064 = vrcp.f32 %v436_v35  ;;  %v4929_v26 = vld [vmem:[#allocation11 + $0x190] ss:$8 sps:$4 sm:$0xff]  }
 0x170   :  { %v729_v42 = vmax.f32 %v642_v30, 0.0  ;;  %v806_v43 = vsel %vm794_vm4, %v801_v23, %v805_v31  ;;  %v5599_v44 = vor.u32 %v1773_v32, %v1772_v33  ;;  %v809_v63 = vor.u32 %v807_v20, %v805_v31 }
 0x171   :  { %v646_v46 = vpop.f32.mrf.mxu1  ;;  %1024 = vmatmul.mubr.bf16.vlgmr.msra.gmra.mxu0 %v806_v43  ;;  %1920 = vmatpush1.bf16.msra.mxu1 %v4917_v24  ;;  %5066 = vrcp.f32 %v437_v45 }
 0x172   :  { %v5601_v49 = vpack.c.bf16 %v729_v42, %v728_v41  ;;  %1033 = vmatprep.mubr.bf16.mxu0 %v6789_v0  ;;  %1542 = vmatpush1.bf16.msra.mxu0 %v4902_v34  ;;  %v5606_v52 = vsel %vm1768_vm5, %v1771_v13, %v5599_v44  ;;  %v647_v58 = vadd.f32 %v5563_v25, %v646_v46  ;;  %v4931_v13 = vld [vmem:[#allocation11 + $0x194] ss:$8 sps:$4 sm:$0xff]  }
 0x173   :  { %v5059_v53 = vpop.eup %5058  ;;  %v4744_v54 = vpop.f32.mrf.mxu1  ;;  %1543 = vmatprep.subr.bf16.mxu0 %v4910_v37  ;;  %1921 = vmatprep.subr.bf16.mxu1 %v4925_v38  ;;  %v4935_v38 = vld [vmem:[#allocation11 + $0x180] ss:$8 sps:$4 sm:$0xff]  }
 0x174   :  { %v5061_v56 = vpop.eup %5060  ;;  %v442_v57 = vmul.f32 %v5059_v53, %v5057_v48  ;;  %1285 = vmatmul.mubr.bf16.gmra.mxu1 %v5601_v49  ;;  %v811_v59 = vshll.u32 %v5601_v49, 16  ;;  %v815_v60 = vshrl.u32 %v5601_v49, 16  ;;  %v1426_v4 = vrot.slane %v5601_v49, 1  ;;  %v4943_v48 = vld [vmem:[#allocation11 + $0x124] ss:$8 sps:$4 sm:$0xff]  }
 0x175   :  { %v5063_v61 = vpop.eup %5062  ;;  %v649_v62 = vpop.f32.mrf.mxu1  ;;  %1294 = vmatprep.mubr.bf16.mxu1 %v6789_v0  ;;  %1922 = vmatpush1.bf16.msra.mxu1 %v4923_v47  ;;  %v2144_v6 = vrot.slane %v5601_v49, 2  ;;  %v730_v20 = vmax.f32 %v647_v58, 0.0 }
 0x176   :  { %5068 = vtanh.f32 %v442_v57  ;;  %v443_v7 = vmul.f32 %v5063_v61, %v5061_v56  ;;  %v650_v8 = vadd.f32 %v5563_v25, %v649_v62  ;;  %v813_v9 = vrot.slane %v811_v59, 1  ;;  %1544 = vmatpush1.bf16.msra.mxu0 %v4908_v50  ;;  %1923 = vmatprep.subr.bf16.mxu1 %v4928_v51 }
 0x177   :  { %v4745_v11 = vpop.f32.mrf.mxu1  ;;  %1545 = vmatprep.subr.bf16.mxu0 %v4922_v55  ;;  %v1776_v16 = vrot.slane %v815_v60, 1  ;;  %v1777_v17 = vrot.slane %v811_v59, 2  ;;  %v5619_v18 = vsel %vm1422_vm6, %v1424_v21, %v1426_v4  ;;  %v5624_v19 = vsel %vm2140_vm7, %v2142_v28, %v2144_v6  ;;  %v4932_v21 = vld [vmem:[#allocation11 + $0x140] ss:$8 sps:$4 sm:$0xff]   ;;  %v4940_v28 = vld [vmem:[#allocation11 + $0x134] ss:$8 sps:$4 sm:$0xff]  }
 0x178   :  { %5070 = vtanh.f32 %v443_v7  ;;  %v731_v22 = vmax.f32 %v650_v8, 0.0  ;;  %v814_v23 = vsel %vm794_vm4, %v809_v63, %v813_v9  ;;  %v817_v37 = vor.u32 %v815_v60, %v813_v9  ;;  %v4941_v60 = vld [vmem:[#allocation11 + $0x120] ss:$8 sps:$4 sm:$0xff]  }
 0x179   :  { %v654_v24 = vpop.f32.mrf.mxu1  ;;  %1034 = vmatmul.mubr.bf16.gmra.mxu0 %v814_v23  ;;  %1924 = vmatpush1.bf16.msra.mxu1 %v4926_v1  ;;  %v1778_v27 = vor.u32 %v1777_v17, %v1776_v16  ;;  %v4946_v1 = vld [vmem:[#allocation11 + $0x114] ss:$8 sps:$4 sm:$0xff]  }
 0x17a   :  { %v5627_v29 = vpack.c.bf16 %v731_v22, %v730_v20  ;;  %1043 = vmatprep.mubr.bf16.mxu0 %v6789_v0  ;;  %1546 = vmatpush1.bf16.msra.mxu0 %v4920_v10  ;;  %v655_v32 = vadd.f32 %v5563_v25, %v654_v24  ;;  %v4944_v20 = vld [vmem:[#allocation11 + $0x110] ss:$8 sps:$4 sm:$0xff]  }
 0x17b   :  { %v4748_v30 = vpop.f32.mrf.mxu1  ;;  %1925 = vmatprep.subr.bf16.mxu1 %v4931_v13  ;;  %1547 = vmatprep.subr.bf16.mxu0 %v4934_v15  ;;  %v5632_v31 = vsel %vm1768_vm5, %v5599_v44, %v1778_v27  ;;  %v4938_v44 = vld [vmem:[#allocation11 + $0x130] ss:$8 sps:$4 sm:$0xff]  }
 0x17c   :  { %1295 = vmatmul.mubr.bf16.gmra.mxu1 %v5627_v29  ;;  %v819_v33 = vshll.u32 %v5627_v29, 16  ;;  %v823_v34 = vshrl.u32 %v5627_v29, 16  ;;  %v1428_v35 = vrot.slane %v5627_v29, 1  ;;  %v2146_v41 = vrot.slane %v5627_v29, 2  ;;  %v5065_v51 = vpop.eup %5064 }
 0x17d   :  { %v657_v36 = vpop.f32.mrf.mxu1  ;;  %1304 = vmatprep.mubr.bf16.mxu1 %v6789_v0  ;;  %1926 = vmatpush1.bf16.msra.mxu1 %v4929_v26  ;;  %v732_v53 = vmax.f32 %v655_v32, 0.0  ;;  %v4949_v26 = vld [vmem:[#allocation11 + $0x104] ss:$8 sps:$4 sm:$0xff]  }
 0x17e   :  { %v658_v42 = vadd.f32 %v5563_v25, %v657_v36  ;;  %v821_v43 = vrot.slane %v819_v33, 1  ;;  %1548 = vmatpush1.bf16.msra.mxu0 %v4932_v21  ;;  %1927 = vmatprep.subr.bf16.mxu1 %v4937_v14  ;;  %v1780_v45 = vrot.slane %v823_v34, 1  ;;  %v1781_v46 = vrot.slane %v819_v33, 2  ;;  %v5067_v58 = vpop.eup %5066  ;;  %v4947_v36 = vld [vmem:[#allocation11 + $0x100] ss:$8 sps:$4 sm:$0xff]  }
 0x17f   :  { %v4749_v47 = vpop.f32.mrf.mxu1  ;;  %1549 = vmatprep.subr.bf16.mxu0 %v4940_v28  ;;  %v5643_v49 = vsel %vm1422_vm6, %v1426_v4, %v1428_v35  ;;  %v5646_v50 = vsel %vm2140_vm7, %v2144_v6, %v2146_v41 }
 0x180   :  { %v733_v54 = vmax.f32 %v658_v42, 0.0  ;;  %v822_v55 = vsel %vm794_vm4, %v817_v37, %v821_v43  ;;  %v1782_v56 = vor.u32 %v1781_v46, %v1780_v45  ;;  %v825_v11 = vor.u32 %v823_v34, %v821_v43 }
 0x181   :  { %v662_v57 = vpop.f32.mrf.mxu1  ;;  %1044 = vmatmul.mubr.bf16.gmra.mxu0 %v822_v55  ;;  %1928 = vmatpush1.bf16.msra.mxu1 %v4935_v38  ;;  %v4952_v38 = vld [vmem:[#allocation11 + $0x274] ss:$8 sps:$4 sm:$0xff]  }
 0x182   :  { %v5649_v59 = vpack.c.bf16 %v733_v54, %v732_v53  ;;  %1053 = vmatprep.mubr.bf16.mxu0 %v6789_v0  ;;  %1550 = vmatpush1.bf16.msra.mxu0 %v4938_v44  ;;  %v5653_v61 = vsel %vm1768_vm5, %v1778_v27, %v1782_v56  ;;  %v663_v4 = vadd.f32 %v5563_v25, %v662_v57 }
 0x183   :  { %v5069_v62 = vpop.eup %5068  ;;  %v4752_v63 = vpop.f32.mrf.mxu1  ;;  %1551 = vmatprep.subr.bf16.mxu0 %v4943_v48 }
 0x184   :  { %1305 = vmatmul.mubr.bf16.gmra.mxu1 %v5649_v59  ;;  %v827_v6 = vshll.u32 %v5649_v59, 16  ;;  %v831_v7 = vshrl.u32 %v5649_v59, 16  ;;  %v1430_v8 = vrot.slane %v5649_v59, 1  ;;  %v2148_v13 = vrot.slane %v5649_v59, 2 }
 0x185   :  { %v5071_v9 = vpop.eup %5070  ;;  %v665_v10 = vpop.f32.mrf.mxu1  ;;  %1314 = vmatprep.mubr.bf16.mxu1 %v6789_v0  ;;  %v5662_v15 = vmul.f32 %v5069_v62, %v5065_v51  ;;  %v734_v14 = vmax.f32 %v663_v4, 0.0 }
 0x186   :  { %v666_v16 = vadd.f32 %v5563_v25, %v665_v10  ;;  %v829_v17 = vrot.slane %v827_v6, 1  ;;  %1552 = vmatpush1.bf16.msra.mxu0 %v4941_v60  ;;  %v1784_v22 = vrot.slane %v831_v7, 1  ;;  %v1785_v23 = vrot.slane %v827_v6, 2 }
 0x187   :  { %6792 = vst [vmem:[#allocation28_spill] sm:$0xff] %v5662_v15  ;;  %v4753_v24 = vpop.f32.mrf.mxu1  ;;  %1553 = vmatprep.subr.bf16.mxu0 %v4946_v1  ;;  %v5666_v27 = vsel %vm1422_vm6, %v1428_v35, %v1430_v8  ;;  %v5669_v29 = vsel %vm2140_vm7, %v2146_v41, %v2148_v13  ;;  %v5671_v21 = vmul.f32 %v5071_v9, %v5067_v58 }
 0x188   :  { %v735_v30 = vmax.f32 %v666_v16, 0.0  ;;  %v830_v28 = vsel %vm794_vm4, %v825_v11, %v829_v17  ;;  %v1786_v32 = vor.u32 %v1785_v23, %v1784_v22  ;;  %v833_v46 = vor.u32 %v831_v7, %v829_v17 }
 0x189   :  { %6793 = vst [vmem:[#allocation29_spill] sm:$0xff] %v5671_v21  ;;  %v670_v33 = vpop.f32.mrf.mxu1  ;;  %1054 = vmatmul.mubr.bf16.gmra.mxu0 %v830_v28 }
 0x18a   :  { %v754_v34 = vpack.c.bf16 %v735_v30, %v734_v14  ;;  %1063 = vmatprep.mubr.bf16.mxu0 %v6789_v0  ;;  %1554 = vmatpush1.bf16.msra.mxu0 %v4944_v20  ;;  %v5676_v35 = vsel %vm1768_vm5, %v1782_v56, %v1786_v32  ;;  %v671_v41 = vadd.f32 %v5563_v25, %v670_v33 }
 0x18b   :  { %v4756_v37 = vpop.f32.mrf.mxu1  ;;  %1555 = vmatprep.subr.bf16.mxu0 %v4949_v26 }
 0x18c   :  { %1315 = vmatmul.mubr.bf16.gmra.mxu1 %v754_v34  ;;  %v835_v42 = vshll.u32 %v754_v34, 16  ;;  %v839_v43 = vshrl.u32 %v754_v34, 16  ;;  %v1432_v44 = vrot.slane %v754_v34, 1  ;;  %v2150_v47 = vrot.slane %v754_v34, 2 }
 0x18d   :  { %v673_v45 = vpop.f32.mrf.mxu1  ;;  %1324 = vmatprep.mubr.bf16.mxu1 %v6789_v0  ;;  %v736_v58 = vmax.f32 %v671_v41, 0.0 }
 0x18e   :  { %v674_v48 = vadd.f32 %v5563_v25, %v673_v45  ;;  %v837_v51 = vrot.slane %v835_v42, 1  ;;  %1556 = vmatpush1.bf16.msra.mxu0 %v4947_v36  ;;  %v1788_v53 = vrot.slane %v839_v43, 1  ;;  %v1789_v54 = vrot.slane %v835_v42, 2 }
 0x18f   :  { %v4757_v55 = vpop.f32.mrf.mxu1  ;;  %v5682_v56 = vsel %vm1422_vm6, %v1430_v8, %v1432_v44  ;;  %2259 = vmatprep.subr.bf16.mxu0 %v4952_v38  ;;  %v5685_v57 = vsel %vm2140_vm7, %v2148_v13, %v2150_v47 }
 0x190   :  { %v737_v59 = vmax.f32 %v674_v48, 0.0  ;;  %v838_v60 = vsel %vm794_vm4, %v833_v46, %v837_v51  ;;  %v1790_v62 = vor.u32 %v1789_v54, %v1788_v53  ;;  %v841_v13 = vor.u32 %v839_v43, %v837_v51 }
 0x191   :  { %v678_v63 = vpop.f32.mrf.mxu1  ;;  %1064 = vmatmul.mubr.bf16.gmra.mxu0 %v838_v60 }
 0x192   :  { %v755_v1 = vpack.c.bf16 %v737_v59, %v736_v58  ;;  %1073 = vmatprep.mubr.bf16.mxu0 %v6789_v0  ;;  %v5690_v4 = vsel %vm1768_vm5, %v1786_v32, %v1790_v62  ;;  %v679_v7 = vadd.f32 %v5563_v25, %v678_v63 }
 0x193   :  { %v4760_v6 = vpop.f32.mrf.mxu1 }
 0x194   :  { %1325 = vmatmul.mubr.bf16.gmra.mxu1 %v755_v1  ;;  %v843_v8 = vshll.u32 %v755_v1, 16  ;;  %v847_v9 = vshrl.u32 %v755_v1, 16  ;;  %v1434_v10 = vrot.slane %v755_v1, 1  ;;  %v2152_v16 = vrot.slane %v755_v1, 2 }
 0x195   :  { %v681_v11 = vpop.f32.mrf.mxu1  ;;  %1334 = vmatprep.mubr.bf16.mxu1 %v6789_v0  ;;  %v738_v30 = vmax.f32 %v679_v7, 0.0 }
 0x196   :  { %v682_v17 = vadd.f32 %v5563_v25, %v681_v11  ;;  %v845_v20 = vrot.slane %v843_v8, 1  ;;  %v1792_v22 = vrot.slane %v847_v9, 1  ;;  %v1793_v23 = vrot.slane %v843_v8, 2 }
 0x197   :  { %v4761_v24 = vpop.f32.mrf.mxu1  ;;  %v5696_v26 = vsel %vm1422_vm6, %v1432_v44, %v1434_v10  ;;  %v5699_v14 = vsel %vm2140_vm7, %v2150_v47, %v2152_v16 }
 0x198   :  { %v739_v28 = vmax.f32 %v682_v17, 0.0  ;;  %v846_v32 = vsel %vm794_vm4, %v841_v13, %v845_v20  ;;  %v1794_v33 = vor.u32 %v1793_v23, %v1792_v22  ;;  %v849_v46 = vor.u32 %v847_v9, %v845_v20 }
 0x199   :  { %v686_v34 = vpop.f32.mrf.mxu1  ;;  %1074 = vmatmul.mubr.bf16.gmra.mxu0 %v846_v32 }
 0x19a   :  { %v756_v36 = vpack.c.bf16 %v739_v28, %v738_v30  ;;  %1083 = vmatprep.mubr.bf16.mxu0 %v6789_v0  ;;  %v5704_v37 = vsel %vm1768_vm5, %v1790_v62, %v1794_v33  ;;  %v687_v41 = vadd.f32 %v5563_v25, %v686_v34 }
 0x19b   :  { %v4764_v38 = vpop.f32.mrf.mxu1 }
 0x19c   :  { %1335 = vmatmul.mubr.bf16.gmra.mxu1 %v756_v36  ;;  %v851_v42 = vshll.u32 %v756_v36, 16  ;;  %v855_v43 = vshrl.u32 %v756_v36, 16  ;;  %v1436_v44 = vrot.slane %v756_v36, 1  ;;  %v2154_v47 = vrot.slane %v756_v36, 2 }
 0x19d   :  { %v689_v45 = vpop.f32.mrf.mxu1  ;;  %1344 = vmatprep.mubr.bf16.mxu1 %v6789_v0  ;;  %v740_v60 = vmax.f32 %v687_v41, 0.0 }
 0x19e   :  { %v690_v48 = vadd.f32 %v5563_v25, %v689_v45  ;;  %v853_v51 = vrot.slane %v851_v42, 1  ;;  %v1796_v53 = vrot.slane %v855_v43, 1  ;;  %v1797_v54 = vrot.slane %v851_v42, 2 }
 0x19f   :  { %v4765_v55 = vpop.f32.mrf.mxu1  ;;  %v5710_v58 = vsel %vm1422_vm6, %v1434_v10, %v1436_v44  ;;  %v5713_v59 = vsel %vm2140_vm7, %v2152_v16, %v2154_v47 }
 0x1a0   :  { %v741_v62 = vmax.f32 %v690_v48, 0.0  ;;  %v854_v63 = vsel %vm794_vm4, %v849_v46, %v853_v51  ;;  %v1798_v1 = vor.u32 %v1797_v54, %v1796_v53  ;;  %v857_v20 = vor.u32 %v855_v43, %v853_v51 }
 0x1a1   :  { %v694_v6 = vpop.f32.mrf.mxu1  ;;  %1084 = vmatmul.mubr.bf16.gmra.mxu0 %v854_v63 }
 0x1a2   :  { %v757_v7 = vpack.c.bf16 %v741_v62, %v740_v60  ;;  %1093 = vmatprep.mubr.bf16.mxu0 %v6789_v0  ;;  %v5718_v8 = vsel %vm1768_vm5, %v1794_v33, %v1798_v1  ;;  %v695_v10 = vadd.f32 %v5563_v25, %v694_v6 }
 0x1a3   :  { %v4768_v9 = vpop.f32.mrf.mxu1 }
 0x1a4   :  { %1345 = vmatmul.mubr.bf16.gmra.mxu1 %v757_v7  ;;  %v859_v11 = vshll.u32 %v757_v7, 16  ;;  %v863_v13 = vshrl.u32 %v757_v7, 16  ;;  %v1438_v16 = vrot.slane %v757_v7, 1  ;;  %v2156_v22 = vrot.slane %v757_v7, 2 }
 0x1a5   :  { %v697_v17 = vpop.f32.mrf.mxu1  ;;  %1354 = vmatprep.mubr.bf16.mxu1 %v6789_v0  ;;  %v742_v36 = vmax.f32 %v695_v10, 0.0 }
 0x1a6   :  { %v698_v23 = vadd.f32 %v5563_v25, %v697_v17  ;;  %v861_v24 = vrot.slane %v859_v11, 1  ;;  %v1800_v30 = vrot.slane %v863_v13, 1  ;;  %v1801_v28 = vrot.slane %v859_v11, 2 }
 0x1a7   :  { %v4769_v32 = vpop.f32.mrf.mxu1  ;;  %v5724_v33 = vsel %vm1422_vm6, %v1436_v44, %v1438_v16  ;;  %v5727_v34 = vsel %vm2140_vm7, %v2154_v47, %v2156_v22 }
 0x1a8   :  { %v743_v38 = vmax.f32 %v698_v23, 0.0  ;;  %v862_v41 = vsel %vm794_vm4, %v857_v20, %v861_v24  ;;  %v1802_v42 = vor.u32 %v1801_v28, %v1800_v30  ;;  %v865_v55 = vor.u32 %v863_v13, %v861_v24 }
 0x1a9   :  { %v702_v43 = vpop.f32.mrf.mxu1  ;;  %1094 = vmatmul.mubr.bf16.gmra.mxu0 %v862_v41 }
 0x1aa   :  { %v758_v45 = vpack.c.bf16 %v743_v38, %v742_v36  ;;  %1103 = vmatprep.mubr.bf16.mxu0 %v6789_v0  ;;  %v5732_v46 = vsel %vm1768_vm5, %v1798_v1, %v1802_v42  ;;  %v703_v44 = vadd.f32 %v5563_v25, %v702_v43 }
 0x1ab   :  { %v4772_v48 = vpop.f32.mrf.mxu1 }
 0x1ac   :  { %1355 = vmatmul.mubr.bf16.gmra.mxu1 %v758_v45  ;;  %v867_v51 = vshll.u32 %v758_v45, 16  ;;  %v871_v47 = vshrl.u32 %v758_v45, 16  ;;  %v1440_v53 = vrot.slane %v758_v45, 1  ;;  %v2158_v60 = vrot.slane %v758_v45, 2 }
 0x1ad   :  { %v705_v54 = vpop.f32.mrf.mxu1  ;;  %1364 = vmatprep.mubr.bf16.mxu1 %v6789_v0  ;;  %v744_v11 = vmax.f32 %v703_v44, 0.0 }
 0x1ae   :  { %v706_v62 = vadd.f32 %v5563_v25, %v705_v54  ;;  %v869_v63 = vrot.slane %v867_v51, 1  ;;  %v1804_v6 = vrot.slane %v871_v47, 1  ;;  %v1805_v7 = vrot.slane %v867_v51, 2 }
 0x1af   :  { %v4773_v9 = vpop.f32.mrf.mxu1  ;;  %v5738_v1 = vsel %vm1422_vm6, %v1438_v16, %v1440_v53  ;;  %v5741_v10 = vsel %vm2140_vm7, %v2156_v22, %v2158_v60 }
 0x1b0   :  { %v745_v17 = vmax.f32 %v706_v62, 0.0  ;;  %v870_v20 = vsel %vm794_vm4, %v865_v55, %v869_v63  ;;  %v1806_v13 = vor.u32 %v1805_v7, %v1804_v6  ;;  %v873_v41 = vor.u32 %v871_v47, %v869_v63 }
 0x1b1   :  { %v710_v23 = vpop.f32.mrf.mxu1  ;;  %1104 = vmatmul.mubr.bf16.gmra.mxu0 %v870_v20 }
 0x1b2   :  { %v759_v24 = vpack.c.bf16 %v745_v17, %v744_v11  ;;  %1113 = vmatprep.mubr.bf16.mxu0 %v6789_v0  ;;  %v5746_v30 = vsel %vm1768_vm5, %v1802_v42, %v1806_v13  ;;  %v711_v16 = vadd.f32 %v5563_v25, %v710_v23 }
 0x1b3   :  { %v4776_v28 = vpop.f32.mrf.mxu1 }
 0x1b4   :  { %1365 = vmatmul.mubr.bf16.gmra.mxu1 %v759_v24  ;;  %v875_v32 = vshll.u32 %v759_v24, 16  ;;  %v879_v22 = vshrl.u32 %v759_v24, 16  ;;  %v1442_v36 = vrot.slane %v759_v24, 1  ;;  %v2160_v43 = vrot.slane %v759_v24, 2 }
 0x1b5   :  { %v713_v38 = vpop.f32.mrf.mxu1  ;;  %1374 = vmatprep.mubr.bf16.mxu1 %v6789_v0  ;;  %v746_v62 = vmax.f32 %v711_v16, 0.0 }
 0x1b6   :  { %v714_v45 = vadd.f32 %v5563_v25, %v713_v38  ;;  %v877_v48 = vrot.slane %v875_v32, 1  ;;  %v1808_v44 = vrot.slane %v879_v22, 1  ;;  %v1809_v51 = vrot.slane %v875_v32, 2 }
 0x1b7   :  { %v4777_v54 = vpop.f32.mrf.mxu1  ;;  %v5752_v42 = vsel %vm1422_vm6, %v1440_v53, %v1442_v36  ;;  %v5755_v55 = vsel %vm2140_vm7, %v2158_v60, %v2160_v43 }
 0x1b8   :  { %v747_v6 = vmax.f32 %v714_v45, 0.0  ;;  %v878_v7 = vsel %vm794_vm4, %v873_v41, %v877_v48  ;;  %v1810_v47 = vor.u32 %v1809_v51, %v1808_v44  ;;  %v881_v16 = vor.u32 %v879_v22, %v877_v48 }
 0x1b9   :  { %v718_v63 = vpop.f32.mrf.mxu1  ;;  %1114 = vmatmul.mubr.bf16.gmra.mxu0 %v878_v7 }
 0x1ba   :  { %v760_v9 = vpack.c.bf16 %v747_v6, %v746_v62  ;;  %v719_v11 = vadd.f32 %v5563_v25, %v718_v63  ;;  %1123 = vmatprep.mubr.bf16.mxu0 %v6789_v0  ;;  %v5761_v17 = vsel %vm1768_vm5, %v1806_v13, %v1810_v47 }
 0x1bb   :  { %v4780_v53 = vpop.f32.mrf.mxu1 }
 0x1bc   :  { %v748_v20 = vmax.f32 %v719_v11, 0.0  ;;  %1375 = vmatmul.mubr.bf16.gmra.mxu1 %v760_v9  ;;  %v883_v60 = vshll.u32 %v760_v9, 16  ;;  %v887_v23 = vshrl.u32 %v760_v9, 16  ;;  %v1444_v24 = vrot.slane %v760_v9, 1 }
 0x1bd   :  { %v721_v28 = vpop.f32.mrf.mxu1  ;;  %1384 = vmatprep.mubr.bf16.mxu1 %v6789_v0  ;;  %v2162_v32 = vrot.slane %v760_v9, 2 }
 0x1be   :  { %v5764_v38 = vpack.c.bf16 %v748_v20, %v748_v20  ;;  %v885_v41 = vrot.slane %v883_v60, 1  ;;  %v1812_v25 = vrot.slane %v887_v23, 1  ;;  %v1813_v45 = vrot.slane %v883_v60, 2 }
 0x1bf   :  { %v4781_v44 = vpop.f32.mrf.mxu1  ;;  %v5767_v13 = vsel %vm1422_vm6, %v1442_v36, %v1444_v24  ;;  %v5770_v51 = vsel %vm2140_vm7, %v2160_v43, %v2162_v32 }
 0x1c0   :  { %v886_v54 = vsel %vm794_vm4, %v881_v16, %v885_v41  ;;  %v891_v62 = vshll.u32 %v5764_v38, 16  ;;  %v895_v22 = vshrl.u32 %v5764_v38, 16  ;;  %v1814_v48 = vor.u32 %v1813_v45, %v1812_v25  ;;  %v4955_v16 = vld [vmem:[#allocation11 + $0x264] ss:$8 sps:$4 sm:$0xff]   ;;  %v4964_v25 = vld [vmem:[#allocation11 + $0x234] ss:$8 sps:$4 sm:$0xff]  }
 0x1c1   :  { %1124 = vmatmul.mubr.bf16.gmra.mxu0 %v886_v54  ;;  %v1446_v6 = vrot.slane %v5764_v38, 1  ;;  %v6788_v7 = vrot.slane %v5764_v38, 2  ;;  %v889_v60 = vor.u32 %v887_v23, %v885_v41  ;;  %v4950_v23 = vld [vmem:[#allocation11 + $0x270] ss:$8 sps:$4 sm:$0xff]   ;;  %v4967_v45 = vld [vmem:[#allocation11 + $0x224] ss:$8 sps:$4 sm:$0xff]  }
 0x1c2   :  { %1133 = vmatprep.mubr.bf16.mxu0 %v6789_v0  ;;  %v1816_v63 = vrot.slane %v895_v22, 1  ;;  %v1817_v36 = vrot.slane %v891_v62, 2  ;;  %v5779_v9 = vsel %vm1768_vm5, %v1810_v47, %v1814_v48  ;;  %v893_v53 = vrot.slane %v891_v62, 1  ;;  %v4956_v41 = vld [vmem:[#allocation11 + $0x250] ss:$8 sps:$4 sm:$0xff]  }
 0x1c3   :  { %v5784_v43 = vsel %vm1422_vm6, %v1444_v24, %v1446_v6  ;;  %v5789_v11 = vsel %vm2140_vm7, %v2162_v32, %v6788_v7  ;;  %v4953_v32 = vld [vmem:[#allocation11 + $0x260] ss:$8 sps:$4 sm:$0xff]   ;;  %v4970_v44 = vld [vmem:[#allocation11 + $0x214] ss:$8 sps:$4 sm:$0xff]   ;;  %v4973_v54 = vld [vmem:[#allocation11 + $0x204] ss:$8 sps:$4 sm:$0xff]  }
 0x1c4   :  { %1385 = vmatmul.mubr.bf16.gmra.mxu1 %v5764_v38  ;;  %v5792_v20 = vor.u32 %v1817_v36, %v1816_v63  ;;  %v894_v24 = vsel %vm794_vm4, %v889_v60, %v893_v53  ;;  %v897_v28 = vor.u32 %v895_v22, %v893_v53 }
 0x1c5   :  { %1945 = vmatprep.mubr.bf16.mxu1 %v6789_v0 }
 0x1c6   :  { %v5797_v47 = vsel %vm1768_vm5, %v1814_v48, %v5792_v20 }
 0x1c9   :  { %1134 = vmatmul.mubr.bf16.gmra.mxu0 %v894_v24 }
 0x1ca   :  { %1143 = vmatprep.mubr.bf16.mxu0 %v6789_v0 }
 0x1cc   :  { %1946 = vmatmul.mubr.bf16.vlgmr.msra.gmra.mxu1 %v5606_v52  ;;  %v4958_v52 = vld [vmem:[#allocation11 + $0x254] ss:$8 sps:$4 sm:$0xff]  }
 0x1cd   :  { %1955 = vmatprep.mubr.bf16.mxu1 %v6789_v0 }
 0x1d1   :  { %1144 = vmatmul.mubr.bf16.gmra.mxu0 %v897_v28 }
 0x1d2   :  { %1573 = vmatprep.mubr.bf16.mxu0 %v6789_v0 }
 0x1d4   :  { %1956 = vmatmul.mubr.bf16.gmra.mxu1 %v5632_v31  ;;  %v4961_v31 = vld [vmem:[#allocation11 + $0x244] ss:$8 sps:$4 sm:$0xff]  }
 0x1d5   :  { %1965 = vmatprep.mubr.bf16.mxu1 %v6789_v0 }
 0x1d9   :  { %1574 = vmatmul.mubr.bf16.vlgmr.msra.gmra.mxu0 %v5591_v39  ;;  %v4959_v39 = vld [vmem:[#allocation11 + $0x240] ss:$8 sps:$4 sm:$0xff]  }
 0x1da   :  { %1583 = vmatprep.mubr.bf16.mxu0 %v6789_v0  ;;  %2260 = vmatpush1.bf16.msra.mxu0 %v4950_v23 }
 0x1db   :  { %2261 = vmatprep.subr.bf16.mxu0 %v4955_v16 }
 0x1dc   :  { %1966 = vmatmul.mubr.bf16.gmra.mxu1 %v5653_v61  ;;  %v4962_v61 = vld [vmem:[#allocation11 + $0x230] ss:$8 sps:$4 sm:$0xff]  }
 0x1dd   :  { %1975 = vmatprep.mubr.bf16.mxu1 %v6789_v0 }
 0x1de   :  { %2262 = vmatpush1.bf16.msra.mxu0 %v4953_v32 }
 0x1df   :  { %2263 = vmatprep.subr.bf16.mxu0 %v4958_v52 }
 0x1e1   :  { %1584 = vmatmul.mubr.bf16.gmra.mxu0 %v5619_v18  ;;  %v4965_v18 = vld [vmem:[#allocation11 + $0x220] ss:$8 sps:$4 sm:$0xff]  }
 0x1e2   :  { %1593 = vmatprep.mubr.bf16.mxu0 %v6789_v0  ;;  %2264 = vmatpush1.bf16.msra.mxu0 %v4956_v41 }
 0x1e3   :  { %2265 = vmatprep.subr.bf16.mxu0 %v4961_v31 }
 0x1e4   :  { %1976 = vmatmul.mubr.bf16.gmra.mxu1 %v5676_v35  ;;  %v4968_v35 = vld [vmem:[#allocation11 + $0x210] ss:$8 sps:$4 sm:$0xff]  }
 0x1e5   :  { %1985 = vmatprep.mubr.bf16.mxu1 %v6789_v0 }
 0x1e6   :  { %2266 = vmatpush1.bf16.msra.mxu0 %v4959_v39 }
 0x1e7   :  { %2267 = vmatprep.subr.bf16.mxu0 %v4964_v25 }
 0x1e9   :  { %1594 = vmatmul.mubr.bf16.gmra.mxu0 %v5643_v49  ;;  %v4971_v49 = vld [vmem:[#allocation11 + $0x200] ss:$8 sps:$4 sm:$0xff]  }
 0x1ea   :  { %1603 = vmatprep.mubr.bf16.mxu0 %v6789_v0  ;;  %2268 = vmatpush1.bf16.msra.mxu0 %v4962_v61 }
 0x1eb   :  { %2269 = vmatprep.subr.bf16.mxu0 %v4967_v45 }
 0x1ec   :  { %1986 = vmatmul.mubr.bf16.gmra.mxu1 %v5690_v4 }
 0x1ed   :  { %1995 = vmatprep.mubr.bf16.mxu1 %v6789_v0 }
 0x1ee   :  { %2270 = vmatpush1.bf16.msra.mxu0 %v4965_v18 }
 0x1ef   :  { %2271 = vmatprep.subr.bf16.mxu0 %v4970_v44 }
 0x1f1   :  { %1604 = vmatmul.mubr.bf16.gmra.mxu0 %v5666_v27 }
 0x1f2   :  { %1613 = vmatprep.mubr.bf16.mxu0 %v6789_v0  ;;  %2272 = vmatpush1.bf16.msra.mxu0 %v4968_v35 }
 0x1f3   :  { %2273 = vmatprep.subr.bf16.mxu0 %v4973_v54 }
 0x1f4   :  { %1996 = vmatmul.mubr.bf16.gmra.mxu1 %v5704_v37 }
 0x1f5   :  { %2005 = vmatprep.mubr.bf16.mxu1 %v6789_v0 }
 0x1f6   :  { %2274 = vmatpush1.bf16.msra.mxu0 %v4971_v49 }
 0x1f9   :  { %1614 = vmatmul.mubr.bf16.gmra.mxu0 %v5682_v56 }
 0x1fa   :  { %1623 = vmatprep.mubr.bf16.mxu0 %v6789_v0 }
 0x1fc   :  { %2006 = vmatmul.mubr.bf16.gmra.mxu1 %v5718_v8 }
 0x1fd   :  { %2015 = vmatprep.mubr.bf16.mxu1 %v6789_v0 }
 0x201   :  { %1624 = vmatmul.mubr.bf16.gmra.mxu0 %v5696_v26 }
 0x202   :  { %1633 = vmatprep.mubr.bf16.mxu0 %v6789_v0 }
 0x204   :  { %2016 = vmatmul.mubr.bf16.gmra.mxu1 %v5732_v46 }
 0x205   :  { %2025 = vmatprep.mubr.bf16.mxu1 %v6789_v0 }
 0x209   :  { %1634 = vmatmul.mubr.bf16.gmra.mxu0 %v5710_v58 }
 0x20a   :  { %1643 = vmatprep.mubr.bf16.mxu0 %v6789_v0 }
 0x20c   :  { %2026 = vmatmul.mubr.bf16.gmra.mxu1 %v5746_v30 }
 0x20d   :  { %2035 = vmatprep.mubr.bf16.mxu1 %v6789_v0 }
 0x211   :  { %1644 = vmatmul.mubr.bf16.gmra.mxu0 %v5724_v33 }
 0x212   :  { %1653 = vmatprep.mubr.bf16.mxu0 %v6789_v0 }
 0x214   :  { %2036 = vmatmul.mubr.bf16.gmra.mxu1 %v5761_v17 }
 0x215   :  { %2045 = vmatprep.mubr.bf16.mxu1 %v6789_v0 }
 0x219   :  { %1654 = vmatmul.mubr.bf16.gmra.mxu0 %v5738_v1 }
 0x21a   :  { %1663 = vmatprep.mubr.bf16.mxu0 %v6789_v0 }
 0x21c   :  { %2046 = vmatmul.mubr.bf16.gmra.mxu1 %v5779_v9 }
 0x21d   :  { %2055 = vmatprep.mubr.bf16.mxu1 %v6789_v0 }
 0x221   :  { %1664 = vmatmul.mubr.bf16.gmra.mxu0 %v5752_v42 }
 0x222   :  { %1673 = vmatprep.mubr.bf16.mxu0 %v6789_v0 }
 0x224   :  { %v1266_v27 = vpop.f32.mrf.mxu1  ;;  %2056 = vmatmul.mubr.bf16.gmra.mxu1 %v5797_v47 }
 0x225   :  { %2065 = vmatprep.mubr.bf16.mxu1 %v6789_v0 }
 0x226   :  { %v1268_v56 = vpop.f32.mrf.mxu1 }
 0x228   :  { %v1270_v4 = vpop.f32.mrf.mxu1 }
 0x229   :  { %1674 = vmatmul.mubr.bf16.gmra.mxu0 %v5767_v13 }
 0x22a   :  { %v5847_v26 = vpop.f32.mrf.mxu1  ;;  %1683 = vmatprep.mubr.bf16.mxu0 %v6789_v0 }
 0x22c   :  { %v1276_v37 = vpop.f32.mrf.mxu1  ;;  %2066 = vmatmul.mubr.bf16.gmra.mxu1 %v5792_v20 }
 0x22e   :  { %v1278_v58 = vpop.f32.mrf.mxu1 }
 0x230   :  { %v1280_v8 = vpop.f32.mrf.mxu1 }
 0x231   :  { %v1025_v33 = vpop.f32.mrf.mxu0  ;;  %1684 = vmatmul.mubr.bf16.gmra.mxu0 %v5784_v43 }
 0x232   :  { %v5852_v46 = vadd.f32 %v1266_v27, %v1025_v33  ;;  %v5854_v1 = vpop.f32.mrf.mxu1  ;;  %1693 = vmatprep.mubr.bf16.mxu0 %v6789_v0 }
 0x233   :  { %6794 = vst [vmem:[#allocation30_spill] sm:$0xff] %v5854_v1  ;;  %v1027_v30 = vpop.f32.mrf.mxu0 }
 0x234   :  { %v5857_v42 = vadd.f32 %v1268_v56, %v1027_v30  ;;  %v1286_v17 = vpop.f32.mrf.mxu1 }
 0x235   :  { %v1029_v13 = vpop.f32.mrf.mxu0 }
 0x236   :  { %v5859_v62 = vadd.f32 %v1270_v4, %v1029_v13  ;;  %v1288_v22 = vpop.f32.mrf.mxu1 }
 0x237   :  { %v5861_v48 = vpop.f32.mrf.mxu0 }
 0x238   :  { %v1290_v63 = vpop.f32.mrf.mxu1 }
 0x239   :  { %v1035_v36 = vpop.f32.mrf.mxu0  ;;  %1694 = vmatmul.mubr.bf16.gmra.mxu0 %v1446_v6 }
 0x23a   :  { %v5865_v9 = vadd.f32 %v1276_v37, %v1035_v36  ;;  %v5867_v43 = vpop.f32.mrf.mxu1  ;;  %2291 = vmatprep.mubr.bf16.mxu0 %v6789_v0 }
 0x23b   :  { %6795 = vst [vmem:[#allocation31_spill] sm:$0xff] %v5867_v43  ;;  %v1037_v53 = vpop.f32.mrf.mxu0 }
 0x23c   :  { %v5870_v20 = vadd.f32 %v1278_v58, %v1037_v53  ;;  %v1296_v60 = vpop.f32.mrf.mxu1 }
 0x23d   :  { %v1039_v47 = vpop.f32.mrf.mxu0 }
 0x23e   :  { %v5872_v24 = vadd.f32 %v1280_v8, %v1039_v47  ;;  %v1298_v28 = vpop.f32.mrf.mxu1 }
 0x23f   :  { %v5874_v23 = vpop.f32.mrf.mxu0 }
 0x240   :  { %v1300_v16 = vpop.f32.mrf.mxu1 }
 0x241   :  { %v1045_v32 = vpop.f32.mrf.mxu0  ;;  %2292 = vmatmul.mubr.bf16.vlgmr.msra.gmra.mxu0 %v5596_v40 }
 0x242   :  { %v5877_v6 = vadd.f32 %v1286_v17, %v1045_v32  ;;  %v5879_v52 = vpop.f32.mrf.mxu1  ;;  %2301 = vmatprep.mubr.bf16.mxu0 %v6789_v0 }
 0x243   :  { %6796 = vst [vmem:[#allocation32_spill] sm:$0xff] %v5879_v52  ;;  %v1047_v41 = vpop.f32.mrf.mxu0 }
 0x244   :  { %v5882_v31 = vadd.f32 %v1288_v22, %v1047_v41  ;;  %v1306_v39 = vpop.f32.mrf.mxu1 }
 0x245   :  { %v1049_v25 = vpop.f32.mrf.mxu0 }
 0x246   :  { %v5884_v61 = vadd.f32 %v1290_v63, %v1049_v25  ;;  %v1308_v45 = vpop.f32.mrf.mxu1 }
 0x247   :  { %v5886_v18 = vpop.f32.mrf.mxu0 }
 0x248   :  { %6797 = vst [vmem:[#allocation33_spill] sm:$0xff] %v5886_v18  ;;  %v1310_v44 = vpop.f32.mrf.mxu1 }
 0x249   :  { %v1055_v35 = vpop.f32.mrf.mxu0  ;;  %2302 = vmatmul.mubr.bf16.gmra.mxu0 %v5624_v19 }
 0x24a   :  { %v5889_v40 = vadd.f32 %v1296_v60, %v1055_v35  ;;  %v5891_v54 = vpop.f32.mrf.mxu1  ;;  %2311 = vmatprep.mubr.bf16.mxu0 %v6789_v0 }
 0x24b   :  { %6798 = vst [vmem:[#allocation34_spill] sm:$0xff] %v5891_v54  ;;  %v1057_v49 = vpop.f32.mrf.mxu0  ;;  %v4988_v54 = vld [vmem:[#allocation14 + $0x58] sm:$0xff]  }
 0x24c   :  { %v5894_v27 = vadd.f32 %v1298_v28, %v1057_v49  ;;  %v1316_v56 = vpop.f32.mrf.mxu1 }
 0x24d   :  { %v1059_v4 = vpop.f32.mrf.mxu0 }
 0x24e   :  { %v5896_v37 = vadd.f32 %v1300_v16, %v1059_v4  ;;  %v1318_v58 = vpop.f32.mrf.mxu1 }
 0x24f   :  { %v5898_v8 = vpop.f32.mrf.mxu0 }
 0x250   :  { %6799 = vst [vmem:[#allocation35_spill] sm:$0xff] %v5898_v8  ;;  %v1320_v33 = vpop.f32.mrf.mxu1 }
 0x251   :  { %v1065_v30 = vpop.f32.mrf.mxu0  ;;  %2312 = vmatmul.mubr.bf16.gmra.mxu0 %v5646_v50 }
 0x252   :  { %v5901_v19 = vadd.f32 %v1306_v39, %v1065_v30  ;;  %v5903_v17 = vpop.f32.mrf.mxu1  ;;  %2321 = vmatprep.mubr.bf16.mxu0 %v6789_v0 }
 0x253   :  { %6800 = vst [vmem:[#allocation36_spill] sm:$0xff] %v5903_v17  ;;  %v1067_v13 = vpop.f32.mrf.mxu0 }
 0x254   :  { %v5906_v22 = vadd.f32 %v1308_v45, %v1067_v13  ;;  %v1326_v63 = vpop.f32.mrf.mxu1 }
 0x255   :  { %v1069_v36 = vpop.f32.mrf.mxu0 }
 0x256   :  { %v5908_v53 = vadd.f32 %v1310_v44, %v1069_v36  ;;  %v1328_v60 = vpop.f32.mrf.mxu1 }
 0x257   :  { %v5910_v47 = vpop.f32.mrf.mxu0 }
 0x258   :  { %6801 = vst [vmem:[#allocation37_spill] sm:$0xff] %v5910_v47  ;;  %v1330_v28 = vpop.f32.mrf.mxu1  ;;  %v4991_v47 = vld [vmem:[#allocation14 + $0x10] sm:$0xff]  }
 0x259   :  { %v1075_v16 = vpop.f32.mrf.mxu0  ;;  %2322 = vmatmul.mubr.bf16.gmra.mxu0 %v5669_v29 }
 0x25a   :  { %v5913_v50 = vadd.f32 %v1316_v56, %v1075_v16  ;;  %v5915_v32 = vpop.f32.mrf.mxu1  ;;  %2331 = vmatprep.mubr.bf16.mxu0 %v6789_v0 }
 0x25b   :  { %6802 = vst [vmem:[#allocation38_spill] sm:$0xff] %v5915_v32  ;;  %v1077_v41 = vpop.f32.mrf.mxu0 }
 0x25c   :  { %v5918_v39 = vadd.f32 %v1318_v58, %v1077_v41  ;;  %v1336_v25 = vpop.f32.mrf.mxu1 }
 0x25d   :  { %v1079_v45 = vpop.f32.mrf.mxu0 }
 0x25e   :  { %v5920_v44 = vadd.f32 %v1320_v33, %v1079_v45  ;;  %v1338_v35 = vpop.f32.mrf.mxu1  ;;  %v4974_v45 = vld [vmem:[#allocation14 + $0xf8] sm:$0xff]  }
 0x25f   :  { %v5922_v49 = vpop.f32.mrf.mxu0  ;;  %4415 = vmatprep.subr.bf16.mxu1 %v4974_v45 }
 0x260   :  { %6803 = vst [vmem:[#allocation39_spill] sm:$0xff] %v5922_v49  ;;  %v1340_v4 = vpop.f32.mrf.mxu1  ;;  %4416 = vmatpush3.bf16.msra.mxu1 %v4975_v12  ;;  %v4978_v12 = vld [vmem:[#allocation14 + $0x38] sm:$0xff]  }
 0x261   :  { %v1085_v30 = vpop.f32.mrf.mxu0  ;;  %2332 = vmatmul.mubr.bf16.gmra.mxu0 %v5685_v57 }
 0x262   :  { %v5925_v29 = vadd.f32 %v1326_v63, %v1085_v30  ;;  %v5927_v56 = vpop.f32.mrf.mxu1  ;;  %2341 = vmatprep.mubr.bf16.mxu0 %v6789_v0 }
 0x263   :  { %6804 = vst [vmem:[#allocation40_spill] sm:$0xff] %v5927_v56  ;;  %v1087_v13 = vpop.f32.mrf.mxu0  ;;  %v4976_v56 = vld [vmem:[#allocation14 + $0x78] sm:$0xff]  }
 0x264   :  { %v5930_v58 = vadd.f32 %v1328_v60, %v1087_v13  ;;  %v1346_v36 = vpop.f32.mrf.mxu1  ;;  %4509 = vmatprep.subr.bf16.mxu0 %v4976_v56 }
 0x265   :  { %v1089_v16 = vpop.f32.mrf.mxu0  ;;  %4510 = vmatpush3.bf16.msra.mxu0 %v4978_v12 }
 0x266   :  { %v5932_v33 = vadd.f32 %v1330_v28, %v1089_v16  ;;  %v1348_v41 = vpop.f32.mrf.mxu1 }
 0x267   :  { %v5934_v5 = vpop.f32.mrf.mxu0 }
 0x268   :  { %6805 = vst [vmem:[#allocation41_spill] sm:$0xff] %v5934_v5  ;;  %v1350_v3 = vpop.f32.mrf.mxu1  ;;  %v4981_v5 = vld [vmem:[#allocation14 + $0x30] sm:$0xff]  }
 0x269   :  { %v1095_v57 = vpop.f32.mrf.mxu0  ;;  %2342 = vmatmul.mubr.bf16.gmra.mxu0 %v5699_v14 }
 0x26a   :  { %v5937_v63 = vadd.f32 %v1336_v25, %v1095_v57  ;;  %v5939_v30 = vpop.f32.mrf.mxu1  ;;  %2351 = vmatprep.mubr.bf16.mxu0 %v6789_v0 }
 0x26b   :  { %6806 = vst [vmem:[#allocation42_spill] sm:$0xff] %v5939_v30  ;;  %v1097_v60 = vpop.f32.mrf.mxu0  ;;  %v4979_v30 = vld [vmem:[#allocation14 + $0xb0] sm:$0xff]  }
 0x26c   :  { %v5942_v28 = vadd.f32 %v1338_v35, %v1097_v60  ;;  %v1356_v13 = vpop.f32.mrf.mxu1  ;;  %v4977_v35 = vld [vmem:[#allocation14 + $0xf0] sm:$0xff]  }
 0x26d   :  { %v1099_v16 = vpop.f32.mrf.mxu0  ;;  %4417 = vmatprep.subr.bf16.mxu1 %v4977_v35 }
 0x26e   :  { %v5944_v7 = vadd.f32 %v1340_v4, %v1099_v16  ;;  %v1358_v15 = vpop.f32.mrf.mxu1  ;;  %4418 = vmatpush3.bf16.msra.mxu1 %v4979_v30  ;;  %v4984_v30 = vld [vmem:[#allocation14 + $0x60] sm:$0xff]  }
 0x26f   :  { %v5946_v21 = vpop.f32.mrf.mxu0 }
 0x270   :  { %6807 = vst [vmem:[#allocation43_spill] sm:$0xff] %v5946_v21  ;;  %v1360_v45 = vpop.f32.mrf.mxu1  ;;  %v4980_v21 = vld [vmem:[#allocation14 + $0x70] sm:$0xff]  }
 0x271   :  { %v1105_v14 = vpop.f32.mrf.mxu0  ;;  %2352 = vmatmul.mubr.bf16.gmra.mxu0 %v5713_v59  ;;  %4511 = vmatprep.subr.bf16.mxu0 %v4980_v21 }
 0x272   :  { %v5949_v25 = vadd.f32 %v1346_v36, %v1105_v14  ;;  %v5951_v57 = vpop.f32.mrf.mxu1  ;;  %2361 = vmatprep.mubr.bf16.mxu0 %v6789_v0  ;;  %4512 = vmatpush3.bf16.msra.mxu0 %v4981_v5  ;;  %v4982_v0 = vld [vmem:[#allocation14 + $0x68] sm:$0xff]  }
 0x273   :  { %6808 = vst [vmem:[#allocation44_spill] sm:$0xff] %v5951_v57  ;;  %v1107_v60 = vpop.f32.mrf.mxu0  ;;  %4513 = vmatprep.subr.bf16.mxu0 %v4982_v0 }
 0x274   :  { %v5954_v4 = vadd.f32 %v1348_v41, %v1107_v60  ;;  %v1366_v16 = vpop.f32.mrf.mxu1  ;;  %v4983_v41 = vld [vmem:[#allocation14 + $0x28] sm:$0xff]   ;;  %v6811_v60 = vmov 0  }
 0x275   :  { %v1109_v32 = vpop.f32.mrf.mxu0 }
 0x276   :  { %v5956_v59 = vadd.f32 %v1350_v3, %v1109_v32  ;;  %v1368_v36 = vpop.f32.mrf.mxu1  ;;  %4514 = vmatpush3.bf16.msra.mxu0 %v4983_v41 }
 0x277   :  { %v5958_v14 = vpop.f32.mrf.mxu0  ;;  %4515 = vmatprep.subr.bf16.mxu0 %v4984_v30 }
 0x278   :  { %6809 = vst [vmem:[#allocation45_spill] sm:$0xff] %v5958_v14  ;;  %v1370_v56 = vpop.f32.mrf.mxu1  ;;  %v4985_v14 = vld [vmem:[#allocation14 + $0x20] sm:$0xff]  }
 0x279   :  { %v1115_v57 = vpop.f32.mrf.mxu0  ;;  %2362 = vmatmul.mubr.bf16.gmra.mxu0 %v5727_v34 }
 0x27a   :  { %v5961_v12 = vadd.f32 %v1356_v13, %v1115_v57  ;;  %v5963_v35 = vpop.f32.mrf.mxu1  ;;  %2371 = vmatprep.mubr.bf16.mxu0 %v6811_v60  ;;  %4516 = vmatpush3.bf16.msra.mxu0 %v4985_v14  ;;  %v4986_v13 = vld [vmem:[#allocation14 + $0xe8] sm:$0xff]  }
 0x27b   :  { %6810 = vst [vmem:[#allocation46_spill] sm:$0xff] %v5963_v35  ;;  %v1117_v3 = vpop.f32.mrf.mxu0  ;;  %v4987_v57 = vld [vmem:[#allocation14 + $0xa8] sm:$0xff]   ;;  %4419 = vmatprep.subr.bf16.mxu1 %v4986_v13  ;;  %4517 = vmatprep.subr.bf16.mxu0 %v4988_v54  ;;  %v4993_v54 = vld [vmem:[#allocation14 + $0xe0] sm:$0xff]  }
 0x27c   :  { %v5966_v32 = vadd.f32 %v1358_v15, %v1117_v3  ;;  %v1376_v21 = vpop.f32.mrf.mxu1  ;;  %v4989_v15 = vld [vmem:[#allocation14 + $0x18] sm:$0xff]   ;;  %4420 = vmatpush3.bf16.msra.mxu1 %v4987_v57 }
 0x27d   :  { %v1119_v5 = vpop.f32.mrf.mxu0  ;;  %4421 = vmatprep.subr.bf16.mxu1 %v4993_v54  ;;  %v5000_v54 = vld [vmem:[#allocation14 + $0xd0] sm:$0xff]  }
 0x27e   :  { %v5968_v17 = vadd.f32 %v1360_v45, %v1119_v5  ;;  %v1378_v49 = vpop.f32.mrf.mxu1  ;;  %4518 = vmatpush3.bf16.msra.mxu0 %v4989_v15  ;;  %v4990_v5 = vld [vmem:[#allocation14 + $0x50] sm:$0xff]  }
 0x27f   :  { %v5970_v34 = vpop.f32.mrf.mxu0  ;;  %4519 = vmatprep.subr.bf16.mxu0 %v4990_v5 }
 0x280   :  { %6812 = vst [vmem:[#allocation47_spill] sm:$0xff] %v5970_v34  ;;  %v1380_v35 = vpop.f32.mrf.mxu1 }
 0x281   :  { %v1125_v0 = vpop.f32.mrf.mxu0  ;;  %2372 = vmatmul.mubr.bf16.gmra.mxu0 %v5741_v10 }
 0x282   :  { %v5973_v41 = vadd.f32 %v1366_v16, %v1125_v0  ;;  %v5975_v3 = vpop.f32.mrf.mxu1  ;;  %2381 = vmatprep.mubr.bf16.mxu0 %v6811_v60  ;;  %4520 = vmatpush3.bf16.msra.mxu0 %v4991_v47  ;;  %v4992_v0 = vld [vmem:[#allocation14 + $0x48] sm:$0xff]   ;;  %v4996_v47 = vld [vmem:[#allocation14 + $0x40] sm:$0xff]  }
 0x283   :  { %6813 = vst [vmem:[#allocation48_spill] sm:$0xff] %v5975_v3  ;;  %v1127_v45 = vpop.f32.mrf.mxu0  ;;  %4521 = vmatprep.subr.bf16.mxu0 %v4992_v0 }
 0x284   :  { %v5978_v30 = vadd.f32 %v1368_v36, %v1127_v45  ;;  %v1386_v14 = vpop.f32.mrf.mxu1  ;;  %v4994_v36 = vld [vmem:[#allocation14 + $0x8] sm:$0xff]  }
 0x285   :  { %v1129_v34 = vpop.f32.mrf.mxu0 }
 0x286   :  { %v5980_v52 = vadd.f32 %v1370_v56, %v1129_v34  ;;  %v1388_v10 = vpop.f32.mrf.mxu1  ;;  %v4995_v56 = vld [vmem:[#allocation14 + $0xa0] sm:$0xff]   ;;  %4522 = vmatpush3.bf16.msra.mxu0 %v4994_v36 }
 0x287   :  { %v5982_v16 = vpop.f32.mrf.mxu0  ;;  %4422 = vmatpush3.bf16.msra.mxu1 %v4995_v56  ;;  %4523 = vmatprep.subr.bf16.mxu0 %v4996_v47 }
 0x288   :  { %6814 = vst [vmem:[#allocation49_spill] sm:$0xff] %v5982_v16  ;;  %v1390_v13 = vpop.f32.mrf.mxu1  ;;  %v4997_v16 = vld [vmem:[#allocation14 + $0xd8] sm:$0xff]  }
 0x289   :  { %v1135_v3 = vpop.f32.mrf.mxu0  ;;  %2382 = vmatmul.mubr.bf16.gmra.mxu0 %v5755_v55  ;;  %v4998_v55 = vld [vmem:[#allocation14] sm:$0xff]   ;;  %4423 = vmatprep.subr.bf16.mxu1 %v4997_v16 }
 0x28a   :  { %v5985_v57 = vadd.f32 %v1376_v21, %v1135_v3  ;;  %v1391_v15 = vpop.f32.mrf.mxu1  ;;  %2391 = vmatprep.mubr.bf16.mxu0 %v6811_v60  ;;  %v4999_v3 = vld [vmem:[#allocation14 + $0x98] sm:$0xff]   ;;  %4524 = vmatpush3.bf16.msra.mxu0 %v4998_v55  ;;  %v5002_v55 = vld [vmem:[#allocation14 + $0xc8] sm:$0xff]  }
 0x28b   :  { %v1137_v34 = vpop.f32.mrf.mxu0  ;;  %4424 = vmatpush3.bf16.msra.mxu1 %v4999_v3  ;;  %3844 = vmatprep.subr.bf16.mxu0 %v6811_v60 }
 0x28c   :  { %v5988_v45 = vadd.f32 %v1378_v49, %v1137_v34  ;;  %v1947_v5 = vpop.f32.mrf.mxu1  ;;  %4425 = vmatprep.subr.bf16.mxu1 %v5000_v54 }
 0x28d   :  { %v1139_v13 = vpop.f32.mrf.mxu0 }
 0x28e   :  { %v5990_v8 = vadd.f32 %v1380_v35, %v1139_v13  ;;  %v1949_v21 = vpop.f32.mrf.mxu1  ;;  %v5001_v35 = vld [vmem:[#allocation14 + $0x90] sm:$0xff]  }
 0x28f   :  { %v5992_v15 = vpop.f32.mrf.mxu0  ;;  %4426 = vmatpush3.bf16.msra.mxu1 %v5001_v35 }
 0x290   :  { %6815 = vst [vmem:[#allocation50_spill] sm:$0xff] %v5992_v15  ;;  %v1951_v0 = vpop.f32.mrf.mxu1  ;;  %4427 = vmatprep.subr.bf16.mxu1 %v5002_v55 }
 0x291   :  { %v1145_v49 = vpop.f32.mrf.mxu0  ;;  %2392 = vmatmul.mubr.bf16.gmra.mxu0 %v5770_v51  ;;  %v5003_v51 = vld [vmem:[#allocation14 + $0x88] sm:$0xff]  }
 0x292   :  { %v5996_v36 = vadd.f32 %v1386_v14, %v1145_v49  ;;  %v5998_v56 = vpop.f32.mrf.mxu1  ;;  %2401 = vmatprep.mubr.bf16.mxu0 %v6811_v60  ;;  %v5004_v49 = vld [vmem:[#allocation14 + $0xc0] sm:$0xff]  }
 0x293   :  { %v1147_v34 = vpop.f32.mrf.mxu0  ;;  %4428 = vmatpush3.bf16.msra.mxu1 %v5003_v51 }
 0x294   :  { %v6001_v47 = vadd.f32 %v1388_v10, %v1147_v34  ;;  %v1957_v16 = vpop.f32.mrf.mxu1  ;;  %v5005_v10 = vld [vmem:[#allocation14 + $0x80] sm:$0xff]   ;;  %4429 = vmatprep.subr.bf16.mxu1 %v5004_v49  ;;  %v6817_v49 = vrot.slane %v5764_v38, 2 }
 0x295   :  { %v1149_v13 = vpop.f32.mrf.mxu0 }
 0x296   :  { %v1959_v3 = vpop.f32.mrf.mxu1 }
 0x297   :  { %v1150_v15 = vpop.f32.mrf.mxu0  ;;  %4430 = vmatpush3.bf16.msra.mxu1 %v5005_v10 }
 0x298   :  { %v1961_v43 = vpop.f32.mrf.mxu1 }
 0x299   :  { %v1575_v14 = vpop.f32.mrf.mxu0  ;;  %2402 = vmatmul.mubr.bf16.gmra.mxu0 %v5789_v11 }
 0x29a   :  { %v1702_v18 = vadd.f32 %v1575_v14, %v5852_v46  ;;  %v6005_v1 = vpop.f32.mrf.mxu1  ;;  %2411 = vmatprep.mubr.bf16.mxu0 %v6811_v60 }
 0x29b   :  { %6816 = vst [vmem:[#allocation51_spill] sm:$0xff] %v6005_v1  ;;  %v1577_v54 = vpop.f32.mrf.mxu0 }
 0x29c   :  { %v1703_v35 = vadd.f32 %v1577_v54, %v5857_v42  ;;  %v1967_v34 = vpop.f32.mrf.mxu1  ;;  %v6009_v15 = vadd.f32 %v1947_v5, %v1702_v18 }
 0x29d   :  { %v1579_v13 = vpop.f32.mrf.mxu0 }
 0x29e   :  { %v1704_v55 = vadd.f32 %v1579_v13, %v5859_v62  ;;  %v1969_v11 = vpop.f32.mrf.mxu1  ;;  %v6012_v51 = vadd.f32 %v1949_v21, %v1703_v35 }
 0x29f   :  { %v6014_v46 = vpop.f32.mrf.mxu0 }
 0x2a0   :  { %v1971_v14 = vpop.f32.mrf.mxu1  ;;  %v6016_v1 = vadd.f32 %v1951_v0, %v1704_v55 }
 0x2a1   :  { %v1585_v60 = vpop.f32.mrf.mxu0  ;;  %2412 = vmatmul.mubr.bf16.gmra.mxu0 %v6817_v49 }
 0x2a2   :  { %v1706_v42 = vadd.f32 %v1585_v60, %v5865_v9  ;;  %v6021_v18 = vpop.f32.mrf.mxu1 }
 0x2a3   :  { %6818 = vst [vmem:[#allocation52_spill] sm:$0xff] %v6021_v18  ;;  %v1587_v5 = vpop.f32.mrf.mxu0 }
 0x2a4   :  { %v1707_v10 = vadd.f32 %v1587_v5, %v5870_v20  ;;  %v1977_v62 = vpop.f32.mrf.mxu1  ;;  %v6024_v54 = vadd.f32 %v1957_v16, %v1706_v42 }
 0x2a5   :  { %v1589_v21 = vpop.f32.mrf.mxu0 }
 0x2a6   :  { %v1708_v35 = vadd.f32 %v1589_v21, %v5872_v24  ;;  %v1979_v13 = vpop.f32.mrf.mxu1  ;;  %v6027_v0 = vadd.f32 %v1959_v3, %v1707_v10 }
 0x2a7   :  { %v6029_v55 = vpop.f32.mrf.mxu0 }
 0x2a8   :  { %6819 = vst [vmem:[#allocation53_spill] sm:$0xff] %v6027_v0  ;;  %v1981_v38 = vpop.f32.mrf.mxu1  ;;  %v6031_v49 = vadd.f32 %v1961_v43, %v1708_v35 }
 0x2a9   :  { %v1595_v9 = vpop.f32.mrf.mxu0 }
 0x2aa   :  { %v1710_v60 = vadd.f32 %v1595_v9, %v5877_v6  ;;  %v6034_v18 = vpop.f32.mrf.mxu1 }
 0x2ab   :  { %6820 = vst [vmem:[#allocation54_spill] sm:$0xff] %v6034_v18  ;;  %v1597_v20 = vpop.f32.mrf.mxu0 }
 0x2ac   :  { %v1711_v16 = vadd.f32 %v1597_v20, %v5882_v31  ;;  %v1987_v42 = vpop.f32.mrf.mxu1  ;;  %v6037_v5 = vadd.f32 %v1967_v34, %v1710_v60 }
 0x2ad   :  { %v1599_v24 = vpop.f32.mrf.mxu0 }
 0x2ae   :  { %v1712_v3 = vadd.f32 %v1599_v24, %v5884_v61  ;;  %v1989_v10 = vpop.f32.mrf.mxu1  ;;  %v6040_v21 = vadd.f32 %v1969_v11, %v1711_v16 }
 0x2af   :  { %v6042_v0 = vpop.f32.mrf.mxu0 }
 0x2b0   :  { %6821 = vst [vmem:[#allocation55_spill] sm:$0xff] %v6040_v21  ;;  %v1991_v43 = vpop.f32.mrf.mxu1  ;;  %v6044_v35 = vadd.f32 %v1971_v14, %v1712_v3 }
 0x2b1   :  { %v1605_v6 = vpop.f32.mrf.mxu0 }
 0x2b2   :  { %v1714_v9 = vadd.f32 %v1605_v6, %v5889_v40  ;;  %v6047_v18 = vpop.f32.mrf.mxu1 }
 0x2b3   :  { %6822 = vst [vmem:[#allocation56_spill] sm:$0xff] %v6047_v18  ;;  %v1607_v31 = vpop.f32.mrf.mxu0 }
 0x2b4   :  { %v1715_v34 = vadd.f32 %v1607_v31, %v5894_v27  ;;  %v1997_v60 = vpop.f32.mrf.mxu1  ;;  %v6050_v20 = vadd.f32 %v1977_v62, %v1714_v9 }
 0x2b5   :  { %v1609_v61 = vpop.f32.mrf.mxu0 }
 0x2b6   :  { %v1716_v11 = vadd.f32 %v1609_v61, %v5896_v37  ;;  %v1999_v16 = vpop.f32.mrf.mxu1  ;;  %v6053_v24 = vadd.f32 %v1979_v13, %v1715_v34 }
 0x2b7   :  { %v6055_v21 = vpop.f32.mrf.mxu0 }
 0x2b8   :  { %6823 = vst [vmem:[#allocation57_spill] sm:$0xff] %v6053_v24  ;;  %v2001_v14 = vpop.f32.mrf.mxu1  ;;  %v6057_v3 = vadd.f32 %v1981_v38, %v1716_v11 }
 0x2b9   :  { %v1615_v40 = vpop.f32.mrf.mxu0 }
 0x2ba   :  { %v1718_v6 = vadd.f32 %v1615_v40, %v5901_v19  ;;  %v6060_v18 = vpop.f32.mrf.mxu1 }
 0x2bb   :  { %6824 = vst [vmem:[#allocation58_spill] sm:$0xff] %v6060_v18  ;;  %v1617_v27 = vpop.f32.mrf.mxu0 }
 0x2bc   :  { %v1719_v62 = vadd.f32 %v1617_v27, %v5906_v22  ;;  %v2007_v9 = vpop.f32.mrf.mxu1  ;;  %v6063_v31 = vadd.f32 %v1987_v42, %v1718_v6 }
 0x2bd   :  { %v1619_v37 = vpop.f32.mrf.mxu0 }
 0x2be   :  { %v1720_v13 = vadd.f32 %v1619_v37, %v5908_v53  ;;  %v2009_v34 = vpop.f32.mrf.mxu1  ;;  %v6066_v61 = vadd.f32 %v1989_v10, %v1719_v62 }
 0x2bf   :  { %v6068_v24 = vpop.f32.mrf.mxu0 }
 0x2c0   :  { %6825 = vst [vmem:[#allocation59_spill] sm:$0xff] %v6066_v61  ;;  %v2011_v38 = vpop.f32.mrf.mxu1  ;;  %v6070_v11 = vadd.f32 %v1991_v43, %v1720_v13 }
 0x2c1   :  { %v1625_v19 = vpop.f32.mrf.mxu0 }
 0x2c2   :  { %v1722_v40 = vadd.f32 %v1625_v19, %v5913_v50  ;;  %v6073_v18 = vpop.f32.mrf.mxu1 }
 0x2c3   :  { %6826 = vst [vmem:[#allocation60_spill] sm:$0xff] %v6073_v18  ;;  %v1627_v22 = vpop.f32.mrf.mxu0 }
 0x2c4   :  { %v1723_v42 = vadd.f32 %v1627_v22, %v5918_v39  ;;  %v2017_v6 = vpop.f32.mrf.mxu1  ;;  %v6076_v27 = vadd.f32 %v1997_v60, %v1722_v40 }
 0x2c5   :  { %v1629_v53 = vpop.f32.mrf.mxu0 }
 0x2c6   :  { %v1724_v10 = vadd.f32 %v1629_v53, %v5920_v44  ;;  %v2019_v62 = vpop.f32.mrf.mxu1  ;;  %v6079_v37 = vadd.f32 %v1999_v16, %v1723_v42 }
 0x2c7   :  { %v6081_v61 = vpop.f32.mrf.mxu0 }
 0x2c8   :  { %6827 = vst [vmem:[#allocation61_spill] sm:$0xff] %v6079_v37  ;;  %v2021_v43 = vpop.f32.mrf.mxu1  ;;  %v6083_v13 = vadd.f32 %v2001_v14, %v1724_v10 }
 0x2c9   :  { %v1635_v50 = vpop.f32.mrf.mxu0 }
 0x2ca   :  { %v1726_v19 = vadd.f32 %v1635_v50, %v5925_v29  ;;  %v6086_v18 = vpop.f32.mrf.mxu1 }
 0x2cb   :  { %6828 = vst [vmem:[#allocation62_spill] sm:$0xff] %v6086_v18  ;;  %v1637_v39 = vpop.f32.mrf.mxu0 }
 0x2cc   :  { %v1727_v60 = vadd.f32 %v1637_v39, %v5930_v58  ;;  %v2027_v40 = vpop.f32.mrf.mxu1  ;;  %v6089_v22 = vadd.f32 %v2007_v9, %v1726_v19 }
 0x2cd   :  { %v1639_v44 = vpop.f32.mrf.mxu0 }
 0x2ce   :  { %v1728_v16 = vadd.f32 %v1639_v44, %v5932_v33  ;;  %v2029_v42 = vpop.f32.mrf.mxu1  ;;  %v6092_v53 = vadd.f32 %v2009_v34, %v1727_v60  ;;  %v5006_v33 = vld [vmem:[#allocation14 + $0x178] sm:$0xff]  }
 0x2cf   :  { %v6094_v37 = vpop.f32.mrf.mxu0  ;;  %4603 = vmatprep.subr.bf16.mxu1 %v5006_v33 }
 0x2d0   :  { %6829 = vst [vmem:[#allocation63_spill] sm:$0xff] %v6092_v53  ;;  %v2031_v14 = vpop.f32.mrf.mxu1  ;;  %v6096_v10 = vadd.f32 %v2011_v38, %v1728_v16 }
 0x2d1   :  { %v1645_v29 = vpop.f32.mrf.mxu0 }
 0x2d2   :  { %v1730_v50 = vadd.f32 %v1645_v29, %v5937_v63  ;;  %v6099_v18 = vpop.f32.mrf.mxu1 }
 0x2d3   :  { %6830 = vst [vmem:[#allocation64_spill] sm:$0xff] %v6099_v18  ;;  %v1647_v58 = vpop.f32.mrf.mxu0 }
 0x2d4   :  { %v1731_v9 = vadd.f32 %v1647_v58, %v5942_v28  ;;  %v2037_v19 = vpop.f32.mrf.mxu1  ;;  %v6102_v39 = vadd.f32 %v2017_v6, %v1730_v50 }
 0x2d5   :  { %v1649_v44 = vpop.f32.mrf.mxu0 }
 0x2d6   :  { %6831 = vst [vmem:[#allocation65_spill] sm:$0xff] %v6102_v39  ;;  %v1732_v34 = vadd.f32 %v1649_v44, %v5944_v7  ;;  %v2039_v60 = vpop.f32.mrf.mxu1  ;;  %v6105_v53 = vadd.f32 %v2019_v62, %v1731_v9 }
 0x2d7   :  { %v6107_v38 = vpop.f32.mrf.mxu0 }
 0x2d8   :  { %v2041_v16 = vpop.f32.mrf.mxu1  ;;  %v6109_v63 = vadd.f32 %v2021_v43, %v1732_v34 }
 0x2d9   :  { %v1655_v29 = vpop.f32.mrf.mxu0 }
 0x2da   :  { %v1734_v18 = vadd.f32 %v1655_v29, %v5949_v25  ;;  %v6112_v28 = vpop.f32.mrf.mxu1 }
 0x2db   :  { %6832 = vst [vmem:[#allocation66_spill] sm:$0xff] %v6112_v28  ;;  %v1657_v6 = vpop.f32.mrf.mxu0 }
 0x2dc   :  { %v1735_v50 = vadd.f32 %v1657_v6, %v5954_v4  ;;  %v2047_v58 = vpop.f32.mrf.mxu1  ;;  %v6115_v39 = vadd.f32 %v2027_v40, %v1734_v18 }
 0x2dd   :  { %v1659_v7 = vpop.f32.mrf.mxu0 }
 0x2de   :  { %v1736_v62 = vadd.f32 %v1659_v7, %v5956_v59  ;;  %v2049_v9 = vpop.f32.mrf.mxu1  ;;  %v6118_v33 = vadd.f32 %v2029_v42, %v1735_v50 }
 0x2df   :  { %v6120_v44 = vpop.f32.mrf.mxu0 }
 0x2e0   :  { %6833 = vst [vmem:[#allocation67_spill] sm:$0xff] %v6118_v33  ;;  %v2051_v43 = vpop.f32.mrf.mxu1  ;;  %v6122_v34 = vadd.f32 %v2031_v14, %v1736_v62 }
 0x2e1   :  { %v1665_v25 = vpop.f32.mrf.mxu0 }
 0x2e2   :  { %v1738_v29 = vadd.f32 %v1665_v25, %v5961_v12  ;;  %v6125_v28 = vpop.f32.mrf.mxu1 }
 0x2e3   :  { %6834 = vst [vmem:[#allocation68_spill] sm:$0xff] %v6125_v28  ;;  %v1667_v4 = vpop.f32.mrf.mxu0 }
 0x2e4   :  { %v1739_v18 = vadd.f32 %v1667_v4, %v5966_v32  ;;  %v2057_v40 = vpop.f32.mrf.mxu1  ;;  %v6128_v6 = vadd.f32 %v2037_v19, %v1738_v29 }
 0x2e5   :  { %v1669_v59 = vpop.f32.mrf.mxu0 }
 0x2e6   :  { %v1740_v42 = vadd.f32 %v1669_v59, %v5968_v17  ;;  %v2059_v50 = vpop.f32.mrf.mxu1  ;;  %v6131_v7 = vadd.f32 %v2039_v60, %v1739_v18 }
 0x2e7   :  { %v6133_v33 = vpop.f32.mrf.mxu0 }
 0x2e8   :  { %6835 = vst [vmem:[#allocation69_spill] sm:$0xff] %v6131_v7  ;;  %v2061_v14 = vpop.f32.mrf.mxu1  ;;  %v6135_v62 = vadd.f32 %v2041_v16, %v1740_v42 }
 0x2e9   :  { %v1675_v12 = vpop.f32.mrf.mxu0 }
 0x2ea   :  { %6836 = vst [vmem:[#allocation70_spill] sm:$0xff] %v6135_v62  ;;  %v1742_v25 = vadd.f32 %v1675_v12, %v5973_v41  ;;  %v6138_v28 = vpop.f32.mrf.mxu1 }
 0x2eb   :  { %6837 = vst [vmem:[#allocation71_spill] sm:$0xff] %v6138_v28  ;;  %v1677_v32 = vpop.f32.mrf.mxu0 }
 0x2ec   :  { %v1743_v19 = vadd.f32 %v1677_v32, %v5978_v30  ;;  %v2067_v29 = vpop.f32.mrf.mxu1  ;;  %v6141_v4 = vadd.f32 %v2047_v58, %v1742_v25 }
 0x2ed   :  { %v1679_v17 = vpop.f32.mrf.mxu0 }
 0x2ee   :  { %v1744_v60 = vadd.f32 %v1679_v17, %v5980_v52  ;;  %v2069_v18 = vpop.f32.mrf.mxu1  ;;  %v6144_v59 = vadd.f32 %v2049_v9, %v1743_v19 }
 0x2ef   :  { %v6146_v7 = vpop.f32.mrf.mxu0 }
 0x2f0   :  { %v2071_v16 = vpop.f32.mrf.mxu1  ;;  %v6148_v42 = vadd.f32 %v2051_v43, %v1744_v60 }
 0x2f1   :  { %v1685_v41 = vpop.f32.mrf.mxu0 }
 0x2f2   :  { %v1746_v12 = vadd.f32 %v1685_v41, %v5985_v57  ;;  %v2072_v28 = vpop.f32.mrf.mxu1 }
 0x2f3   :  { %v1687_v62 = vpop.f32.mrf.mxu0 }
 0x2f4   :  { %v1747_v30 = vadd.f32 %v1687_v62, %v5988_v45  ;;  %v6152_v58 = vadd.f32 %v2057_v40, %v1746_v12  ;;  %v2470_v62 = vld [vmem:[#allocation13] sm:$0x3] }
 0x2f5   :  { %v1689_v25 = vpop.f32.mrf.mxu0 }
 0x2f6   :  { %v1748_v52 = vadd.f32 %v1689_v25, %v5990_v8  ;;  %v6155_v32 = vadd.f32 %v2059_v50, %v1747_v30  ;;  %v1273_v8 = vadd.f32 %v5847_v26, %v5861_v48 }
 0x2f7   :  { %v6157_v9 = vpop.f32.mrf.mxu0 }
 0x2f8   :  { %v6159_v19 = vadd.f32 %v2061_v14, %v1748_v52  ;;  %v6838_v14 = vsub.s32 0, %v5552_v2 }
 0x2f9   :  { %v1695_v43 = vpop.f32.mrf.mxu0 }
 0x2fa   :  { %v1750_v17 = vadd.f32 %v1695_v43, %v5996_v36  ;;  %v6171_v41 = vrot.slane %v2470_v62, %v6838_v14  ;;  %v1705_v36 = vadd.f32 %v6014_v46, %v1273_v8  ;;  %v6841_v8 = vld [vmem:[#allocation33_spill] sm:$0xff] }
 0x2fb   :  { %v1697_v60 = vpop.f32.mrf.mxu0 }
 0x2fc   :  { %v1751_v57 = vadd.f32 %v1697_v60, %v6001_v47  ;;  %v6163_v28 = vadd.f32 %v2067_v29, %v1750_v17  ;;  %v6839_v29 = vsub.s32 1, %v5552_v2  ;;  %v2077_v48 = vadd.f32 %v5998_v56, %v1705_v36  ;;  %v6840_v17 = vld [vmem:[#allocation30_spill] sm:$0xff] }
 0x2fd   :  { %v1699_v45 = vpop.f32.mrf.mxu0  ;;  %v1283_v46 = vadd.f32 %v6840_v17, %v5874_v23 }
 0x2fe   :  { %v6165_v40 = vadd.f32 %v2069_v18, %v1751_v57  ;;  %v6177_v30 = vrot.slane %v2470_v62, %v6839_v29 }
 0x2ff   :  { %v1700_v16 = vpop.f32.mrf.mxu0  ;;  %v1709_v45 = vadd.f32 %v6029_v55, %v1283_v46  ;;  %v6844_v55 = vld [vmem:[#allocation51_spill] sm:$0xff] }
 0x301   :  { %v2293_v50 = vpop.f32.mrf.mxu0 }
 0x302   :  { %v2420_v12 = vadd.f32 %v2293_v50, %v6009_v15 }
 0x303   :  { %v2295_v47 = vpop.f32.mrf.mxu0 }
 0x304   :  { %v2421_v18 = vadd.f32 %v2295_v47, %v6012_v51  ;;  %v2482_v52 = vadd.f32 %v6171_v41, %v2420_v12  ;;  %v6843_v47 = vld [vmem:[#allocation53_spill] sm:$0xff] }
 0x305   :  { %v2297_v25 = vpop.f32.mrf.mxu0 }
 0x306   :  { %v2422_v26 = vadd.f32 %v2297_v25, %v6016_v1  ;;  %v2483_v15 = vadd.f32 %v6177_v30, %v2421_v18  ;;  %v2532_v51 = vmax.f32 %v2482_v52, 0.0  ;;  %v6842_v1 = vld [vmem:[#allocation31_spill] sm:$0xff]  ;;  %v2081_v52 = vadd.f32 %v6844_v55, %v1709_v45 }
 0x307   :  { %v2299_v43 = vpop.f32.mrf.mxu0  ;;  %v1293_v50 = vadd.f32 %v6842_v1, %v6841_v8 }
 0x308   :  { %v2484_v60 = vadd.f32 %v6171_v41, %v2422_v26  ;;  %v2423_v2 = vadd.f32 %v2299_v43, %v2077_v48  ;;  %v2533_v36 = vmax.f32 %v2483_v15, 0.0 }
 0x309   :  { %v2303_v57 = vpop.f32.mrf.mxu0  ;;  %v1713_v25 = vadd.f32 %v6042_v0, %v1293_v50 }
 0x30a   :  { %v2534_v62 = vmax.f32 %v2484_v60, 0.0  ;;  %v2485_v16 = vadd.f32 %v6177_v30, %v2423_v2  ;;  %v2424_v56 = vadd.f32 %v2303_v57, %v6024_v54  ;;  %v6845_v57 = vld [vmem:[#allocation35_spill] sm:$0xff] }
 0x30b   :  { %v2305_v14 = vpop.f32.mrf.mxu0 }
 0x30c   :  { %v2582_v23 = vpack.c.bf16 %v2534_v62, %v2532_v51  ;;  %v2535_v12 = vmax.f32 %v2485_v16, 0.0  ;;  %v2425_v29 = vadd.f32 %v2305_v14, %v6843_v47  ;;  %v2486_v43 = vadd.f32 %v6171_v41, %v2424_v56  ;;  %v6846_v51 = vld [vmem:[#allocation32_spill] sm:$0xff] }
 0x30d   :  { %v2307_v18 = vpop.f32.mrf.mxu0  ;;  %v1303_v0 = vadd.f32 %v6846_v51, %v6845_v57  ;;  %v6847_v16 = vld [vmem:[#allocation52_spill] sm:$0xff] }
 0x30e   :  { %v2583_v26 = vpack.c.bf16 %v2535_v12, %v2533_v36  ;;  %v2675_v48 = vshll.u32 %v2582_v23, 16  ;;  %v2426_v17 = vadd.f32 %v2307_v18, %v6031_v49  ;;  %v2487_v54 = vadd.f32 %v6177_v30, %v2425_v29  ;;  %v6848_v29 = vld [vmem:[#allocation55_spill] sm:$0xff] }
 0x30f   :  { %v2309_v46 = vpop.f32.mrf.mxu0  ;;  %v2085_v8 = vadd.f32 %v6847_v16, %v1713_v25  ;;  %v2536_v49 = vmax.f32 %v2486_v43, 0.0  ;;  %v1717_v36 = vadd.f32 %v6055_v21, %v1303_v0  ;;  %v2673_v55 = vshrl.u32 %v2582_v23, 16 }
 0x310   :  { %v2427_v60 = vadd.f32 %v2309_v46, %v2081_v52  ;;  %3264 = vmatprep.mubr.bf16.mxu0 %v2583_v26  ;;  %v2488_v15 = vadd.f32 %v6171_v41, %v2426_v17  ;;  %v2677_v1 = vrot.slane %v2675_v48, 1  ;;  %v2687_v14 = vshll.u32 %v2583_v26, 16 }
 0x311   :  { %v2313_v2 = vpop.f32.mrf.mxu0  ;;  %3265 = vmatmul.mubr.bf16.vlgmr.msra.gmra.mxu0 %v2582_v23  ;;  %v2537_v12 = vmax.f32 %v2487_v54, 0.0  ;;  %v2685_v48 = vshrl.u32 %v2583_v26, 16  ;;  %v3429_v43 = vrot.slane %v2583_v26, 1 }
 0x312   :  { %v2489_v62 = vadd.f32 %v6177_v30, %v2427_v60  ;;  %v2428_v45 = vadd.f32 %v2313_v2, %v6037_v5  ;;  %v2538_v50 = vmax.f32 %v2488_v15, 0.0  ;;  %v3426_v5 = vrot.slane %v2582_v23, 1 }
 0x313   :  { %v2315_v56 = vpop.f32.mrf.mxu0  ;;  %v2689_v54 = vrot.slane %v2687_v14, 1  ;;  %v2678_v2 = vor.u32 %v2677_v1, %v2673_v55  ;;  %v6849_v14 = vld [vmem:[#allocation37_spill] sm:$0xff] }
 0x314   :  { %v2539_v47 = vmax.f32 %v2489_v62, 0.0  ;;  %v2429_v18 = vadd.f32 %v2315_v56, %v6848_v29  ;;  %v6206_v52 = vpack.c.bf16 %v2538_v50, %v2536_v49  ;;  %v2490_v17 = vadd.f32 %v6171_v41, %v2428_v45 }
 0x315   :  { %v2317_v46 = vpop.f32.mrf.mxu0 }
 0x316   :  { %v6209_v60 = vpack.c.bf16 %v2539_v47, %v2537_v12  ;;  %v2430_v25 = vadd.f32 %v2317_v46, %v6044_v35  ;;  %v2680_v15 = vshll.u32 %v6206_v52, 16  ;;  %v3427_v57 = vrot.slane %v6206_v52, 1  ;;  %v6850_v12 = vld [vmem:[#allocation34_spill] sm:$0xff] }
 0x317   :  { %v2319_v21 = vpop.f32.mrf.mxu0  ;;  %v2491_v51 = vadd.f32 %v6177_v30, %v2429_v18  ;;  %v2540_v45 = vmax.f32 %v2490_v17, 0.0  ;;  %v1313_v47 = vadd.f32 %v6850_v12, %v6849_v14  ;;  %v2690_v18 = vor.u32 %v2689_v54, %v2685_v48  ;;  %v5008_v48 = vld [vmem:[#allocation14 + $0x170] sm:$0xff]  }
 0x318   :  { %v2492_v0 = vadd.f32 %v6171_v41, %v2430_v25  ;;  %v2431_v62 = vadd.f32 %v2319_v21, %v2085_v8  ;;  %3272 = vmatprep.mubr.bf16.mxu0 %v6209_v60  ;;  %v2692_v23 = vshll.u32 %v6209_v60, 16  ;;  %v2682_v26 = vrot.slane %v2680_v15, 1  ;;  %v6851_v15 = vld [vmem:[#allocation57_spill] sm:$0xff] }
 0x319   :  { %v2323_v35 = vpop.f32.mrf.mxu0  ;;  %3273 = vmatmul.mubr.bf16.gmra.mxu0 %v6206_v52  ;;  %v3430_v16 = vrot.slane %v6209_v60, 1  ;;  %v6221_v1 = vsel %vm1422_vm6, %v3426_v5, %v3427_v57  ;;  %v2541_v46 = vmax.f32 %v2491_v51, 0.0  ;;  %v1721_v54 = vadd.f32 %v6068_v24, %v1313_v47  ;;  %v6852_v51 = vld [vmem:[#allocation54_spill] sm:$0xff] }
 0x31a   :  { %v2542_v49 = vmax.f32 %v2492_v0, 0.0  ;;  %v2493_v50 = vadd.f32 %v6177_v30, %v2431_v62  ;;  %v2432_v56 = vadd.f32 %v2323_v35, %v6050_v20  ;;  %v2694_v8 = vrot.slane %v2692_v23, 1  ;;  %v5007_v0 = vld [vmem:[#allocation14 + $0x138] sm:$0xff]  }
 0x31b   :  { %v2325_v29 = vpop.f32.mrf.mxu0  ;;  %v2683_v55 = vsel %vm794_vm4, %v2678_v2, %v2682_v26  ;;  %v6229_v17 = vsel %vm1422_vm6, %v3429_v43, %v3430_v16  ;;  %v2696_v35 = vshrl.u32 %v6206_v52, 16 }
 0x31c   :  { %v6231_v25 = vpack.c.bf16 %v2542_v49, %v2540_v45  ;;  %v2543_v5 = vmax.f32 %v2493_v50, 0.0  ;;  %v2433_v21 = vadd.f32 %v2325_v29, %v6851_v15  ;;  %v2494_v20 = vadd.f32 %v6171_v41, %v2432_v56 }
 0x31d   :  { %v2327_v62 = vpop.f32.mrf.mxu0  ;;  %v2695_v23 = vsel %vm794_vm4, %v2690_v18, %v2694_v8  ;;  %v2089_v45 = vadd.f32 %v6852_v51, %v1717_v36  ;;  %v2704_v50 = vshrl.u32 %v6209_v60, 16  ;;  %v2698_v56 = vor.u32 %v2696_v35, %v2682_v26  ;;  %v5009_v36 = vld [vmem:[#allocation14 + $0x130] sm:$0xff]   ;;  %v5010_v26 = vld [vmem:[#allocation14 + $0x168] sm:$0xff]  }
 0x31e   :  { %v6238_v2 = vpack.c.bf16 %v2543_v5, %v2541_v46  ;;  %v2434_v43 = vadd.f32 %v2327_v62, %v6057_v3  ;;  %3032 = vmatprep.mubr.bf16.mxu1 %v2695_v23  ;;  %v2700_v14 = vshll.u32 %v6231_v25, 16  ;;  %v3432_v12 = vrot.slane %v6231_v25, 1  ;;  %v6854_v62 = vld [vmem:[#allocation36_spill] sm:$0xff] }
 0x31f   :  { %3033 = vmatmul.mubr.bf16.vlgmr.msra.gmra.mxu1 %v2683_v55  ;;  %v2329_v49 = vpop.f32.mrf.mxu0  ;;  %v2495_v52 = vadd.f32 %v6177_v30, %v2433_v21  ;;  %v2544_v29 = vmax.f32 %v2494_v20, 0.0  ;;  %v6853_v20 = vld [vmem:[#allocation39_spill] sm:$0xff] }
 0x320   :  { %v2496_v24 = vadd.f32 %v6171_v41, %v2434_v43  ;;  %v2435_v47 = vadd.f32 %v2329_v49, %v2089_v45  ;;  %3280 = vmatprep.mubr.bf16.mxu0 %v6238_v2  ;;  %v2708_v3 = vshll.u32 %v6238_v2, 16  ;;  %4604 = vmatpush3.bf16.msra.mxu1 %v5007_v0  ;;  %v2702_v60 = vrot.slane %v2700_v14, 1  ;;  %v6855_v14 = vld [vmem:[#allocation59_spill] sm:$0xff] }
 0x321   :  { %v2333_v18 = vpop.f32.mrf.mxu0  ;;  %3281 = vmatmul.mubr.bf16.gmra.mxu0 %v6231_v25  ;;  %4605 = vmatprep.subr.bf16.mxu1 %v5008_v48  ;;  %v3434_v55 = vrot.slane %v6238_v2, 1  ;;  %v6254_v46 = vsel %vm1422_vm6, %v3427_v57, %v3432_v12  ;;  %v1323_v23 = vadd.f32 %v6854_v62, %v6853_v20  ;;  %v2706_v43 = vor.u32 %v2704_v50, %v2694_v8  ;;  %v5012_v50 = vld [vmem:[#allocation14 + $0x160] sm:$0xff]  }
 0x322   :  { %v2546_v5 = vmax.f32 %v2496_v24, 0.0  ;;  %v2497_v15 = vadd.f32 %v6177_v30, %v2435_v47  ;;  %v2436_v21 = vadd.f32 %v2333_v18, %v6063_v31  ;;  %v2710_v0 = vrot.slane %v2708_v3, 1  ;;  %v5011_v47 = vld [vmem:[#allocation14 + $0x128] sm:$0xff]  }
 0x323   :  { %v2335_v35 = vpop.f32.mrf.mxu0  ;;  %v2703_v48 = vsel %vm794_vm4, %v2698_v56, %v2702_v60  ;;  %v6262_v51 = vsel %vm1422_vm6, %v3430_v16, %v3434_v55  ;;  %v2545_v45 = vmax.f32 %v2495_v52, 0.0  ;;  %v2712_v8 = vshrl.u32 %v6231_v25, 16 }
 0x324   :  { %v6264_v49 = vpack.c.bf16 %v2546_v5, %v2544_v29  ;;  %v2547_v57 = vmax.f32 %v2497_v15, 0.0  ;;  %v2437_v24 = vadd.f32 %v2335_v35, %v6855_v14  ;;  %4606 = vmatpush3.bf16.msra.mxu1 %v5009_v36  ;;  %v2498_v31 = vadd.f32 %v6171_v41, %v2436_v21  ;;  %v6856_v29 = vld [vmem:[#allocation56_spill] sm:$0xff] }
 0x325   :  { %v2337_v3 = vpop.f32.mrf.mxu0  ;;  %v2711_v18 = vsel %vm794_vm4, %v2706_v43, %v2710_v0  ;;  %4607 = vmatprep.subr.bf16.mxu1 %v5010_v26  ;;  %v1725_v16 = vadd.f32 %v6081_v61, %v1323_v23  ;;  %v2093_v5 = vadd.f32 %v6856_v29, %v1721_v54  ;;  %v2720_v15 = vshrl.u32 %v6238_v2, 16  ;;  %v5013_v54 = vld [vmem:[#allocation14 + $0x120] sm:$0xff]  }
 0x326   :  { %v6271_v56 = vpack.c.bf16 %v2547_v57, %v2545_v45  ;;  %v2438_v52 = vadd.f32 %v2337_v3, %v6070_v11  ;;  %3040 = vmatprep.mubr.bf16.mxu1 %v2711_v18  ;;  %v2714_v21 = vor.u32 %v2712_v8, %v2702_v60  ;;  %v2716_v20 = vshll.u32 %v6264_v49, 16  ;;  %v5014_v60 = vld [vmem:[#allocation14 + $0x158] sm:$0xff]   ;;  %v6858_v3 = vld [vmem:[#allocation38_spill] sm:$0xff] }
 0x327   :  { %3041 = vmatmul.mubr.bf16.gmra.mxu1 %v2703_v48  ;;  %v2339_v36 = vpop.f32.mrf.mxu0  ;;  %v3436_v62 = vrot.slane %v6264_v49, 1  ;;  %v2499_v26 = vadd.f32 %v6177_v30, %v2437_v24  ;;  %v2548_v35 = vmax.f32 %v2498_v31, 0.0  ;;  %v6857_v31 = vld [vmem:[#allocation41_spill] sm:$0xff] }
 0x328   :  { %v2500_v61 = vadd.f32 %v6171_v41, %v2438_v52  ;;  %v2439_v23 = vadd.f32 %v2339_v36, %v2093_v5  ;;  %3288 = vmatprep.mubr.bf16.mxu0 %v6271_v56  ;;  %v2724_v11 = vshll.u32 %v6271_v56, 16  ;;  %4608 = vmatpush3.bf16.msra.mxu1 %v5011_v47  ;;  %v2718_v2 = vrot.slane %v2716_v20, 1  ;;  %v6859_v36 = vld [vmem:[#allocation61_spill] sm:$0xff] }
 0x329   :  { %v2343_v43 = vpop.f32.mrf.mxu0  ;;  %3289 = vmatmul.mubr.bf16.gmra.mxu0 %v6264_v49  ;;  %4609 = vmatprep.subr.bf16.mxu1 %v5012_v50  ;;  %v3438_v48 = vrot.slane %v6271_v56, 1  ;;  %v6289_v45 = vsel %vm1422_vm6, %v3432_v12, %v3436_v62  ;;  %v1333_v18 = vadd.f32 %v6858_v3, %v6857_v31  ;;  %v2722_v50 = vor.u32 %v2720_v15, %v2710_v0  ;;  %v5016_v15 = vld [vmem:[#allocation14 + $0x150] sm:$0xff]  }
 0x32a   :  { %v2550_v57 = vmax.f32 %v2500_v61, 0.0  ;;  %v2501_v14 = vadd.f32 %v6177_v30, %v2439_v23  ;;  %v2440_v24 = vadd.f32 %v2343_v43, %v6076_v27  ;;  %v2726_v47 = vrot.slane %v2724_v11, 1  ;;  %v5015_v61 = vld [vmem:[#allocation14 + $0x118] sm:$0xff]  }
 0x32b   :  { %v2345_v8 = vpop.f32.mrf.mxu0  ;;  %v2719_v52 = vsel %vm794_vm4, %v2714_v21, %v2718_v2  ;;  %v6297_v29 = vsel %vm1422_vm6, %v3434_v55, %v3438_v48  ;;  %v2549_v25 = vmax.f32 %v2499_v26, 0.0  ;;  %v2728_v0 = vshrl.u32 %v6264_v49, 16 }
 0x32c   :  { %v6299_v5 = vpack.c.bf16 %v2550_v57, %v2548_v35  ;;  %v2551_v12 = vmax.f32 %v2501_v14, 0.0  ;;  %v2441_v20 = vadd.f32 %v2345_v8, %v6859_v36  ;;  %4610 = vmatpush3.bf16.msra.mxu1 %v5013_v54  ;;  %v2502_v27 = vadd.f32 %v6171_v41, %v2440_v24  ;;  %v6860_v35 = vld [vmem:[#allocation58_spill] sm:$0xff] }
 0x32d   :  { %v2347_v23 = vpop.f32.mrf.mxu0  ;;  %v2727_v11 = vsel %vm794_vm4, %v2722_v50, %v2726_v47  ;;  %4611 = vmatprep.subr.bf16.mxu1 %v5014_v60  ;;  %v1729_v55 = vadd.f32 %v6094_v37, %v1333_v18  ;;  %v2097_v43 = vadd.f32 %v6860_v35, %v1725_v16  ;;  %v2736_v57 = vshrl.u32 %v6271_v56, 16  ;;  %v5017_v16 = vld [vmem:[#allocation14 + $0x110] sm:$0xff]  }
 0x32e   :  { %v6306_v21 = vpack.c.bf16 %v2551_v12, %v2549_v25  ;;  %v2442_v26 = vadd.f32 %v2347_v23, %v6083_v13  ;;  %3048 = vmatprep.mubr.bf16.mxu1 %v2727_v11  ;;  %v2730_v14 = vor.u32 %v2728_v0, %v2718_v2  ;;  %v2732_v24 = vshll.u32 %v6299_v5, 16  ;;  %v5018_v2 = vld [vmem:[#allocation14 + $0x148] sm:$0xff]  }
 0x32f   :  { %3049 = vmatmul.mubr.bf16.gmra.mxu1 %v2719_v52  ;;  %v2349_v54 = vpop.f32.mrf.mxu0  ;;  %v3440_v31 = vrot.slane %v6299_v5, 1  ;;  %v2503_v60 = vadd.f32 %v6177_v30, %v2441_v20  ;;  %v2552_v18 = vmax.f32 %v2502_v27, 0.0  ;;  %v6862_v27 = vld [vmem:[#allocation40_spill] sm:$0xff]  ;;  %v2738_v0 = vor.u32 %v2736_v57, %v2726_v47  ;;  %v5020_v57 = vld [vmem:[#allocation14 + $0x140] sm:$0xff]  }
 0x330   :  { %v2504_v37 = vadd.f32 %v6171_v41, %v2442_v26  ;;  %v2443_v3 = vadd.f32 %v2349_v54, %v2097_v43  ;;  %3296 = vmatprep.mubr.bf16.mxu0 %v6306_v21  ;;  %v2740_v13 = vshll.u32 %v6306_v21, 16  ;;  %4612 = vmatpush3.bf16.msra.mxu1 %v5015_v61  ;;  %v2734_v56 = vrot.slane %v2732_v24, 1  ;;  %v6861_v61 = vld [vmem:[#allocation43_spill] sm:$0xff] }
 0x331   :  { %v2353_v8 = vpop.f32.mrf.mxu0  ;;  %3297 = vmatmul.mubr.bf16.gmra.mxu0 %v6299_v5  ;;  %4613 = vmatprep.subr.bf16.mxu1 %v5016_v15  ;;  %v3442_v50 = vrot.slane %v6306_v21, 1  ;;  %v6322_v52 = vsel %vm1422_vm6, %v3436_v62, %v3440_v31  ;;  %v1343_v23 = vadd.f32 %v6862_v27, %v6861_v61  ;;  %v2553_v49 = vmax.f32 %v2503_v60, 0.0  ;;  %v6863_v43 = vld [vmem:[#allocation63_spill] sm:$0xff] }
 0x332   :  { %v2554_v25 = vmax.f32 %v2504_v37, 0.0  ;;  %v2505_v12 = vadd.f32 %v6177_v30, %v2443_v3  ;;  %v2444_v36 = vadd.f32 %v2353_v8, %v6089_v22  ;;  %v2742_v20 = vrot.slane %v2740_v13, 1  ;;  %v5019_v24 = vld [vmem:[#allocation14 + $0x108] sm:$0xff]   ;;  %v6864_v13 = vld [vmem:[#allocation60_spill] sm:$0xff] }
 0x333   :  { %v2355_v11 = vpop.f32.mrf.mxu0  ;;  %v2735_v15 = vsel %vm794_vm4, %v2730_v14, %v2734_v56  ;;  %v6330_v26 = vsel %vm1422_vm6, %v3438_v48, %v3442_v50  ;;  %v2744_v47 = vshrl.u32 %v6299_v5, 16  ;;  %v1733_v48 = vadd.f32 %v6107_v38, %v1343_v23 }
 0x334   :  { %v6332_v35 = vpack.c.bf16 %v2554_v25, %v2552_v18  ;;  %v2555_v62 = vmax.f32 %v2505_v12, 0.0  ;;  %v2445_v54 = vadd.f32 %v2355_v11, %v6863_v43  ;;  %4614 = vmatpush3.bf16.msra.mxu1 %v5017_v16  ;;  %v2506_v22 = vadd.f32 %v6171_v41, %v2444_v36  ;;  %v6866_v43 = vld [vmem:[#allocation45_spill] sm:$0xff] }
 0x335   :  { %v2357_v37 = vpop.f32.mrf.mxu0  ;;  %v2743_v3 = vsel %vm794_vm4, %v2738_v0, %v2742_v20  ;;  %4615 = vmatprep.subr.bf16.mxu1 %v5018_v2  ;;  %v2101_v18 = vadd.f32 %v6864_v13, %v1729_v55  ;;  %v2752_v8 = vshrl.u32 %v6306_v21, 16  ;;  %v2746_v25 = vor.u32 %v2744_v47, %v2734_v56  ;;  %v5021_v55 = vld [vmem:[#allocation14 + $0x100] sm:$0xff]  }
 0x336   :  { %v6339_v14 = vpack.c.bf16 %v2555_v62, %v2553_v49  ;;  %v2446_v60 = vadd.f32 %v2357_v37, %v6096_v10  ;;  %3056 = vmatprep.mubr.bf16.mxu1 %v2743_v3  ;;  %v2748_v12 = vshll.u32 %v6332_v35, 16  ;;  %v3444_v5 = vrot.slane %v6332_v35, 1 }
 0x337   :  { %3057 = vmatmul.mubr.bf16.gmra.mxu1 %v2735_v15  ;;  %v2359_v16 = vpop.f32.mrf.mxu0  ;;  %v2507_v2 = vadd.f32 %v6177_v30, %v2445_v54  ;;  %v2556_v61 = vmax.f32 %v2506_v22, 0.0  ;;  %v6865_v15 = vld [vmem:[#allocation65_spill] sm:$0xff]  ;;  %v6867_v54 = vld [vmem:[#allocation42_spill] sm:$0xff]  ;;  %v2754_v37 = vor.u32 %v2752_v8, %v2742_v20 }
 0x338   :  { %v2508_v38 = vadd.f32 %v6171_v41, %v2446_v60  ;;  %v2447_v36 = vadd.f32 %v2359_v16, %v2101_v18  ;;  %3304 = vmatprep.mubr.bf16.mxu0 %v6339_v14  ;;  %v2756_v10 = vshll.u32 %v6339_v14, 16  ;;  %4616 = vmatpush3.bf16.msra.mxu1 %v5019_v24  ;;  %v2750_v21 = vrot.slane %v2748_v12, 1 }
 0x339   :  { %v2363_v27 = vpop.f32.mrf.mxu0  ;;  %3305 = vmatmul.mubr.bf16.gmra.mxu0 %v6332_v35  ;;  %4617 = vmatprep.subr.bf16.mxu1 %v5020_v57  ;;  %v3446_v56 = vrot.slane %v6339_v14, 1  ;;  %v6353_v23 = vsel %vm1422_vm6, %v3440_v31, %v3444_v5  ;;  %v1353_v24 = vadd.f32 %v6867_v54, %v6866_v43  ;;  %v2557_v57 = vmax.f32 %v2507_v2, 0.0 }
 0x33a   :  { %v2558_v11 = vmax.f32 %v2508_v38, 0.0  ;;  %v2509_v0 = vadd.f32 %v6177_v30, %v2447_v36  ;;  %v2448_v49 = vadd.f32 %v2363_v27, %v6865_v15  ;;  %v2758_v62 = vrot.slane %v2756_v10, 1 }
 0x33b   :  { %v2365_v22 = vpop.f32.mrf.mxu0  ;;  %v2751_v3 = vsel %vm794_vm4, %v2746_v25, %v2750_v21  ;;  %v6361_v47 = vsel %vm1422_vm6, %v3442_v50, %v3446_v56  ;;  %v2760_v38 = vshrl.u32 %v6332_v35, 16  ;;  %v1737_v20 = vadd.f32 %v6120_v44, %v1353_v24  ;;  %v6868_v25 = vld [vmem:[#allocation62_spill] sm:$0xff]  ;;  %v6869_v24 = vld [vmem:[#allocation47_spill] sm:$0xff] }
 0x33c   :  { %v6363_v60 = vpack.c.bf16 %v2558_v11, %v2556_v61  ;;  %v2559_v31 = vmax.f32 %v2509_v0, 0.0  ;;  %v2449_v13 = vadd.f32 %v2365_v22, %v6105_v53  ;;  %4618 = vmatpush3.bf16.msra.mxu1 %v5021_v55  ;;  %v2510_v18 = vadd.f32 %v6171_v41, %v2448_v49  ;;  %v6870_v22 = vld [vmem:[#allocation44_spill] sm:$0xff] }
 0x33d   :  { %v2367_v16 = vpop.f32.mrf.mxu0  ;;  %v2759_v12 = vsel %vm794_vm4, %v2754_v37, %v2758_v62  ;;  %v2105_v2 = vadd.f32 %v6868_v25, %v1733_v48  ;;  %v2768_v53 = vshrl.u32 %v6339_v14, 16  ;;  %v2762_v10 = vor.u32 %v2760_v38, %v2750_v21 }
 0x33e   :  { %v6370_v8 = vpack.c.bf16 %v2559_v31, %v2557_v57  ;;  %v2450_v50 = vadd.f32 %v2367_v16, %v6109_v63  ;;  %3064 = vmatprep.mubr.bf16.mxu1 %v2759_v12  ;;  %v2764_v55 = vshll.u32 %v6363_v60, 16  ;;  %v3448_v61 = vrot.slane %v6363_v60, 1  ;;  %v6871_v12 = vld [vmem:[#allocation67_spill] sm:$0xff] }
 0x33f   :  { %3065 = vmatmul.mubr.bf16.gmra.mxu1 %v2751_v3  ;;  %v2369_v36 = vpop.f32.mrf.mxu0  ;;  %v2511_v35 = vadd.f32 %v6177_v30, %v2449_v13  ;;  %v2560_v11 = vmax.f32 %v2510_v18, 0.0  ;;  %v1363_v37 = vadd.f32 %v6870_v22, %v6869_v24  ;;  %v2770_v57 = vor.u32 %v2768_v53, %v2758_v62  ;;  %v6872_v53 = vld [vmem:[#allocation64_spill] sm:$0xff] }
 0x340   :  { %v2512_v44 = vadd.f32 %v6171_v41, %v2450_v50  ;;  %v2451_v27 = vadd.f32 %v2369_v36, %v2105_v2  ;;  %3312 = vmatprep.mubr.bf16.mxu0 %v6370_v8  ;;  %v2772_v63 = vshll.u32 %v6370_v8, 16  ;;  %v2766_v0 = vrot.slane %v2764_v55, 1 }
 0x341   :  { %v2373_v48 = vpop.f32.mrf.mxu0  ;;  %3313 = vmatmul.mubr.bf16.gmra.mxu0 %v6363_v60  ;;  %v3450_v14 = vrot.slane %v6370_v8, 1  ;;  %v6384_v21 = vsel %vm1422_vm6, %v3444_v5, %v3448_v61  ;;  %v2561_v18 = vmax.f32 %v2511_v35, 0.0  ;;  %v2776_v2 = vshrl.u32 %v6363_v60, 16 }
 0x342   :  { %v2562_v15 = vmax.f32 %v2512_v44, 0.0  ;;  %v2513_v49 = vadd.f32 %v6177_v30, %v2451_v27  ;;  %v2452_v43 = vadd.f32 %v2373_v48, %v6115_v39  ;;  %v2774_v54 = vrot.slane %v2772_v63, 1 }
 0x343   :  { %v2375_v3 = vpop.f32.mrf.mxu0  ;;  %v2767_v31 = vsel %vm794_vm4, %v2762_v10, %v2766_v0  ;;  %v6392_v13 = vsel %vm1422_vm6, %v3446_v56, %v3450_v14  ;;  %v1741_v62 = vadd.f32 %v6133_v33, %v1363_v37  ;;  %v2109_v10 = vadd.f32 %v6872_v53, %v1737_v20  ;;  %v6873_v37 = vld [vmem:[#allocation49_spill] sm:$0xff] }
 0x344   :  { %v6394_v16 = vpack.c.bf16 %v2562_v15, %v2560_v11  ;;  %v2563_v5 = vmax.f32 %v2513_v49, 0.0  ;;  %v2453_v38 = vadd.f32 %v2375_v3, %v6871_v12  ;;  %v2514_v50 = vadd.f32 %v6171_v41, %v2452_v43  ;;  %v6874_v3 = vld [vmem:[#allocation46_spill] sm:$0xff] }
 0x345   :  { %v2377_v39 = vpop.f32.mrf.mxu0  ;;  %v2775_v25 = vsel %vm794_vm4, %v2770_v57, %v2774_v54  ;;  %v2784_v35 = vshrl.u32 %v6370_v8, 16  ;;  %v2778_v44 = vor.u32 %v2776_v2, %v2766_v0  ;;  %v1373_v57 = vadd.f32 %v6874_v3, %v6873_v37 }
 0x346   :  { %v6401_v36 = vpack.c.bf16 %v2563_v5, %v2561_v18  ;;  %v2454_v56 = vadd.f32 %v2377_v39, %v6122_v34  ;;  %3072 = vmatprep.mubr.bf16.mxu1 %v2775_v25  ;;  %v2780_v27 = vshll.u32 %v6394_v16, 16  ;;  %v3452_v63 = vrot.slane %v6394_v16, 1  ;;  %v6875_v39 = vld [vmem:[#allocation69_spill] sm:$0xff] }
 0x347   :  { %3073 = vmatmul.mubr.bf16.gmra.mxu1 %v2767_v31  ;;  %v2379_v55 = vpop.f32.mrf.mxu0  ;;  %v2515_v60 = vadd.f32 %v6177_v30, %v2453_v38  ;;  %v2564_v48 = vmax.f32 %v2514_v50, 0.0  ;;  %v2786_v18 = vor.u32 %v2784_v35, %v2774_v54  ;;  %v2792_v53 = vshrl.u32 %v6394_v16, 16  ;;  %v6877_v35 = vld [vmem:[#allocation66_spill] sm:$0xff] }
 0x348   :  { %v2516_v33 = vadd.f32 %v6171_v41, %v2454_v56  ;;  %v2455_v11 = vadd.f32 %v2379_v55, %v2109_v10  ;;  %3320 = vmatprep.mubr.bf16.mxu0 %v6401_v36  ;;  %v2788_v34 = vshll.u32 %v6401_v36, 16  ;;  %v2782_v15 = vrot.slane %v2780_v27, 1  ;;  %v6876_v55 = vld [vmem:[#allocation70_spill] sm:$0xff] }
 0x349   :  { %v2383_v20 = vpop.f32.mrf.mxu0  ;;  %3321 = vmatmul.mubr.bf16.gmra.mxu0 %v6394_v16  ;;  %v3454_v8 = vrot.slane %v6401_v36, 1  ;;  %v6415_v0 = vsel %vm1422_vm6, %v3448_v61, %v3452_v63  ;;  %v2565_v38 = vmax.f32 %v2515_v60, 0.0  ;;  %v1745_v54 = vadd.f32 %v6146_v7, %v1373_v57 }
 0x34a   :  { %v2566_v49 = vmax.f32 %v2516_v33, 0.0  ;;  %v2517_v43 = vadd.f32 %v6177_v30, %v2455_v11  ;;  %v2456_v24 = vadd.f32 %v2383_v20, %v6128_v6  ;;  %v2790_v22 = vrot.slane %v2788_v34, 1 }
 0x34b   :  { %v2385_v31 = vpop.f32.mrf.mxu0  ;;  %v2783_v5 = vsel %vm794_vm4, %v2778_v44, %v2782_v15  ;;  %v6423_v12 = vsel %vm1422_vm6, %v3450_v14, %v3454_v8  ;;  %v2113_v44 = vadd.f32 %v6877_v35, %v1741_v62  ;;  %v2800_v60 = vshrl.u32 %v6401_v36, 16 }
 0x34c   :  { %v6425_v50 = vpack.c.bf16 %v2566_v49, %v2564_v48  ;;  %v2567_v61 = vmax.f32 %v2517_v43, 0.0  ;;  %v2457_v25 = vadd.f32 %v2385_v31, %v6875_v39  ;;  %v2518_v2 = vadd.f32 %v6171_v41, %v2456_v24  ;;  %v6878_v31 = vld [vmem:[#allocation50_spill] sm:$0xff] }
 0x34d   :  { %v2387_v6 = vpop.f32.mrf.mxu0  ;;  %v2791_v56 = vsel %vm794_vm4, %v2786_v18, %v2790_v22  ;;  %v2794_v33 = vor.u32 %v2792_v53, %v2782_v15  ;;  %v6879_v18 = vld [vmem:[#allocation48_spill] sm:$0xff] }
 0x34e   :  { %v6432_v10 = vpack.c.bf16 %v2567_v61, %v2565_v38  ;;  %v2458_v14 = vadd.f32 %v2387_v6, %v6876_v55  ;;  %3080 = vmatprep.mubr.bf16.mxu1 %v2791_v56  ;;  %v2796_v11 = vshll.u32 %v6425_v50, 16  ;;  %v3456_v34 = vrot.slane %v6425_v50, 1 }
 0x34f   :  { %3081 = vmatmul.mubr.bf16.gmra.mxu1 %v2783_v5  ;;  %v2389_v27 = vpop.f32.mrf.mxu0  ;;  %v2519_v16 = vadd.f32 %v6177_v30, %v2457_v25  ;;  %v2568_v49 = vmax.f32 %v2518_v2, 0.0  ;;  %v1383_v5 = vadd.f32 %v6879_v18, %v6878_v31  ;;  %v2802_v61 = vor.u32 %v2800_v60, %v2790_v22 }
 0x350   :  { %v2520_v7 = vadd.f32 %v6171_v41, %v2458_v14  ;;  %v2459_v48 = vadd.f32 %v2389_v27, %v2113_v44  ;;  %3328 = vmatprep.mubr.bf16.mxu0 %v6432_v10  ;;  %v2804_v20 = vshll.u32 %v6432_v10, 16  ;;  %v2798_v43 = vrot.slane %v2796_v11, 1  ;;  %v6880_v44 = vld [vmem:[#allocation68_spill] sm:$0xff] }
 0x351   :  { %v2393_v62 = vpop.f32.mrf.mxu0  ;;  %3329 = vmatmul.mubr.bf16.gmra.mxu0 %v6425_v50  ;;  %v3458_v36 = vrot.slane %v6432_v10, 1  ;;  %v6446_v15 = vsel %vm1422_vm6, %v3452_v63, %v3456_v34  ;;  %v2569_v2 = vmax.f32 %v2519_v16, 0.0  ;;  %v2808_v14 = vshrl.u32 %v6425_v50, 16 }
 0x352   :  { %v2570_v24 = vmax.f32 %v2520_v7, 0.0  ;;  %v2521_v37 = vadd.f32 %v6177_v30, %v2459_v48  ;;  %v2460_v3 = vadd.f32 %v2393_v62, %v6141_v4  ;;  %v2806_v57 = vrot.slane %v2804_v20, 1 }
 0x353   :  { %v2395_v38 = vpop.f32.mrf.mxu0  ;;  %v2799_v39 = vsel %vm794_vm4, %v2794_v33, %v2798_v43  ;;  %v6454_v25 = vsel %vm1422_vm6, %v3454_v8, %v3458_v36  ;;  %v1749_v22 = vadd.f32 %v6157_v9, %v1383_v5  ;;  %v2117_v27 = vadd.f32 %v6880_v44, %v1745_v54 }
 0x354   :  { %v6456_v6 = vpack.c.bf16 %v2570_v24, %v2568_v49  ;;  %v2571_v63 = vmax.f32 %v2521_v37, 0.0  ;;  %v2461_v56 = vadd.f32 %v2395_v38, %v6144_v59  ;;  %v2522_v53 = vadd.f32 %v6171_v41, %v2460_v3 }
 0x355   :  { %v2397_v4 = vpop.f32.mrf.mxu0  ;;  %v2807_v55 = vsel %vm794_vm4, %v2802_v61, %v2806_v57  ;;  %v2816_v59 = vshrl.u32 %v6432_v10, 16  ;;  %v2810_v33 = vor.u32 %v2808_v14, %v2798_v43 }
 0x356   :  { %v6463_v35 = vpack.c.bf16 %v2571_v63, %v2569_v2  ;;  %v2462_v8 = vadd.f32 %v2397_v4, %v6148_v42  ;;  %3088 = vmatprep.mubr.bf16.mxu1 %v2807_v55  ;;  %v2812_v11 = vshll.u32 %v6456_v6, 16  ;;  %v3460_v16 = vrot.slane %v6456_v6, 1 }
 0x357   :  { %3089 = vmatmul.mubr.bf16.gmra.mxu1 %v2799_v39  ;;  %v2399_v60 = vpop.f32.mrf.mxu0  ;;  %v2523_v50 = vadd.f32 %v6177_v30, %v2461_v56  ;;  %v2572_v48 = vmax.f32 %v2522_v53, 0.0  ;;  %v2818_v31 = vor.u32 %v2816_v59, %v2806_v57  ;;  %v6881_v53 = vld [vmem:[#allocation71_spill] sm:$0xff] }
 0x358   :  { %v2524_v9 = vadd.f32 %v6171_v41, %v2462_v8  ;;  %v2463_v7 = vadd.f32 %v2399_v60, %v2117_v27  ;;  %3336 = vmatprep.mubr.bf16.mxu0 %v6463_v35  ;;  %v2820_v42 = vshll.u32 %v6463_v35, 16  ;;  %v2814_v20 = vrot.slane %v2812_v11, 1 }
 0x359   :  { %v2403_v54 = vpop.f32.mrf.mxu0  ;;  %3337 = vmatmul.mubr.bf16.gmra.mxu0 %v6456_v6  ;;  %v3462_v10 = vrot.slane %v6463_v35, 1  ;;  %v6477_v49 = vsel %vm1422_vm6, %v3456_v34, %v3460_v16  ;;  %v2573_v38 = vmax.f32 %v2523_v50, 0.0  ;;  %v2121_v4 = vadd.f32 %v6881_v53, %v1749_v22 }
 0x35a   :  { %v2574_v62 = vmax.f32 %v2524_v9, 0.0  ;;  %v2525_v43 = vadd.f32 %v6177_v30, %v2463_v7  ;;  %v2464_v24 = vadd.f32 %v2403_v54, %v6152_v58  ;;  %v2822_v37 = vrot.slane %v2820_v42, 1 }
 0x35b   :  { %v2405_v3 = vpop.f32.mrf.mxu0  ;;  %v2815_v18 = vsel %vm794_vm4, %v2810_v33, %v2814_v20  ;;  %v6483_v5 = vsel %vm1422_vm6, %v3458_v36, %v3462_v10  ;;  %v2824_v36 = vshrl.u32 %v6456_v6, 16 }
 0x35c   :  { %v6485_v61 = vpack.c.bf16 %v2574_v62, %v2572_v48  ;;  %v2575_v39 = vmax.f32 %v2525_v43, 0.0  ;;  %v2465_v34 = vadd.f32 %v2405_v3, %v6155_v32  ;;  %v2526_v2 = vadd.f32 %v6171_v41, %v2464_v24 }
 0x35d   :  { %v2407_v63 = vpop.f32.mrf.mxu0  ;;  %v2823_v56 = vsel %vm794_vm4, %v2818_v31, %v2822_v37  ;;  %v2832_v32 = vshrl.u32 %v6463_v35, 16  ;;  %v2826_v22 = vor.u32 %v2824_v36, %v2814_v20 }
 0x35e   :  { %v6490_v58 = vpack.c.bf16 %v2575_v39, %v2573_v38  ;;  %v2466_v57 = vadd.f32 %v2407_v63, %v6159_v19  ;;  %3096 = vmatprep.mubr.bf16.mxu1 %v2823_v56  ;;  %v2527_v55 = vadd.f32 %v6177_v30, %v2465_v34  ;;  %v2828_v8 = vshll.u32 %v6485_v61, 16 }
 0x35f   :  { %3097 = vmatmul.mubr.bf16.gmra.mxu1 %v2815_v18  ;;  %v2409_v14 = vpop.f32.mrf.mxu0  ;;  %v3464_v44 = vrot.slane %v6485_v61, 1  ;;  %v2576_v59 = vmax.f32 %v2526_v2, 0.0  ;;  %v2834_v62 = vor.u32 %v2832_v32, %v2822_v37 }
 0x360   :  { %v2528_v27 = vadd.f32 %v6171_v41, %v2466_v57  ;;  %v2467_v60 = vadd.f32 %v2409_v14, %v2121_v4  ;;  %3344 = vmatprep.mubr.bf16.mxu0 %v6490_v58  ;;  %v2836_v19 = vshll.u32 %v6490_v58, 16  ;;  %v2830_v33 = vrot.slane %v2828_v8, 1 }
 0x361   :  { %v2413_v6 = vpop.f32.mrf.mxu0  ;;  %3345 = vmatmul.mubr.bf16.gmra.mxu0 %v6485_v61  ;;  %v3466_v11 = vrot.slane %v6490_v58, 1  ;;  %v6505_v35 = vsel %vm1422_vm6, %v3460_v16, %v3464_v44  ;;  %v2577_v48 = vmax.f32 %v2527_v55, 0.0  ;;  %v2848_v63 = vshrl.u32 %v6490_v58, 16 }
 0x362   :  { %v2578_v50 = vmax.f32 %v2528_v27, 0.0  ;;  %v2529_v9 = vadd.f32 %v6177_v30, %v2467_v60  ;;  %v2468_v7 = vadd.f32 %v2413_v6, %v6163_v28  ;;  %v2838_v42 = vrot.slane %v2836_v19, 1 }
 0x363   :  { %v2415_v54 = vpop.f32.mrf.mxu0  ;;  %v2831_v20 = vsel %vm794_vm4, %v2826_v22, %v2830_v33  ;;  %v6511_v43 = vsel %vm1422_vm6, %v3462_v10, %v3466_v11  ;;  %v2840_v28 = vshrl.u32 %v6485_v61, 16 }
 0x364   :  { %v2604_v24 = vpack.c.bf16 %v2578_v50, %v2576_v59  ;;  %v2579_v3 = vmax.f32 %v2529_v9, 0.0  ;;  %v2530_v31 = vadd.f32 %v6171_v41, %v2468_v7  ;;  %v2469_v16 = vadd.f32 %v2415_v54, %v6165_v40 }
 0x365   :  { %v2417_v18 = vpop.f32.mrf.mxu0  ;;  %v2839_v38 = vsel %vm794_vm4, %v2834_v62, %v2838_v42  ;;  %v2842_v56 = vor.u32 %v2840_v28, %v2830_v33 }
 0x366   :  { %v2605_v39 = vpack.c.bf16 %v2579_v3, %v2577_v48  ;;  %v2580_v34 = vmax.f32 %v2530_v31, 0.0  ;;  %v2531_v37 = vadd.f32 %v6177_v30, %v2469_v16  ;;  %3104 = vmatprep.mubr.bf16.mxu1 %v2839_v38  ;;  %v2844_v2 = vshll.u32 %v2604_v24, 16 }
 0x367   :  { %3105 = vmatmul.mubr.bf16.gmra.mxu1 %v2831_v20  ;;  %v2418_v10 = vpop.f32.mrf.mxu0  ;;  %v3468_v57 = vrot.slane %v2604_v24, 1  ;;  %v2850_v30 = vor.u32 %v2848_v63, %v2838_v42  ;;  %v2856_v8 = vshrl.u32 %v2604_v24, 16 }
 0x368   :  { %v6519_v41 = vpack.c.bf16 %v2580_v34, %v2580_v34  ;;  %v2581_v40 = vmax.f32 %v2531_v37, 0.0  ;;  %3352 = vmatprep.mubr.bf16.mxu0 %v2605_v39  ;;  %v2852_v53 = vshll.u32 %v2605_v39, 16  ;;  %v2846_v4 = vrot.slane %v2844_v2, 1 }
 0x369   :  { %3353 = vmatmul.mubr.bf16.gmra.mxu0 %v2604_v24  ;;  %v3470_v61 = vrot.slane %v2605_v39, 1  ;;  %v3469_v36 = vsel %vm1422_vm6, %v3464_v44, %v3468_v57  ;;  %v2864_v22 = vshrl.u32 %v2605_v39, 16 }
 0x36a   :  { %v6522_v55 = vpack.c.bf16 %v2581_v40, %v2581_v40  ;;  %v2854_v14 = vrot.slane %v2852_v53, 1  ;;  %v2847_v32 = vsel %vm794_vm4, %v2842_v56, %v2846_v4  ;;  %v2860_v58 = vshll.u32 %v6519_v41, 16 }
 0x36b   :  { %v3471_v27 = vsel %vm1422_vm6, %v3466_v11, %v3470_v61  ;;  %v3472_v60 = vrot.slane %v6519_v41, 1  ;;  %v2858_v59 = vor.u32 %v2856_v8, %v2846_v4  ;;  %v2872_v20 = vshrl.u32 %v6519_v41, 16 }
 0x36c   :  { %3360 = vmatprep.mubr.bf16.mxu0 %v6522_v55  ;;  %v2855_v19 = vsel %vm794_vm4, %v2850_v30, %v2854_v14  ;;  %v2868_v44 = vshll.u32 %v6522_v55, 16  ;;  %v2862_v6 = vrot.slane %v2860_v58, 1  ;;  %v3474_v33 = vrot.slane %v6522_v55, 1 }
 0x36d   :  { %3112 = vmatprep.mubr.bf16.mxu1 %v2855_v19  ;;  %v3473_v50 = vsel %vm1422_vm6, %v3468_v57, %v3472_v60  ;;  %v2866_v9 = vor.u32 %v2864_v22, %v2854_v14  ;;  %v2875_v54 = vshrl.u32 %v6522_v55, 16 }
 0x36e   :  { %v2870_v11 = vrot.slane %v2868_v44, 1  ;;  %v2863_v7 = vsel %vm794_vm4, %v2858_v59, %v2862_v6  ;;  %v3475_v42 = vsel %vm1422_vm6, %v3470_v61, %v3474_v33  ;;  %v2874_v24 = vor.u32 %v2872_v20, %v2862_v6 }
 0x36f   :  { %3113 = vmatmul.mubr.bf16.gmra.mxu1 %v2847_v32 }
 0x370   :  { %v2871_v48 = vsel %vm794_vm4, %v2866_v9, %v2870_v11  ;;  %v2877_v62 = vor.u32 %v2875_v54, %v2870_v11 }
 0x371   :  { %3120 = vmatprep.mubr.bf16.mxu1 %v2871_v48  ;;  %3361 = vmatmul.mubr.bf16.gmra.mxu0 %v6519_v41 }
 0x377   :  { %3121 = vmatmul.mubr.bf16.gmra.mxu1 %v2863_v7 }
 0x378   :  { %3128 = vmatprep.mubr.bf16.mxu1 %v2877_v62 }
 0x37f   :  { %3129 = vmatmul.mubr.bf16.gmra.mxu1 %v2874_v24 }
 0x380   :  { %3630 = vmatprep.mubr.bf16.mxu1 %v6229_v17 }
 0x387   :  { %3631 = vmatmul.mubr.bf16.vlgmr.msra.gmra.mxu1 %v6221_v1 }
 0x388   :  { %3638 = vmatprep.mubr.bf16.mxu1 %v6262_v51 }
 0x38f   :  { %3639 = vmatmul.mubr.bf16.gmra.mxu1 %v6254_v46 }
 0x390   :  { %3646 = vmatprep.mubr.bf16.mxu1 %v6297_v29 }
 0x397   :  { %3647 = vmatmul.mubr.bf16.gmra.mxu1 %v6289_v45 }
 0x398   :  { %3654 = vmatprep.mubr.bf16.mxu1 %v6330_v26 }
 0x39f   :  { %3655 = vmatmul.mubr.bf16.gmra.mxu1 %v6322_v52 }
 0x3a0   :  { %3662 = vmatprep.mubr.bf16.mxu1 %v6361_v47 }
 0x3a7   :  { %3663 = vmatmul.mubr.bf16.gmra.mxu1 %v6353_v23 }
 0x3a8   :  { %3670 = vmatprep.mubr.bf16.mxu1 %v6392_v13 }
 0x3af   :  { %3671 = vmatmul.mubr.bf16.gmra.mxu1 %v6384_v21 }
 0x3b0   :  { %3678 = vmatprep.mubr.bf16.mxu1 %v6423_v12 }
 0x3b7   :  { %3679 = vmatmul.mubr.bf16.gmra.mxu1 %v6415_v0 }
 0x3b8   :  { %3686 = vmatprep.mubr.bf16.mxu1 %v6454_v25 }
 0x3bf   :  { %3687 = vmatmul.mubr.bf16.gmra.mxu1 %v6446_v15 }
 0x3c0   :  { %3694 = vmatprep.mubr.bf16.mxu1 %v6483_v5 }
 0x3c7   :  { %3695 = vmatmul.mubr.bf16.gmra.mxu1 %v6477_v49 }
 0x3c8   :  { %3702 = vmatprep.mubr.bf16.mxu1 %v6511_v43 }
 0x3cf   :  { %3703 = vmatmul.mubr.bf16.gmra.mxu1 %v6505_v35 }
 0x3d0   :  { %3710 = vmatprep.mubr.bf16.mxu1 %v3471_v27 }
 0x3d1   :  { %v4525_v1 = vpop.f32.mrf.mxu0 }
 0x3d3   :  { %v4526_v17 = vpop.f32.mrf.mxu0 }
 0x3d4   :  { %v4527_v46 = vadd.f32 %v4526_v17, %v4525_v1 }
 0x3d5   :  { %v4528_v51 = vpop.f32.mrf.mxu0 }
 0x3d7   :  { %3711 = vmatmul.mubr.bf16.gmra.mxu1 %v3469_v36  ;;  %v4529_v45 = vpop.f32.mrf.mxu0 }
 0x3d8   :  { %v4530_v29 = vadd.f32 %v4529_v45, %v4528_v51  ;;  %3718 = vmatprep.mubr.bf16.mxu1 %v3475_v42 }
 0x3d9   :  { %v4531_v52 = vpop.f32.mrf.mxu0 }
 0x3db   :  { %v4532_v26 = vpop.f32.mrf.mxu0 }
 0x3dc   :  { %v4533_v23 = vadd.f32 %v4532_v26, %v4531_v52 }
 0x3dd   :  { %v4534_v47 = vpop.f32.mrf.mxu0 }
 0x3df   :  { %v4431_v21 = vpop.f32.mrf.mxu1  ;;  %3719 = vmatmul.mubr.bf16.gmra.mxu1 %v3473_v50  ;;  %v4535_v13 = vpop.f32.mrf.mxu0 }
 0x3e0   :  { %v4536_v0 = vadd.f32 %v4535_v13, %v4534_v47  ;;  %3726 = vmatprep.mubr.bf16.mxu1 %v3474_v33 }
 0x3e1   :  { %v4432_v12 = vpop.f32.mrf.mxu1  ;;  %v4537_v15 = vpop.f32.mrf.mxu0 }
 0x3e2   :  { %v4433_v25 = vadd.f32 %v4432_v12, %v4431_v21 }
 0x3e3   :  { %v4434_v49 = vpop.f32.mrf.mxu1  ;;  %v4538_v5 = vpop.f32.mrf.mxu0 }
 0x3e4   :  { %v6561_v35 = vadd.f32 %v4527_v46, %v4433_v25  ;;  %v4539_v43 = vadd.f32 %v4538_v5, %v4537_v15 }
 0x3e5   :  { %v4435_v3 = vpop.f32.mrf.mxu1  ;;  %v4540_v31 = vpop.f32.mrf.mxu0 }
 0x3e6   :  { %v4436_v16 = vadd.f32 %v4435_v3, %v4434_v49 }
 0x3e7   :  { %v4437_v18 = vpop.f32.mrf.mxu1  ;;  %3727 = vmatmul.mubr.bf16.gmra.mxu1 %v3472_v60  ;;  %v4541_v38 = vpop.f32.mrf.mxu0 }
 0x3e8   :  { %v6565_v28 = vadd.f32 %v4530_v29, %v4436_v16  ;;  %v4542_v39 = vadd.f32 %v4541_v38, %v4540_v31 }
 0x3e9   :  { %v4438_v34 = vpop.f32.mrf.mxu1  ;;  %v4543_v37 = vpop.f32.mrf.mxu0 }
 0x3ea   :  { %v4439_v2 = vadd.f32 %v4438_v34, %v4437_v18 }
 0x3eb   :  { %v4440_v10 = vpop.f32.mrf.mxu1  ;;  %v4544_v63 = vpop.f32.mrf.mxu0 }
 0x3ec   :  { %v6567_v56 = vadd.f32 %v4533_v23, %v4439_v2  ;;  %v4545_v57 = vadd.f32 %v4544_v63, %v4543_v37 }
 0x3ed   :  { %v4441_v40 = vpop.f32.mrf.mxu1  ;;  %v4546_v53 = vpop.f32.mrf.mxu0 }
 0x3ee   :  { %v4442_v4 = vadd.f32 %v4441_v40, %v4440_v10 }
 0x3ef   :  { %v4443_v61 = vpop.f32.mrf.mxu1  ;;  %v4547_v36 = vpop.f32.mrf.mxu0 }
 0x3f0   :  { %v6569_v55 = vadd.f32 %v4536_v0, %v4442_v4  ;;  %v4548_v41 = vadd.f32 %v4547_v36, %v4546_v53 }
 0x3f1   :  { %v4444_v30 = vpop.f32.mrf.mxu1  ;;  %v4549_v14 = vpop.f32.mrf.mxu0 }
 0x3f2   :  { %v4445_v32 = vadd.f32 %v4444_v30, %v4443_v61 }
 0x3f3   :  { %v4446_v8 = vpop.f32.mrf.mxu1  ;;  %v4550_v58 = vpop.f32.mrf.mxu0 }
 0x3f4   :  { %v6571_v27 = vadd.f32 %v4539_v43, %v4445_v32  ;;  %v4551_v60 = vadd.f32 %v4550_v58, %v4549_v14 }
 0x3f5   :  { %v4447_v19 = vpop.f32.mrf.mxu1  ;;  %v4552_v22 = vpop.f32.mrf.mxu0 }
 0x3f6   :  { %v4448_v44 = vadd.f32 %v4447_v19, %v4446_v8 }
 0x3f7   :  { %v4449_v59 = vpop.f32.mrf.mxu1  ;;  %v4553_v6 = vpop.f32.mrf.mxu0 }
 0x3f8   :  { %v6573_v33 = vadd.f32 %v4542_v39, %v4448_v44  ;;  %v4554_v50 = vadd.f32 %v4553_v6, %v4552_v22 }
 0x3f9   :  { %v4450_v9 = vpop.f32.mrf.mxu1  ;;  %v4555_v11 = vpop.f32.mrf.mxu0 }
 0x3fa   :  { %v4451_v7 = vadd.f32 %v4450_v9, %v4449_v59 }
 0x3fb   :  { %v4452_v42 = vpop.f32.mrf.mxu1  ;;  %v4556_v48 = vpop.f32.mrf.mxu0 }
 0x3fc   :  { %v6575_v54 = vadd.f32 %v4545_v57, %v4451_v7  ;;  %v4557_v62 = vadd.f32 %v4556_v48, %v4555_v11 }
 0x3fd   :  { %v4453_v20 = vpop.f32.mrf.mxu1  ;;  %v4558_v24 = vpop.f32.mrf.mxu0 }
 0x3fe   :  { %v4454_v1 = vadd.f32 %v4453_v20, %v4452_v42 }
 0x3ff   :  { %v4455_v17 = vpop.f32.mrf.mxu1  ;;  %v4559_v46 = vpop.f32.mrf.mxu0 }
 0x400   :  { %v6577_v51 = vadd.f32 %v4548_v41, %v4454_v1  ;;  %v4560_v45 = vadd.f32 %v4559_v46, %v4558_v24 }
 0x401   :  { %v4456_v29 = vpop.f32.mrf.mxu1  ;;  %v4561_v52 = vpop.f32.mrf.mxu0 }
 0x402   :  { %v4457_v26 = vadd.f32 %v4456_v29, %v4455_v17 }
 0x403   :  { %v4458_v23 = vpop.f32.mrf.mxu1  ;;  %v4562_v47 = vpop.f32.mrf.mxu0 }
 0x404   :  { %v6579_v21 = vadd.f32 %v4551_v60, %v4457_v26  ;;  %v4563_v13 = vadd.f32 %v4562_v47, %v4561_v52 }
 0x405   :  { %v4459_v0 = vpop.f32.mrf.mxu1  ;;  %v4564_v12 = vpop.f32.mrf.mxu0 }
 0x406   :  { %v4460_v15 = vadd.f32 %v4459_v0, %v4458_v23 }
 0x407   :  { %v4461_v25 = vpop.f32.mrf.mxu1  ;;  %v4565_v49 = vpop.f32.mrf.mxu0 }
 0x408   :  { %v6581_v5 = vadd.f32 %v4554_v50, %v4460_v15  ;;  %v4566_v43 = vadd.f32 %v4565_v49, %v4564_v12 }
 0x409   :  { %v4462_v3 = vpop.f32.mrf.mxu1  ;;  %v4567_v31 = vpop.f32.mrf.mxu0 }
 0x40a   :  { %v4463_v16 = vadd.f32 %v4462_v3, %v4461_v25 }
 0x40b   :  { %v4464_v18 = vpop.f32.mrf.mxu1  ;;  %v4568_v38 = vpop.f32.mrf.mxu0 }
 0x40c   :  { %v6583_v39 = vadd.f32 %v4557_v62, %v4463_v16  ;;  %v4569_v34 = vadd.f32 %v4568_v38, %v4567_v31 }
 0x40d   :  { %v4465_v37 = vpop.f32.mrf.mxu1  ;;  %v4570_v2 = vpop.f32.mrf.mxu0 }
 0x40e   :  { %v4466_v10 = vadd.f32 %v4465_v37, %v4464_v18 }
 0x40f   :  { %v4467_v63 = vpop.f32.mrf.mxu1  ;;  %v4571_v57 = vpop.f32.mrf.mxu0 }
 0x410   :  { %v6585_v40 = vadd.f32 %v4560_v45, %v4466_v10  ;;  %v4572_v53 = vadd.f32 %v4571_v57, %v4570_v2 }
 0x411   :  { %v4468_v4 = vpop.f32.mrf.mxu1  ;;  %v4573_v61 = vpop.f32.mrf.mxu0 }
 0x412   :  { %v4469_v36 = vadd.f32 %v4468_v4, %v4467_v63 }
 0x413   :  { %v4470_v41 = vpop.f32.mrf.mxu1  ;;  %v4574_v30 = vpop.f32.mrf.mxu0 }
 0x414   :  { %v6587_v14 = vadd.f32 %v4563_v13, %v4469_v36  ;;  %v4575_v32 = vadd.f32 %v4574_v30, %v4573_v61 }
 0x415   :  { %v4471_v8 = vpop.f32.mrf.mxu1  ;;  %v4576_v58 = vpop.f32.mrf.mxu0 }
 0x416   :  { %v4472_v60 = vadd.f32 %v4471_v8, %v4470_v41 }
 0x417   :  { %v4473_v19 = vpop.f32.mrf.mxu1  ;;  %v4577_v22 = vpop.f32.mrf.mxu0 }
 0x418   :  { %v6589_v44 = vadd.f32 %v4566_v43, %v4472_v60  ;;  %v4578_v59 = vadd.f32 %v4577_v22, %v4576_v58 }
 0x419   :  { %v4474_v6 = vpop.f32.mrf.mxu1  ;;  %v4579_v50 = vpop.f32.mrf.mxu0 }
 0x41a   :  { %v4475_v9 = vadd.f32 %v4474_v6, %v4473_v19 }
 0x41b   :  { %v4476_v11 = vpop.f32.mrf.mxu1  ;;  %v4580_v7 = vpop.f32.mrf.mxu0 }
 0x41c   :  { %v6591_v42 = vadd.f32 %v4569_v34, %v4475_v9  ;;  %v4581_v48 = vadd.f32 %v4580_v7, %v4579_v50 }
 0x41d   :  { %v4477_v62 = vpop.f32.mrf.mxu1  ;;  %v4582_v20 = vpop.f32.mrf.mxu0 }
 0x41e   :  { %v4478_v24 = vadd.f32 %v4477_v62, %v4476_v11 }
 0x41f   :  { %v4479_v1 = vpop.f32.mrf.mxu1  ;;  %v4583_v17 = vpop.f32.mrf.mxu0 }
 0x420   :  { %v6593_v46 = vadd.f32 %v4572_v53, %v4478_v24  ;;  %v4584_v45 = vadd.f32 %v4583_v17, %v4582_v20 }
 0x421   :  { %v4480_v29 = vpop.f32.mrf.mxu1  ;;  %v4585_v52 = vpop.f32.mrf.mxu0 }
 0x422   :  { %v4481_v26 = vadd.f32 %v4480_v29, %v4479_v1 }
 0x423   :  { %v4482_v23 = vpop.f32.mrf.mxu1  ;;  %v4586_v47 = vpop.f32.mrf.mxu0 }
 0x424   :  { %v6595_v13 = vadd.f32 %v4575_v32, %v4481_v26  ;;  %v4587_v0 = vadd.f32 %v4586_v47, %v4585_v52 }
 0x425   :  { %v4483_v12 = vpop.f32.mrf.mxu1  ;;  %v4588_v15 = vpop.f32.mrf.mxu0 }
 0x426   :  { %v4484_v25 = vadd.f32 %v4483_v12, %v4482_v23 }
 0x427   :  { %v4485_v49 = vpop.f32.mrf.mxu1  ;;  %v4589_v43 = vpop.f32.mrf.mxu0 }
 0x428   :  { %v6597_v3 = vadd.f32 %v4578_v59, %v4484_v25  ;;  %v4590_v31 = vadd.f32 %v4589_v43, %v4588_v15 }
 0x429   :  { %v4486_v16 = vpop.f32.mrf.mxu1  ;;  %v4591_v18 = vpop.f32.mrf.mxu0 }
 0x42a   :  { %v4487_v38 = vadd.f32 %v4486_v16, %v4485_v49 }
 0x42b   :  { %v4488_v34 = vpop.f32.mrf.mxu1  ;;  %v4592_v37 = vpop.f32.mrf.mxu0 }
 0x42c   :  { %v6599_v2 = vadd.f32 %v4581_v48, %v4487_v38  ;;  %v4593_v10 = vadd.f32 %v4592_v37, %v4591_v18  ;;  %v6618_v18 = vld [vmem:[#allocation16] ss:$0 sm:$0xff] }
 0x42d   :  { %v4489_v63 = vpop.f32.mrf.mxu1  ;;  %v4594_v57 = vpop.f32.mrf.mxu0 }
 0x42e   :  { %v4490_v53 = vadd.f32 %v4489_v63, %v4488_v34 }
 0x42f   :  { %v4491_v4 = vpop.f32.mrf.mxu1  ;;  %v4595_v61 = vpop.f32.mrf.mxu0 }
 0x430   :  { %v6601_v36 = vadd.f32 %v4584_v45, %v4490_v53  ;;  %v4596_v41 = vadd.f32 %v4595_v61, %v4594_v57 }
 0x431   :  { %v4492_v30 = vpop.f32.mrf.mxu1  ;;  %v4597_v32 = vpop.f32.mrf.mxu0 }
 0x432   :  { %v4493_v8 = vadd.f32 %v4492_v30, %v4491_v4 }
 0x433   :  { %v4494_v58 = vpop.f32.mrf.mxu1  ;;  %v4598_v60 = vpop.f32.mrf.mxu0 }
 0x434   :  { %v6603_v19 = vadd.f32 %v4587_v0, %v4493_v8  ;;  %v4599_v22 = vadd.f32 %v4598_v60, %v4597_v32  ;;  %v6613_v0 = vld [vmem:[#allocation17] sm:$0xff] }
 0x435   :  { %v4495_v59 = vpop.f32.mrf.mxu1  ;;  %v4600_v6 = vpop.f32.mrf.mxu0  ;;  %v4374_v15 = vcombine.high %v6613_v0, %v6613_v0 }
 0x436   :  { %v4496_v50 = vadd.f32 %v4495_v59, %v4494_v58 }
 0x437   :  { %v4497_v9 = vpop.f32.mrf.mxu1  ;;  %v4601_v11 = vpop.f32.mrf.mxu0  ;;  %4375 = vmatprep.mubr.msk.bf16.mxu0 %vm3836_vm8, %v4374_v15 }
 0x438   :  { %v6605_v7 = vadd.f32 %v4590_v31, %v4496_v50 }
 0x439   :  { %v4498_v48 = vpop.f32.mrf.mxu1 }
 0x43a   :  { %v4499_v62 = vadd.f32 %v4498_v48, %v4497_v9 }
 0x43b   :  { %v4500_v20 = vpop.f32.mrf.mxu1 }
 0x43c   :  { %v6607_v24 = vadd.f32 %v4593_v10, %v4499_v62 }
 0x43d   :  { %v4501_v1 = vpop.f32.mrf.mxu1 }
 0x43e   :  { %v4502_v17 = vadd.f32 %v4501_v1, %v4500_v20 }
 0x43f   :  { %v4503_v45 = vpop.f32.mrf.mxu1 }
 0x440   :  { %v6609_v29 = vadd.f32 %v4596_v41, %v4502_v17 }
 0x441   :  { %v4504_v52 = vpop.f32.mrf.mxu1 }
 0x442   :  { %v4505_v26 = vadd.f32 %v4504_v52, %v4503_v45 }
 0x443   :  { %v4506_v23 = vpop.f32.mrf.mxu1 }
 0x444   :  { %v6611_v47 = vadd.f32 %v4599_v22, %v4505_v26 }
 0x445   :  { %v4507_v12 = vpop.f32.mrf.mxu1 }
 0x447   :  { %v4619_v25 = vpop.f32.mrf.mxu1 }
 0x449   :  { %v4620_v49 = vpop.f32.mrf.mxu1 }
 0x44a   :  { %v4621_v43 = vadd.f32 %v4620_v49, %v4619_v25 }
 0x44b   :  { %v4622_v31 = vpop.f32.mrf.mxu1 }
 0x44c   :  { %v3734_v16 = vadd.f32 %v4621_v43, %v6561_v35 }
 0x44d   :  { %v4623_v38 = vpop.f32.mrf.mxu1 }
 0x44e   :  { %v4624_v34 = vadd.f32 %v4623_v38, %v4622_v31  ;;  %v3766_v10 = vadd.f32 %v6618_v18, %v3734_v16 }
 0x44f   :  { %v4625_v37 = vpop.f32.mrf.mxu1 }
 0x450   :  { %v3735_v63 = vadd.f32 %v4624_v34, %v6565_v28  ;;  %v3791_v41 = vmax.f32 %v3766_v10, 0.0 }
 0x451   :  { %v4626_v57 = vpop.f32.mrf.mxu1 }
 0x452   :  { %v3767_v53 = vadd.f32 %v6618_v18, %v3735_v63  ;;  %v4627_v4 = vadd.f32 %v4626_v57, %v4625_v37 }
 0x453   :  { %v4628_v61 = vpop.f32.mrf.mxu1 }
 0x454   :  { %v3792_v30 = vmax.f32 %v3767_v53, 0.0  ;;  %v3736_v32 = vadd.f32 %v4627_v4, %v6567_v56 }
 0x455   :  { %v4629_v8 = vpop.f32.mrf.mxu1 }
 0x456   :  { %v6624_v35 = vpack.c.bf16 %v3792_v30, %v3791_v41  ;;  %v4630_v58 = vadd.f32 %v4629_v8, %v4628_v61  ;;  %v3768_v22 = vadd.f32 %v6618_v18, %v3736_v32 }
 0x457   :  { %v4631_v60 = vpop.f32.mrf.mxu1 }
 0x458   :  { %v3737_v59 = vadd.f32 %v4630_v58, %v6569_v55  ;;  %v3793_v11 = vmax.f32 %v3768_v22, 0.0 }
 0x459   :  { %v4632_v6 = vpop.f32.mrf.mxu1 }
 0x45a   :  { %v3769_v28 = vadd.f32 %v6618_v18, %v3737_v59  ;;  %v4633_v50 = vadd.f32 %v4632_v6, %v4631_v60 }
 0x45b   :  { %v4634_v9 = vpop.f32.mrf.mxu1 }
 0x45c   :  { %v3794_v48 = vmax.f32 %v3769_v28, 0.0  ;;  %v3738_v62 = vadd.f32 %v4633_v50, %v6571_v27 }
 0x45d   :  { %v4635_v20 = vpop.f32.mrf.mxu1 }
 0x45e   :  { %v6630_v56 = vpack.c.bf16 %v3794_v48, %v3793_v11  ;;  %v4636_v1 = vadd.f32 %v4635_v20, %v4634_v9  ;;  %v3770_v45 = vadd.f32 %v6618_v18, %v3738_v62 }
 0x45f   :  { %v4637_v17 = vpop.f32.mrf.mxu1 }
 0x460   :  { %v3739_v52 = vadd.f32 %v4636_v1, %v6573_v33  ;;  %v3795_v15 = vmax.f32 %v3770_v45, 0.0 }
 0x461   :  { %v4638_v26 = vpop.f32.mrf.mxu1 }
 0x462   :  { %v3771_v55 = vadd.f32 %v6618_v18, %v3739_v52  ;;  %v4639_v23 = vadd.f32 %v4638_v26, %v4637_v17 }
 0x463   :  { %v4640_v12 = vpop.f32.mrf.mxu1 }
 0x464   :  { %v3796_v25 = vmax.f32 %v3771_v55, 0.0  ;;  %v3740_v49 = vadd.f32 %v4639_v23, %v6575_v54 }
 0x465   :  { %v4641_v43 = vpop.f32.mrf.mxu1 }
 0x466   :  { %v6636_v27 = vpack.c.bf16 %v3796_v25, %v3795_v15  ;;  %v4642_v31 = vadd.f32 %v4641_v43, %v4640_v12  ;;  %v3772_v38 = vadd.f32 %v6618_v18, %v3740_v49 }
 0x467   :  { %v4643_v16 = vpop.f32.mrf.mxu1 }
 0x468   :  { %v3741_v34 = vadd.f32 %v4642_v31, %v6577_v51  ;;  %v3797_v57 = vmax.f32 %v3772_v38, 0.0 }
 0x469   :  { %v4644_v37 = vpop.f32.mrf.mxu1 }
 0x46a   :  { %v3773_v33 = vadd.f32 %v6618_v18, %v3741_v34  ;;  %v4645_v10 = vadd.f32 %v4644_v37, %v4643_v16 }
 0x46b   :  { %v4646_v63 = vpop.f32.mrf.mxu1 }
 0x46c   :  { %v3798_v53 = vmax.f32 %v3773_v33, 0.0  ;;  %v3742_v4 = vadd.f32 %v4645_v10, %v6579_v21 }
 0x46d   :  { %v4647_v61 = vpop.f32.mrf.mxu1 }
 0x46e   :  { %v6642_v54 = vpack.c.bf16 %v3798_v53, %v3797_v57  ;;  %v4648_v41 = vadd.f32 %v4647_v61, %v4646_v63  ;;  %v3774_v32 = vadd.f32 %v6618_v18, %v3742_v4 }
 0x46f   :  { %v4649_v30 = vpop.f32.mrf.mxu1 }
 0x470   :  { %v3743_v8 = vadd.f32 %v4648_v41, %v6581_v5  ;;  %v3799_v59 = vmax.f32 %v3774_v32, 0.0 }
 0x471   :  { %v4650_v58 = vpop.f32.mrf.mxu1 }
 0x472   :  { %v3775_v51 = vadd.f32 %v6618_v18, %v3743_v8  ;;  %v4651_v60 = vadd.f32 %v4650_v58, %v4649_v30 }
 0x473   :  { %v4652_v22 = vpop.f32.mrf.mxu1 }
 0x474   :  { %v3800_v6 = vmax.f32 %v3775_v51, 0.0  ;;  %v3744_v28 = vadd.f32 %v4651_v60, %v6583_v39 }
 0x475   :  { %v4653_v50 = vpop.f32.mrf.mxu1 }
 0x476   :  { %v6648_v21 = vpack.c.bf16 %v3800_v6, %v3799_v59  ;;  %v4654_v9 = vadd.f32 %v4653_v50, %v4652_v22  ;;  %v3776_v48 = vadd.f32 %v6618_v18, %v3744_v28 }
 0x477   :  { %v4655_v11 = vpop.f32.mrf.mxu1 }
 0x478   :  { %v3745_v62 = vadd.f32 %v4654_v9, %v6585_v40  ;;  %v3801_v45 = vmax.f32 %v3776_v48, 0.0 }
 0x479   :  { %v4656_v20 = vpop.f32.mrf.mxu1 }
 0x47a   :  { %v3777_v5 = vadd.f32 %v6618_v18, %v3745_v62  ;;  %v4657_v1 = vadd.f32 %v4656_v20, %v4655_v11 }
 0x47b   :  { %v4658_v17 = vpop.f32.mrf.mxu1 }
 0x47c   :  { %v3802_v52 = vmax.f32 %v3777_v5, 0.0  ;;  %v3746_v26 = vadd.f32 %v4657_v1, %v6587_v14 }
 0x47d   :  { %v4659_v55 = vpop.f32.mrf.mxu1 }
 0x47e   :  { %v3822_v39 = vpack.c.bf16 %v3802_v52, %v3801_v45  ;;  %v4660_v23 = vadd.f32 %v4659_v55, %v4658_v17  ;;  %v3778_v15 = vadd.f32 %v6618_v18, %v3746_v26 }
 0x47f   :  { %v4661_v12 = vpop.f32.mrf.mxu1 }
 0x480   :  { %v3747_v25 = vadd.f32 %v4660_v23, %v6589_v44  ;;  %v3803_v16 = vmax.f32 %v3778_v15, 0.0 }
 0x481   :  { %v4662_v49 = vpop.f32.mrf.mxu1 }
 0x482   :  { %v3779_v40 = vadd.f32 %v6618_v18, %v3747_v25  ;;  %v4663_v43 = vadd.f32 %v4662_v49, %v4661_v12 }
 0x483   :  { %v4664_v31 = vpop.f32.mrf.mxu1 }
 0x484   :  { %v3804_v38 = vmax.f32 %v3779_v40, 0.0  ;;  %v3748_v34 = vadd.f32 %v4663_v43, %v6591_v42 }
 0x485   :  { %v4665_v37 = vpop.f32.mrf.mxu1 }
 0x486   :  { %v3823_v33 = vpack.c.bf16 %v3804_v38, %v3803_v16  ;;  %v4666_v14 = vadd.f32 %v4665_v37, %v4664_v31  ;;  %v3780_v63 = vadd.f32 %v6618_v18, %v3748_v34 }
 0x487   :  { %v4667_v10 = vpop.f32.mrf.mxu1 }
 0x488   :  { %v3749_v57 = vadd.f32 %v4666_v14, %v6593_v46  ;;  %v3805_v41 = vmax.f32 %v3780_v63, 0.0  ;;  %v6882_v46 = vmov 0  }
 0x489   :  { %v4668_v53 = vpop.f32.mrf.mxu1 }
 0x48a   :  { %v3781_v44 = vadd.f32 %v6618_v18, %v3749_v57  ;;  %v4669_v4 = vadd.f32 %v4668_v53, %v4667_v10 }
 0x48b   :  { %v4670_v61 = vpop.f32.mrf.mxu1 }
 0x48c   :  { %v3806_v30 = vmax.f32 %v3781_v44, 0.0  ;;  %v3750_v32 = vadd.f32 %v4669_v4, %v6595_v13 }
 0x48d   :  { %v4671_v8 = vpop.f32.mrf.mxu1 }
 0x48e   :  { %v3824_v58 = vpack.c.bf16 %v3806_v30, %v3805_v41  ;;  %v4672_v42 = vadd.f32 %v4671_v8, %v4670_v61  ;;  %v3782_v60 = vadd.f32 %v6618_v18, %v3750_v32  ;;  %v5025_v32 = vld [vmem:[#allocation19 + $0x30] sm:$0xff]   ;;  %v5026_v8 = vld [vmem:[#allocation19 + $0x28] sm:$0xff]  }
 0x48f   :  { %v4673_v51 = vpop.f32.mrf.mxu1 }
 0x490   :  { %v3751_v22 = vadd.f32 %v4672_v42, %v6597_v3  ;;  %3845 = vmatpush1.bf16.msra.mxu0 %v3824_v58  ;;  %v3807_v9 = vmax.f32 %v3782_v60, 0.0  ;;  %v5027_v58 = vld [vmem:[#allocation19 + $0x20] sm:$0xff]   ;;  %v5029_v42 = vld [vmem:[#allocation19 + $0x10] sm:$0xff]  }
 0x491   :  { %v4674_v59 = vpop.f32.mrf.mxu1  ;;  %3846 = vmatprep.subr.bf16.mxu0 %v6882_v46  ;;  %v5031_v60 = vld [vmem:[#allocation19] sm:$0xff]  }
 0x492   :  { %v3783_v6 = vadd.f32 %v6618_v18, %v3751_v22  ;;  %v4675_v28 = vadd.f32 %v4674_v59, %v4673_v51  ;;  %v5030_v51 = vld [vmem:[#allocation19 + $0x8] sm:$0xff]   ;;  %v5032_v22 = vld [vmem:[%s6780_s11 + $0x78] sm:$0xff]  }
 0x493   :  { %v4676_v50 = vpop.f32.mrf.mxu1 }
 0x494   :  { %v3808_v11 = vmax.f32 %v3783_v6, 0.0  ;;  %v3752_v13 = vadd.f32 %v4675_v28, %v6599_v2  ;;  %3847 = vmatpush1.bf16.msra.mxu0 %v3823_v33  ;;  %v5034_v28 = vld [vmem:[%s6780_s11 + $0x70] sm:$0xff]  }
 0x495   :  { %v4677_v48 = vpop.f32.mrf.mxu1  ;;  %3848 = vmatprep.subr.bf16.mxu0 %v6882_v46 }
 0x496   :  { %v6668_v62 = vpack.c.bf16 %v3808_v11, %v3807_v9  ;;  %v4678_v20 = vadd.f32 %v4677_v48, %v4676_v50  ;;  %v3784_v5 = vadd.f32 %v6618_v18, %v3752_v13  ;;  %v6884_v50 = vld [vmem:[#allocation29_spill] sm:$0xff] }
 0x497   :  { %v4679_v3 = vpop.f32.mrf.mxu1  ;;  %v3885_v9 = vpack.c.bf16 %v6884_v50, %v6884_v50  ;;  %v5035_v13 = vld [vmem:[%s6780_s11 + $0x30] sm:$0xff]  }
 0x498   :  { %v3753_v1 = vadd.f32 %v4678_v20, %v6601_v36  ;;  %3849 = vmatpush1.bf16.msra.mxu0 %v3822_v39  ;;  %v3809_v26 = vmax.f32 %v3784_v5, 0.0  ;;  %v5038_v5 = vld [vmem:[%s6780_s11 + $0x60] sm:$0xff]  }
 0x499   :  { %v4680_v17 = vpop.f32.mrf.mxu1  ;;  %3850 = vmatprep.subr.bf16.mxu0 %v6882_v46 }
 0x49a   :  { %v3785_v45 = vadd.f32 %v6618_v18, %v3753_v1  ;;  %v4681_v52 = vadd.f32 %v4680_v17, %v4679_v3  ;;  %v5037_v3 = vld [vmem:[%s6780_s11 + $0x28] sm:$0xff]   ;;  %v5039_v1 = vld [vmem:[%s6780_s11 + $0x20] sm:$0xff]   ;;  %v5040_v17 = vld [vmem:[%s6780_s11 + $0x58] sm:$0xff]  }
 0x49b   :  { %v4682_v2 = vpop.f32.mrf.mxu1 }
 0x49c   :  { %v3810_v55 = vmax.f32 %v3785_v45, 0.0  ;;  %v3754_v23 = vadd.f32 %v4681_v52, %v6603_v19  ;;  %3851 = vmatpush1.bf16.msra.mxu0 %v6648_v21  ;;  %v5041_v45 = vld [vmem:[%s6780_s11 + $0x18] sm:$0xff]   ;;  %v5042_v52 = vld [vmem:[%s6780_s11 + $0x50] sm:$0xff]  }
 0x49d   :  { %v4683_v12 = vpop.f32.mrf.mxu1  ;;  %3852 = vmatprep.subr.bf16.mxu0 %v6882_v46 }
 0x49e   :  { %v3826_v15 = vpack.c.bf16 %v3810_v55, %v3809_v26  ;;  %v4684_v25 = vadd.f32 %v4683_v12, %v4682_v2  ;;  %v3786_v39 = vadd.f32 %v6618_v18, %v3754_v23  ;;  %v5043_v2 = vld [vmem:[%s6780_s11 + $0x10] sm:$0xff]   ;;  %v5044_v26 = vld [vmem:[%s6780_s11 + $0x48] sm:$0xff]   ;;  %v5046_v23 = vld [vmem:[%s6780_s11 + $0x40] sm:$0xff]  }
 0x49f   :  { %v4685_v36 = vpop.f32.mrf.mxu1  ;;  %v5045_v55 = vld [vmem:[%s6780_s11 + $0x8] sm:$0xff]   ;;  %v5047_v12 = vld [vmem:[%s6780_s11] sm:$0xff]  }
 0x4a0   :  { %v3755_v49 = vadd.f32 %v4684_v25, %v6605_v7  ;;  %3853 = vmatpush1.bf16.msra.mxu0 %v6642_v54  ;;  %v3811_v21 = vmax.f32 %v3786_v39, 0.0 }
 0x4a1   :  { %v4686_v40 = vpop.f32.mrf.mxu1  ;;  %3854 = vmatprep.subr.bf16.mxu0 %v6882_v46 }
 0x4a2   :  { %v3787_v43 = vadd.f32 %v6618_v18, %v3755_v49  ;;  %v4687_v19 = vadd.f32 %v4686_v40, %v4685_v36 }
 0x4a3   :  { %v4688_v31 = vpop.f32.mrf.mxu1 }
 0x4a4   :  { %v3812_v16 = vmax.f32 %v3787_v43, 0.0  ;;  %v3756_v38 = vadd.f32 %v4687_v19, %v6607_v24  ;;  %3855 = vmatpush1.bf16.msra.mxu0 %v6636_v27 }
 0x4a5   :  { %v4689_v34 = vpop.f32.mrf.mxu1  ;;  %3856 = vmatprep.subr.bf16.mxu0 %v6882_v46 }
 0x4a6   :  { %v3827_v37 = vpack.c.bf16 %v3812_v16, %v3811_v21  ;;  %v4690_v7 = vadd.f32 %v4689_v34, %v4688_v31  ;;  %v3788_v54 = vadd.f32 %v6618_v18, %v3756_v38  ;;  %v4400_v16 = vld [vmem:[%s6782_s13] ss:$0 sm:$0xff] }
 0x4a7   :  { %v4691_v33 = vpop.f32.mrf.mxu1 }
 0x4a8   :  { %v3757_v14 = vadd.f32 %v4690_v7, %v6609_v29  ;;  %3857 = vmatpush1.bf16.msra.mxu0 %v6630_v56  ;;  %v3813_v27 = vmax.f32 %v3788_v54, 0.0 }
 0x4a9   :  { %v4692_v10 = vpop.f32.mrf.mxu1  ;;  %3858 = vmatprep.subr.bf16.mxu0 %v6882_v46 }
 0x4aa   :  { %v3789_v63 = vadd.f32 %v6618_v18, %v3757_v14  ;;  %v4693_v24 = vadd.f32 %v4692_v10, %v4691_v33 }
 0x4ab   :  { %v4694_v57 = vpop.f32.mrf.mxu1 }
 0x4ac   :  { %v3814_v53 = vmax.f32 %v3789_v63, 0.0  ;;  %v3758_v44 = vadd.f32 %v4693_v24, %v6611_v47  ;;  %3859 = vmatpush1.bf16.msra.mxu0 %v6624_v35  ;;  %v4373_v47 = vcombine.low %v6613_v0, %v6613_v0  ;;  %v6883_v35 = vmov 0.0   ;;  %v5028_v0 = vld [vmem:[#allocation19 + $0x18] sm:$0xff]  }
 0x4ad   :  { %v4695_v4 = vpop.f32.mrf.mxu1  ;;  %3866 = vmatprep.subr.bf16.mxu0 %v6882_v46 }
 0x4ae   :  { %v3828_v61 = vpack.c.bf16 %v3814_v53, %v3813_v27  ;;  %v3790_v29 = vadd.f32 %v6618_v18, %v3758_v44  ;;  %v5024_v18 = vld [vmem:[#allocation19 + $0x38] sm:$0xff]  }
 0x4b0   :  { %v3815_v56 = vmax.f32 %v3790_v29, 0.0 }
 0x4b2   :  { %v3829_v41 = vpack.c.bf16 %v3815_v56, %v3815_v56 }
 0x4b4   :  { %v3842_v30 = vsel %vm3840_vm9, %v3829_v41, 0 }
 0x4b5   :  { %3867 = vmatpush2.bf16.msra.mxu0 %v3842_v30 }
 0x4b6   :  { %3868 = vmatprep.subr.bf16.mxu0 %v6882_v46 }
 0x4b9   :  { %3869 = vmatpush2.bf16.msra.mxu0 %v3828_v61 }
 0x4ba   :  { %3870 = vmatprep.subr.bf16.mxu0 %v6882_v46 }
 0x4bd   :  { %3871 = vmatpush2.bf16.msra.mxu0 %v3827_v37 }
 0x4be   :  { %3872 = vmatprep.subr.bf16.mxu0 %v6882_v46 }
 0x4c1   :  { %3873 = vmatpush2.bf16.msra.mxu0 %v3826_v15  ;;  %v6885_v15 = vld [vmem:[#allocation28_spill] sm:$0xff] }
 0x4c2   :  { %3874 = vmatprep.subr.bf16.mxu0 %v6882_v46  ;;  %v5033_v46 = vld [vmem:[%s6780_s11 + $0x38] sm:$0xff]   ;;  %v3884_v25 = vpack.c.bf16 %v6885_v15, %v6885_v15 }
 0x4c5   :  { %3875 = vmatpush2.bf16.msra.mxu0 %v6668_v62  ;;  %v5036_v62 = vld [vmem:[%s6780_s11 + $0x68] sm:$0xff]   ;;  %s5350_s11 = smov [#allocation20]  }
 0x4c6   :  { %4782 = vmatprep.subr.bf16.mxu0 %v6883_v35  ;;  %s4184_s16 = sshll.u32 %s5350_s11, 4  ;;  %s4185_s16 = int_to_ptr.vmem [resolvable:$true] %s4184_s16 }
 0x4c7   :  { %s5296_s13 = scalar_lea.vmem %s4185_s16, 128  ;;  %p5301_p0 = scmp.lt.s32.totalorder %s4185_s16, %s4185_s16 }
 0x4c8   :  { %3877 = vmatmul.mubr.bf16.vlgmr.msra.gmra.mxu0 %v4373_v47  ;;  %p5297_p13 = scmp.ne.s32.totalorder %s4185_s16, %s5296_s13  ;;  %p5302_p1 = scmp.lt.s32.totalorder %s5296_s13, %s5296_s13 }
 0x4c9   :  { %4783 = vmatpush3.bf16.msra.mxu0 %v5024_v18  ;;  %4798 = vmatprep.mubr.msk.bf16.mxu0 %vm5349_vm2, %v6883_v35 }
 0x4ca   :  { %4784 = vmatprep.subr.bf16.mxu0 %v6883_v35  ;;  %p5303_p2 = por %p5302_p1, %p5301_p0 }
 0x4cc   :  { %p5304_p3 = pnand %p5303_p2, %p5297_p13 }
 0x4cd   :  { %4785 = vmatpush3.bf16.msra.mxu0 %v5025_v32 }
 0x4ce   :  { %4786 = vmatprep.subr.bf16.mxu0 %v6883_v35 }
 0x4d1   :  { %4787 = vmatpush3.bf16.msra.mxu0 %v5026_v8 }
 0x4d2   :  { %4788 = vmatprep.subr.bf16.mxu0 %v6883_v35 }
 0x4d5   :  { %4789 = vmatpush3.bf16.msra.mxu0 %v5027_v58 }
 0x4d6   :  { %4790 = vmatprep.subr.bf16.mxu0 %v6883_v35 }
 0x4d9   :  { %4791 = vmatpush3.bf16.msra.mxu0 %v5028_v0 }
 0x4da   :  { %4792 = vmatprep.subr.bf16.mxu0 %v6883_v35 }
 0x4dd   :  { %4793 = vmatpush3.bf16.msra.mxu0 %v5029_v42 }
 0x4de   :  { %4794 = vmatprep.subr.bf16.mxu0 %v6883_v35 }
 0x4e1   :  { %4795 = vmatpush3.bf16.msra.mxu0 %v5030_v51 }
 0x4e2   :  { %4796 = vmatprep.subr.bf16.mxu0 %v6883_v35 }
 0x4e5   :  { %4797 = vmatpush3.bf16.msra.mxu0 %v5031_v60 }
 0x4e6   :  { %4706 = vmatprep.subr.bf16.mxu0 %v5032_v22 }
 0x588   :  { %v3878_v59 = vpop.f32.mrf.mxu0 }
 0x589   :  { %v3918_v6 = vpack.c.bf16 %v3878_v59, %v3878_v59 }
 0x58a   :  { %v3880_v11 = vpop.f32.mrf.mxu0 }
 0x58b   :  { %4799 = vmatmul.mubr.bf16.vlgmr.msra.gmra.mxu0 %v3918_v6 }
 0x58c   :  { %4707 = vmatpush3.bf16.msra.mxu0 %v5033_v46  ;;  %4151 = vmatprep.mubr.bf16.mxu0 %v3885_v9  ;;  %v3881_v48 = vpop.f32.mrf.mxu0 }
 0x58d   :  { %4708 = vmatprep.subr.bf16.mxu0 %v5034_v28 }
 0x58e   :  { %v3882_v20 = vpop.f32.mrf.mxu0 }
 0x590   :  { %4709 = vmatpush3.bf16.msra.mxu0 %v5035_v13 }
 0x591   :  { %4710 = vmatprep.subr.bf16.mxu0 %v5036_v62 }
 0x594   :  { %4711 = vmatpush3.bf16.msra.mxu0 %v5037_v3 }
 0x595   :  { %4712 = vmatprep.subr.bf16.mxu0 %v5038_v5 }
 0x598   :  { %4713 = vmatpush3.bf16.msra.mxu0 %v5039_v1 }
 0x599   :  { %4714 = vmatprep.subr.bf16.mxu0 %v5040_v17 }
 0x59c   :  { %4715 = vmatpush3.bf16.msra.mxu0 %v5041_v45 }
 0x59d   :  { %4716 = vmatprep.subr.bf16.mxu0 %v5042_v52 }
 0x5a0   :  { %4717 = vmatpush3.bf16.msra.mxu0 %v5043_v2 }
 0x5a1   :  { %4718 = vmatprep.subr.bf16.mxu0 %v5044_v26 }
 0x5a4   :  { %4719 = vmatpush3.bf16.msra.mxu0 %v5045_v55 }
 0x5a5   :  { %4720 = vmatprep.subr.bf16.mxu0 %v5046_v23 }
 0x5a8   :  { %4721 = vmatpush3.bf16.msra.mxu0 %v5047_v12 }
 0x5ab   :  { %4152 = vmatmul.mubr.bf16.vlgmr.msra.gmra.mxu0 %v3884_v25 }
 0x64b   :  { %v4017_v36 = vpop.f32.mrf.mxu0 }
 0x64d   :  { %v4800_v39 = vpop.f32.mrf.mxu0 }
 0x64f   :  { %v4020_v49 = vpop.f32.mrf.mxu0 }
 0x651   :  { %v4801_v40 = vpop.f32.mrf.mxu0 }
 0x66b   :  { %v4722_v43 = vpop.f32.mrf.mxu0 }
 0x66d   :  { %v4723_v19 = vpop.f32.mrf.mxu0 }
 0x66e   :  { %v4724_v31 = vadd.f32 %v4723_v19, %v4722_v43 }
 0x66f   :  { %v4725_v21 = vpop.f32.mrf.mxu0 }
 0x670   :  { %v4154_v38 = vadd.f32 %v4724_v31, %v4017_v36 }
 0x671   :  { %v4726_v34 = vpop.f32.mrf.mxu0 }
 0x672   :  { %v4166_v37 = vadd.f32 %v4400_v16, %v4154_v38 }
 0x674   :  { %4167 = vmax.xlane.f32.xlu0 %v4166_v37 }
 0x6fd   :  { %v4168_v7 = vpop.xlane.xlu0 %4167 }
 0x6fe   :  { %v4169_v33 = vsub.f32 %v4166_v37, %v4168_v7 }
 0x700   :  { %v4170_v54 = vmul.f32 1.442695, %v4169_v33 }
 0x702   :  { %5072 = vpow2.f32 %v4170_v54 }
 0x70f   :  { %v5073_v14 = vpop.eup %5072 }
 0x710   :  { %4172 = vadd.xlane.f32.xlu0 %v5073_v14 }
 0x799   :  { %v4173_v10 = vpop.xlane.xlu0 %4172 }
 0x79a   :  { %5074 = vlog2.f32 %v4173_v10 }
 0x7a7   :  { %v5075_v63 = vpop.eup %5074 }
 0x7a8   :  { %v4175_v24 = vmul.f32 0.6931472, %v5075_v63 }
 0x7aa   :  { %v4176_v57 = vsub.f32 %v4169_v33, %v4175_v24 }
 0x7ac   :  { %4177 = vst [vmem:[#allocation20] sm:$0xff] %v4176_v57 }
 0x7ad   :  { %5307 = shalt.err (!%p5304_p3)
}
 0x7ae   :  { %4187 = dma.vmem_to_hbm [thread:$0]  %s4185_s16, 128, %s6783_s14, [#allocation4]  }
 0x7af   :  { %5328 = dma.done.wait [#allocation4], 128  }
 0x7b0   :  { %5329 = vsyncadd [#allocation4], 4294967168 }
 0x7b1   :  { %4191 = vsyncpa [#allocation3], 1 }
 0x7b2   :  { %4192 = vsyncpa [#allocation6], 1 }
 0x7b3   :  { %4193 = vsyncpa [#allocation9], 1 }
 0x7b4   :  { %4194 = vsyncpa [#allocation12], 1 }
 0x7b5   :  { %4195 = vsyncpa [#allocation15], 1 }
 0x7b6   :  { %4196 = vsyncpa [#allocation18], 1 }
 0x7b7   :  { %4197 = vsyncpa [#allocation4], 1 }

</bundles_post_ra>
